<compile_context>
chip_gen: v7x
topology: tpu7x:2x2x1
jax: 0.10.0
libtpu: 0.0.40
codegen_flags: <defaults>
</compile_context>

<pallas_src>
import functools

import jax
import jax.numpy as jnp
from jax.experimental import pallas as pl
from jax.experimental.pallas import tpu as pltpu

PAD = 32          # >= max dilation (18), rounded up to the bf16 sublane pack (16)
DMAX = 18         # largest dilation


def _round_up(x, m):
    return (x + m - 1) // m * m


def _mm(t, w):
    """(TH, Wc, Cin)[bf16] @ (Cin, Cout)[bf16] -> (TH*Wc, Cout)[f32].

    Wc is a multiple of 16, so merging the row dim into the sublane axis is a
    free vreg re-grouping (no cross-sublane relayout).
    """
    th, wc, c = t.shape
    return jnp.dot(t.reshape(th * wc, c), w, preferred_element_type=jnp.float32)


# ----------------------------------------------------------------------------
# Fused Pallas kernel: 1x1 + three dilated 3x3 branches + fusing 1x1
# ----------------------------------------------------------------------------
def _incep_kernel(x_ref, w1_ref, b1_ref, w6_ref, b6_ref, w12_ref, b12_ref,
                  w18_ref, b18_ref, wf_ref, bf_ref,
                  net_ref, a1_ref, a6_ref, a12_ref, a18_ref, *, TH, W, Wc):
    i = pl.program_id(1)
    row0 = pl.multiple_of(i * TH, TH)   # top output row of this tile (unpadded coords)

    def store(ref, v2d):
        v = v2d.reshape(TH, Wc, -1)
        ref[...] = v if Wc == W else v[:, :W, :]   # drop alignment-only columns

    # ----- 1x1 branch (center slice starts at PAD=32: sublane-aligned) --------
    center = x_ref[pl.ds(row0 + PAD, TH), pl.ds(PAD, Wc), :]       # (TH, Wc, Cin) bf16
    a1 = _mm(center, w1_ref[...]) + b1_ref[...]                    # (TH*Wc, D) f32

    # ----- dilated 3x3 branches: 9-tap dot chain into ONE local accumulator ---
    def dilated(w_ref, b_ref, d):
        acc = None
        for kw in range(3):
            col0 = PAD + (kw - 1) * d
            # One width shift per kw (hoisted out of the kh loop).
            cols = x_ref[pl.ds(row0 + PAD - d, TH + 2 * d), pl.ds(col0, Wc), :]
            for kh in range(3):
                tap = cols[kh * d:kh * d + TH]                     # leading-dim slice: free
                y = _mm(tap, w_ref[kh, kw])                        # per-tap Ref view, no copy
                acc = y if acc is None else acc + y
        return acc + b_ref[...]

    a6 = dilated(w6_ref, b6_ref, 6)
    a12 = dilated(w12_ref, b12_ref, 12)
    a18 = dilated(w18_ref, b18_ref, 18)

    # ----- fused final 1x1 over the (virtual) channel concat -------------------
    net = jnp.dot(a1.astype(jnp.bfloat16), wf_ref[0], preferred_element_type=jnp.float32)
    net = net + jnp.dot(a6.astype(jnp.bfloat16), wf_ref[1], preferred_element_type=jnp.float32)
    net = net + jnp.dot(a12.astype(jnp.bfloat16), wf_ref[2], preferred_element_type=jnp.float32)
    net = net + jnp.dot(a18.astype(jnp.bfloat16), wf_ref[3], preferred_element_type=jnp.float32)
    net = net + bf_ref[...]

    store(net_ref, net)
    store(a1_ref, a1)
    store(a6_ref, a6)
    store(a12_ref, a12)
    store(a18_ref, a18)


# ----------------------------------------------------------------------------
# Wrapper (pallas_call plumbing)
# ----------------------------------------------------------------------------
def incep_pallas_nhwc(x, params):
    """x: (N, H, W, Cin) f32 -> (net, a1, a6, a12, a18), each (N, H, W, depth) f32."""
    N, H, W, Cin = x.shape
    D = params["w1"].shape[1]

    TH = 8
    Hc = _round_up(H, TH)          # padded output rows so the row tile is always 8
    Wc = _round_up(W, 16)          # compute width: bf16 sublane pack
    Hp = Hc + 2 * PAD
    Wp = Wc + 2 * PAD              # multiple of 16 by construction
    nH = Hc // TH

    # Pad once for the largest dilation; the extra zero rows/cols are either never
    # read or only feed alignment-only outputs that are sliced off below.
    xp = jnp.pad(x.astype(jnp.bfloat16),
                 ((0, 0), (PAD, Hp - H - PAD), (PAD, Wp - W - PAD), (0, 0)))

    bf16 = lambda a: a.astype(jnp.bfloat16)
    w1, w6, w12, w18 = (bf16(params[k]) for k in ("w1", "w6", "w12", "w18"))
    wf = bf16(params["wf"]).reshape(4, D, D)
    b1, b6, b12, b18, bfin = (params[k].reshape(1, D).astype(jnp.float32)
                              for k in ("b1", "b6", "b12", "b18", "bf"))

    def full(shape):
        return pl.BlockSpec(shape, lambda n, i, _nd=len(shape): (0,) * _nd)

    out_spec = pl.BlockSpec((None, TH, W, D), lambda n, i: (n, i, 0, 0))
    out_shape = jax.ShapeDtypeStruct((N, Hc, W, D), jnp.float32)

    # Cost hint for XLA's scheduler: 1x1 + 3*(3x3) branches + fusing 1x1.
    w_bytes = (w1.size + w6.size + w12.size + w18.size + wf.size) * 2
    flops = int(2 * N * Hc * Wc * Cin * D * 28 + 2 * N * Hc * Wc * 4 * D * D)
    bytes_accessed = int(xp.size * 2 + w_bytes + 5 * N * Hc * W * D * 4)
    cost = pl.CostEstimate(flops=flops, transcendentals=0,
                           bytes_accessed=bytes_accessed)

    # Explicit scoped-VMEM budget (v5e defaults to 16 MiB); cap at v7x's 64 MiB.
    vmem_need = (2 * Hp * Wp * Cin * 2          # double-buffered padded image
                 + 2 * w_bytes                  # double-buffered (grid-invariant) weights
                 + 2 * 5 * TH * W * D * 4)      # double-buffered output tiles
    vmem_limit = int(min(64 * 2**20, max(2 * vmem_need, 32 * 2**20)))

    kern = functools.partial(_incep_kernel, TH=TH, W=W, Wc=Wc)
    outs = pl.pallas_call(
        kern,
        out_shape=(out_shape,) * 5,             # (net, a1, a6, a12, a18)
        grid=(N, nH),
        in_specs=[
            # Padded image: block index only depends on n, so it is DMA'd once
            # per batch element and stays resident across the inner row tiles.
            pl.BlockSpec((None, Hp, Wp, Cin), lambda n, i: (n, 0, 0, 0)),
            full((Cin, D)),                     # w1
            full((1, D)),                       # b1
            full((3, 3, Cin, D)),               # w6
            full((1, D)),                       # b6
            full((3, 3, Cin, D)),               # w12
            full((1, D)),                       # b12
            full((3, 3, Cin, D)),               # w18
            full((1, D)),                       # b18
            full((4, D, D)),                    # wf (fusing 1x1, split per branch)
            full((1, D)),                       # bf
        ],
        out_specs=(out_spec,) * 5,
        compiler_params=pltpu.CompilerParams(
            dimension_semantics=("parallel", "parallel"),
            vmem_limit_bytes=vmem_limit),
        cost_estimate=cost,
    )(xp, w1, b1, w6, b6, w12, b12, w18, b18, wf, bfin)

    if Hc != H:
        outs = tuple(o[:, :H] for o in outs)
    return outs


# ----------------------------------------------------------------------------
# Incep module (parameters + forward)
# ----------------------------------------------------------------------------
def init_incep_params(key, in_channel, depth):
    """Deterministic synthetic parameters (shapes follow the nn.Module)."""
    ks = jax.random.split(key, 10)
    s = 0.1

    def w3(k):
        return jax.random.normal(k, (3, 3, in_channel, depth), jnp.float32) * s

    params = {
        # atrous_block1: Conv2d(in_channel, depth, 1, 1)
        "w1": jax.random.normal(ks[0], (in_channel, depth), jnp.float32) * s,
        "b1": jax.random.normal(ks[1], (depth,), jnp.float32) * s,
        # atrous_block6 / 12 / 18: Conv2d(in_channel, depth, 3, padding=d, dilation=d)
        "w6": w3(ks[2]), "b6": jax.random.normal(ks[3], (depth,), jnp.float32) * s,
        "w12": w3(ks[4]), "b12": jax.random.normal(ks[5], (depth,), jnp.float32) * s,
        "w18": w3(ks[6]), "b18": jax.random.normal(ks[7], (depth,), jnp.float32) * s,
        # conv1x1 fuses the concat of the 4 branches (4*depth -> depth).
        # TODO(synk): the PyTorch module hardcodes Conv2d(512, 256, 1), which is
        # inconsistent with the 4*depth-channel concat and would raise at runtime;
        # we use in=4*depth, out=depth so the forward pass is well-defined.
        "wf": jax.random.normal(ks[8], (4 * depth, depth), jnp.float32) * s,
        "bf": jax.random.normal(ks[9], (depth,), jnp.float32) * s,
    }
    # Note: self.mean (AdaptiveAvgPool2d) and self.conv are unused in forward().
    return params


def incep_forward(params, x_nchw):
    """Mirrors Incep.forward; input/outputs are NCHW like PyTorch."""
    x = jnp.transpose(x_nchw, (0, 2, 3, 1))       # NCHW -> NHWC
    net, a1, a6, a12, a18 = incep_pallas_nhwc(x, params)
    to_nchw = lambda t: jnp.transpose(t, (0, 3, 1, 2))
    return tuple(to_nchw(t) for t in (net, a1, a6, a12, a18))


# ----------------------------------------------------------------------------
# Pure-JAX reference for verification
# ----------------------------------------------------------------------------
def _ref_conv_nhwc(x, w_hwio, b, dil):
    kh = w_hwio.shape[0]
    pad = dil if kh == 3 else 0
    y = jax.lax.conv_general_dilated(
        x, w_hwio, window_strides=(1, 1),
        padding=[(pad, pad), (pad, pad)],
        rhs_dilation=(dil, dil),
        dimension_numbers=("NHWC", "HWIO", "NHWC"),
        preferred_element_type=jnp.float32)
    return y + b


def incep_reference(params, x_nchw):
    x = jnp.transpose(x_nchw, (0, 2, 3, 1))
    a1 = _ref_conv_nhwc(x, params["w1"][None, None], params["b1"], 1)
    a6 = _ref_conv_nhwc(x, params["w6"], params["b6"], 6)
    a12 = _ref_conv_nhwc(x, params["w12"], params["b12"], 12)
    a18 = _ref_conv_nhwc(x, params["w18"], params["b18"], 18)
    net = jnp.concatenate([a1, a6, a12, a18], axis=-1)
    net = _ref_conv_nhwc(net, params["wf"][None, None], params["bf"], 1)
    to_nchw = lambda t: jnp.transpose(t, (0, 3, 1, 2))
    return (to_nchw(net), to_nchw(a1), to_nchw(a6), to_nchw(a12), to_nchw(a18))


# ----------------------------------------------------------------------------
if __name__ == "__main__":
    # Small shapes consistent with the module: N=2, in_channel=8, H=W=16, depth=4.
    N, CIN, H, W, DEPTH = 2, 8, 16, 16, 4

    key = jax.random.PRNGKey(0)
    k_x, k_p = jax.random.split(key)
    x = jax.random.normal(k_x, (N, CIN, H, W), jnp.float32)
    params = init_incep_params(k_p, CIN, DEPTH)

    outs = jax.block_until_ready(incep_forward(params, x))
    refs = jax.block_until_ready(incep_reference(params, x))

    names = ["net", "atrous_block1", "atrous_block6", "atrous_block12", "atrous_block18"]
    for name, o, r in zip(names, outs, refs):
        assert o.shape == r.shape, (name, o.shape, r.shape)
        err = float(jnp.max(jnp.abs(o - r)))
        # bf16 MXU inputs with f32 accumulation (and a bf16 recast feeding the
        # fusing 1x1): errors stay well under 5e-2 at these magnitudes.
        assert err < 5e-2, f"{name}: max abs err {err}"

    print("KERNEL_OK")
</pallas_src>

<mosaic_0001>
module attributes {stable_mosaic.version = 11 : i64} {
  func.func @_incep_kernel(%arg0: i32, %arg1: i32, %arg2: memref<1x80x80x8xbf16, #tpu.memory_space<vmem>>, %arg3: memref<8x4xbf16, #tpu.memory_space<vmem>>, %arg4: memref<1x4xf32, #tpu.memory_space<vmem>>, %arg5: memref<3x3x8x4xbf16, #tpu.memory_space<vmem>>, %arg6: memref<1x4xf32, #tpu.memory_space<vmem>>, %arg7: memref<3x3x8x4xbf16, #tpu.memory_space<vmem>>, %arg8: memref<1x4xf32, #tpu.memory_space<vmem>>, %arg9: memref<3x3x8x4xbf16, #tpu.memory_space<vmem>>, %arg10: memref<1x4xf32, #tpu.memory_space<vmem>>, %arg11: memref<4x4x4xbf16, #tpu.memory_space<vmem>>, %arg12: memref<1x4xf32, #tpu.memory_space<vmem>>, %arg13: memref<1x8x16x4xf32, #tpu.memory_space<vmem>>, %arg14: memref<1x8x16x4xf32, #tpu.memory_space<vmem>>, %arg15: memref<1x8x16x4xf32, #tpu.memory_space<vmem>>, %arg16: memref<1x8x16x4xf32, #tpu.memory_space<vmem>>, %arg17: memref<1x8x16x4xf32, #tpu.memory_space<vmem>>) attributes {dimension_semantics = [#tpu.dimension_semantics<parallel>, #tpu.dimension_semantics<parallel>], iteration_bounds = array<i64: 2, 2>, scalar_prefetch = 0 : i64, scratch_operands = 0 : i64, tpu.core_type = #tpu.core_type<tc>, window_params = [{transform_indices = @transform_0, window_bounds = array<i64: 1, 80, 80, 8>}, {pipeline_mode = #tpu.pipeline_mode<synchronous>, transform_indices = @transform_1, window_bounds = array<i64: 8, 4>}, {pipeline_mode = #tpu.pipeline_mode<synchronous>, transform_indices = @transform_2, window_bounds = array<i64: 1, 4>}, {pipeline_mode = #tpu.pipeline_mode<synchronous>, transform_indices = @transform_3, window_bounds = array<i64: 3, 3, 8, 4>}, {pipeline_mode = #tpu.pipeline_mode<synchronous>, transform_indices = @transform_4, window_bounds = array<i64: 1, 4>}, {pipeline_mode = #tpu.pipeline_mode<synchronous>, transform_indices = @transform_5, window_bounds = array<i64: 3, 3, 8, 4>}, {pipeline_mode = #tpu.pipeline_mode<synchronous>, transform_indices = @transform_6, window_bounds = array<i64: 1, 4>}, {pipeline_mode = #tpu.pipeline_mode<synchronous>, transform_indices = @transform_7, window_bounds = array<i64: 3, 3, 8, 4>}, {pipeline_mode = #tpu.pipeline_mode<synchronous>, transform_indices = @transform_8, window_bounds = array<i64: 1, 4>}, {pipeline_mode = #tpu.pipeline_mode<synchronous>, transform_indices = @transform_9, window_bounds = array<i64: 4, 4, 4>}, {pipeline_mode = #tpu.pipeline_mode<synchronous>, transform_indices = @transform_10, window_bounds = array<i64: 1, 4>}, {transform_indices = @transform_11, window_bounds = array<i64: 1, 8, 16, 4>}, {transform_indices = @transform_12, window_bounds = array<i64: 1, 8, 16, 4>}, {transform_indices = @transform_13, window_bounds = array<i64: 1, 8, 16, 4>}, {transform_indices = @transform_14, window_bounds = array<i64: 1, 8, 16, 4>}, {transform_indices = @transform_15, window_bounds = array<i64: 1, 8, 16, 4>}]} {
    %c8_i32 = arith.constant 8 : i32
    %0 = arith.muli %arg1, %c8_i32 : i32
    %1 = tpu.assume_multiple %0, 8 : i32
    %c32_i32 = arith.constant 32 : i32
    %2 = arith.addi %1, %c32_i32 : i32
    %c0 = arith.constant 0 : index
    %3 = arith.index_cast %2 : i32 to index
    %c32 = arith.constant 32 : index
    %c0_0 = arith.constant 0 : index
    %4 = vector.load %arg2[%c0, %3, %c32, %c0_0] : memref<1x80x80x8xbf16, #tpu.memory_space<vmem>>, vector<1x8x16x8xbf16>
    %5 = vector.shape_cast %4 : vector<1x8x16x8xbf16> to vector<8x16x8xbf16>
    %c0_1 = arith.constant 0 : index
    %c0_2 = arith.constant 0 : index
    %6 = vector.load %arg3[%c0_1, %c0_2] : memref<8x4xbf16, #tpu.memory_space<vmem>>, vector<8x4xbf16>
    %7 = vector.shape_cast %5 : vector<8x16x8xbf16> to vector<128x8xbf16>
    %cst = arith.constant dense<0.000000e+00> : vector<128x4xf32>
    %8 = tpu.matmul %7, %6, %cst {dimension_numbers = #tpu.dot_dimension_numbers<[1], [0], [0], [1], [0, 0, 1, 1], [], []>} : vector<128x8xbf16>, vector<8x4xbf16>, vector<128x4xf32> -> vector<128x4xf32>
    %c0_3 = arith.constant 0 : index
    %c0_4 = arith.constant 0 : index
    %9 = vector.load %arg4[%c0_3, %c0_4] : memref<1x4xf32, #tpu.memory_space<vmem>>, vector<1x4xf32>
    %10 = vector.broadcast %9 : vector<1x4xf32> to vector<128x4xf32>
    %11 = arith.addf %8, %10 : vector<128x4xf32>
    %c32_i32_5 = arith.constant 32 : i32
    %12 = arith.addi %1, %c32_i32_5 : i32
    %c6_i32 = arith.constant 6 : i32
    %13 = arith.subi %12, %c6_i32 : i32
    %c0_6 = arith.constant 0 : index
    %14 = arith.index_cast %13 : i32 to index
    %c26 = arith.constant 26 : index
    %c0_7 = arith.constant 0 : index
    %15 = vector.load %arg2[%c0_6, %14, %c26, %c0_7] : memref<1x80x80x8xbf16, #tpu.memory_space<vmem>>, vector<1x20x16x8xbf16>
    %16 = vector.shape_cast %15 : vector<1x20x16x8xbf16> to vector<20x16x8xbf16>
    %17 = vector.extract_strided_slice %16 {offsets = [0, 0, 0], sizes = [8, 16, 8], strides = [1, 1, 1]} : vector<20x16x8xbf16> to vector<8x16x8xbf16>
    %c0_8 = arith.constant 0 : index
    %c0_9 = arith.constant 0 : index
    %c0_10 = arith.constant 0 : index
    %c0_11 = arith.constant 0 : index
    %18 = vector.load %arg5[%c0_8, %c0_9, %c0_10, %c0_11] : memref<3x3x8x4xbf16, #tpu.memory_space<vmem>>, vector<1x1x8x4xbf16>
    %19 = vector.shape_cast %18 : vector<1x1x8x4xbf16> to vector<8x4xbf16>
    %20 = vector.shape_cast %17 : vector<8x16x8xbf16> to vector<128x8xbf16>
    %cst_12 = arith.constant dense<0.000000e+00> : vector<128x4xf32>
    %21 = tpu.matmul %20, %19, %cst_12 {dimension_numbers = #tpu.dot_dimension_numbers<[1], [0], [0], [1], [0, 0, 1, 1], [], []>} : vector<128x8xbf16>, vector<8x4xbf16>, vector<128x4xf32> -> vector<128x4xf32>
    %22 = vector.extract_strided_slice %16 {offsets = [6, 0, 0], sizes = [8, 16, 8], strides = [1, 1, 1]} : vector<20x16x8xbf16> to vector<8x16x8xbf16>
    %c1 = arith.constant 1 : index
    %c0_13 = arith.constant 0 : index
    %c0_14 = arith.constant 0 : index
    %c0_15 = arith.constant 0 : index
    %23 = vector.load %arg5[%c1, %c0_13, %c0_14, %c0_15] : memref<3x3x8x4xbf16, #tpu.memory_space<vmem>>, vector<1x1x8x4xbf16>
    %24 = vector.shape_cast %23 : vector<1x1x8x4xbf16> to vector<8x4xbf16>
    %25 = vector.shape_cast %22 : vector<8x16x8xbf16> to vector<128x8xbf16>
    %cst_16 = arith.constant dense<0.000000e+00> : vector<128x4xf32>
    %26 = tpu.matmul %25, %24, %cst_16 {dimension_numbers = #tpu.dot_dimension_numbers<[1], [0], [0], [1], [0, 0, 1, 1], [], []>} : vector<128x8xbf16>, vector<8x4xbf16>, vector<128x4xf32> -> vector<128x4xf32>
    %27 = arith.addf %21, %26 : vector<128x4xf32>
    %28 = vector.extract_strided_slice %16 {offsets = [12, 0, 0], sizes = [8, 16, 8], strides = [1, 1, 1]} : vector<20x16x8xbf16> to vector<8x16x8xbf16>
    %c2 = arith.constant 2 : index
    %c0_17 = arith.constant 0 : index
    %c0_18 = arith.constant 0 : index
    %c0_19 = arith.constant 0 : index
    %29 = vector.load %arg5[%c2, %c0_17, %c0_18, %c0_19] : memref<3x3x8x4xbf16, #tpu.memory_space<vmem>>, vector<1x1x8x4xbf16>
    %30 = vector.shape_cast %29 : vector<1x1x8x4xbf16> to vector<8x4xbf16>
    %31 = vector.shape_cast %28 : vector<8x16x8xbf16> to vector<128x8xbf16>
    %cst_20 = arith.constant dense<0.000000e+00> : vector<128x4xf32>
    %32 = tpu.matmul %31, %30, %cst_20 {dimension_numbers = #tpu.dot_dimension_numbers<[1], [0], [0], [1], [0, 0, 1, 1], [], []>} : vector<128x8xbf16>, vector<8x4xbf16>, vector<128x4xf32> -> vector<128x4xf32>
    %33 = arith.addf %27, %32 : vector<128x4xf32>
    %c32_i32_21 = arith.constant 32 : i32
    %34 = arith.addi %1, %c32_i32_21 : i32
    %c6_i32_22 = arith.constant 6 : i32
    %35 = arith.subi %34, %c6_i32_22 : i32
    %c0_23 = arith.constant 0 : index
    %36 = arith.index_cast %35 : i32 to index
    %c32_24 = arith.constant 32 : index
    %c0_25 = arith.constant 0 : index
    %37 = vector.load %arg2[%c0_23, %36, %c32_24, %c0_25] : memref<1x80x80x8xbf16, #tpu.memory_space<vmem>>, vector<1x20x16x8xbf16>
    %38 = vector.shape_cast %37 : vector<1x20x16x8xbf16> to vector<20x16x8xbf16>
    %39 = vector.extract_strided_slice %38 {offsets = [0, 0, 0], sizes = [8, 16, 8], strides = [1, 1, 1]} : vector<20x16x8xbf16> to vector<8x16x8xbf16>
    %c0_26 = arith.constant 0 : index
    %c1_27 = arith.constant 1 : index
    %c0_28 = arith.constant 0 : index
    %c0_29 = arith.constant 0 : index
    %40 = vector.load %arg5[%c0_26, %c1_27, %c0_28, %c0_29] : memref<3x3x8x4xbf16, #tpu.memory_space<vmem>>, vector<1x1x8x4xbf16>
    %41 = vector.shape_cast %40 : vector<1x1x8x4xbf16> to vector<8x4xbf16>
    %42 = vector.shape_cast %39 : vector<8x16x8xbf16> to vector<128x8xbf16>
    %cst_30 = arith.constant dense<0.000000e+00> : vector<128x4xf32>
    %43 = tpu.matmul %42, %41, %cst_30 {dimension_numbers = #tpu.dot_dimension_numbers<[1], [0], [0], [1], [0, 0, 1, 1], [], []>} : vector<128x8xbf16>, vector<8x4xbf16>, vector<128x4xf32> -> vector<128x4xf32>
    %44 = arith.addf %33, %43 : vector<128x4xf32>
    %45 = vector.extract_strided_slice %38 {offsets = [6, 0, 0], sizes = [8, 16, 8], strides = [1, 1, 1]} : vector<20x16x8xbf16> to vector<8x16x8xbf16>
    %c1_31 = arith.constant 1 : index
    %c1_32 = arith.constant 1 : index
    %c0_33 = arith.constant 0 : index
    %c0_34 = arith.constant 0 : index
    %46 = vector.load %arg5[%c1_31, %c1_32, %c0_33, %c0_34] : memref<3x3x8x4xbf16, #tpu.memory_space<vmem>>, vector<1x1x8x4xbf16>
    %47 = vector.shape_cast %46 : vector<1x1x8x4xbf16> to vector<8x4xbf16>
    %48 = vector.shape_cast %45 : vector<8x16x8xbf16> to vector<128x8xbf16>
    %cst_35 = arith.constant dense<0.000000e+00> : vector<128x4xf32>
    %49 = tpu.matmul %48, %47, %cst_35 {dimension_numbers = #tpu.dot_dimension_numbers<[1], [0], [0], [1], [0, 0, 1, 1], [], []>} : vector<128x8xbf16>, vector<8x4xbf16>, vector<128x4xf32> -> vector<128x4xf32>
    %50 = arith.addf %44, %49 : vector<128x4xf32>
    %51 = vector.extract_strided_slice %38 {offsets = [12, 0, 0], sizes = [8, 16, 8], strides = [1, 1, 1]} : vector<20x16x8xbf16> to vector<8x16x8xbf16>
    %c2_36 = arith.constant 2 : index
    %c1_37 = arith.constant 1 : index
    %c0_38 = arith.constant 0 : index
    %c0_39 = arith.constant 0 : index
    %52 = vector.load %arg5[%c2_36, %c1_37, %c0_38, %c0_39] : memref<3x3x8x4xbf16, #tpu.memory_space<vmem>>, vector<1x1x8x4xbf16>
    %53 = vector.shape_cast %52 : vector<1x1x8x4xbf16> to vector<8x4xbf16>
    %54 = vector.shape_cast %51 : vector<8x16x8xbf16> to vector<128x8xbf16>
    %cst_40 = arith.constant dense<0.000000e+00> : vector<128x4xf32>
    %55 = tpu.matmul %54, %53, %cst_40 {dimension_numbers = #tpu.dot_dimension_numbers<[1], [0], [0], [1], [0, 0, 1, 1], [], []>} : vector<128x8xbf16>, vector<8x4xbf16>, vector<128x4xf32> -> vector<128x4xf32>
    %56 = arith.addf %50, %55 : vector<128x4xf32>
    %c32_i32_41 = arith.constant 32 : i32
    %57 = arith.addi %1, %c32_i32_41 : i32
    %c6_i32_42 = arith.constant 6 : i32
    %58 = arith.subi %57, %c6_i32_42 : i32
    %c0_43 = arith.constant 0 : index
    %59 = arith.index_cast %58 : i32 to index
    %c38 = arith.constant 38 : index
    %c0_44 = arith.constant 0 : index
    %60 = vector.load %arg2[%c0_43, %59, %c38, %c0_44] : memref<1x80x80x8xbf16, #tpu.memory_space<vmem>>, vector<1x20x16x8xbf16>
    %61 = vector.shape_cast %60 : vector<1x20x16x8xbf16> to vector<20x16x8xbf16>
    %62 = vector.extract_strided_slice %61 {offsets = [0, 0, 0], sizes = [8, 16, 8], strides = [1, 1, 1]} : vector<20x16x8xbf16> to vector<8x16x8xbf16>
    %c0_45 = arith.constant 0 : index
    %c2_46 = arith.constant 2 : index
    %c0_47 = arith.constant 0 : index
    %c0_48 = arith.constant 0 : index
    %63 = vector.load %arg5[%c0_45, %c2_46, %c0_47, %c0_48] : memref<3x3x8x4xbf16, #tpu.memory_space<vmem>>, vector<1x1x8x4xbf16>
    %64 = vector.shape_cast %63 : vector<1x1x8x4xbf16> to vector<8x4xbf16>
    %65 = vector.shape_cast %62 : vector<8x16x8xbf16> to vector<128x8xbf16>
    %cst_49 = arith.constant dense<0.000000e+00> : vector<128x4xf32>
    %66 = tpu.matmul %65, %64, %cst_49 {dimension_numbers = #tpu.dot_dimension_numbers<[1], [0], [0], [1], [0, 0, 1, 1], [], []>} : vector<128x8xbf16>, vector<8x4xbf16>, vector<128x4xf32> -> vector<128x4xf32>
    %67 = arith.addf %56, %66 : vector<128x4xf32>
    %68 = vector.extract_strided_slice %61 {offsets = [6, 0, 0], sizes = [8, 16, 8], strides = [1, 1, 1]} : vector<20x16x8xbf16> to vector<8x16x8xbf16>
    %c1_50 = arith.constant 1 : index
    %c2_51 = arith.constant 2 : index
    %c0_52 = arith.constant 0 : index
    %c0_53 = arith.constant 0 : index
    %69 = vector.load %arg5[%c1_50, %c2_51, %c0_52, %c0_53] : memref<3x3x8x4xbf16, #tpu.memory_space<vmem>>, vector<1x1x8x4xbf16>
    %70 = vector.shape_cast %69 : vector<1x1x8x4xbf16> to vector<8x4xbf16>
    %71 = vector.shape_cast %68 : vector<8x16x8xbf16> to vector<128x8xbf16>
    %cst_54 = arith.constant dense<0.000000e+00> : vector<128x4xf32>
    %72 = tpu.matmul %71, %70, %cst_54 {dimension_numbers = #tpu.dot_dimension_numbers<[1], [0], [0], [1], [0, 0, 1, 1], [], []>} : vector<128x8xbf16>, vector<8x4xbf16>, vector<128x4xf32> -> vector<128x4xf32>
    %73 = arith.addf %67, %72 : vector<128x4xf32>
    %74 = vector.extract_strided_slice %61 {offsets = [12, 0, 0], sizes = [8, 16, 8], strides = [1, 1, 1]} : vector<20x16x8xbf16> to vector<8x16x8xbf16>
    %c2_55 = arith.constant 2 : index
    %c2_56 = arith.constant 2 : index
    %c0_57 = arith.constant 0 : index
    %c0_58 = arith.constant 0 : index
    %75 = vector.load %arg5[%c2_55, %c2_56, %c0_57, %c0_58] : memref<3x3x8x4xbf16, #tpu.memory_space<vmem>>, vector<1x1x8x4xbf16>
    %76 = vector.shape_cast %75 : vector<1x1x8x4xbf16> to vector<8x4xbf16>
    %77 = vector.shape_cast %74 : vector<8x16x8xbf16> to vector<128x8xbf16>
    %cst_59 = arith.constant dense<0.000000e+00> : vector<128x4xf32>
    %78 = tpu.matmul %77, %76, %cst_59 {dimension_numbers = #tpu.dot_dimension_numbers<[1], [0], [0], [1], [0, 0, 1, 1], [], []>} : vector<128x8xbf16>, vector<8x4xbf16>, vector<128x4xf32> -> vector<128x4xf32>
    %79 = arith.addf %73, %78 : vector<128x4xf32>
    %c0_60 = arith.constant 0 : index
    %c0_61 = arith.constant 0 : index
    %80 = vector.load %arg6[%c0_60, %c0_61] : memref<1x4xf32, #tpu.memory_space<vmem>>, vector<1x4xf32>
    %81 = vector.broadcast %80 : vector<1x4xf32> to vector<128x4xf32>
    %82 = arith.addf %79, %81 : vector<128x4xf32>
    %c32_i32_62 = arith.constant 32 : i32
    %83 = arith.addi %1, %c32_i32_62 : i32
    %c12_i32 = arith.constant 12 : i32
    %84 = arith.subi %83, %c12_i32 : i32
    %c0_63 = arith.constant 0 : index
    %85 = arith.index_cast %84 : i32 to index
    %c20 = arith.constant 20 : index
    %c0_64 = arith.constant 0 : index
    %86 = vector.load %arg2[%c0_63, %85, %c20, %c0_64] : memref<1x80x80x8xbf16, #tpu.memory_space<vmem>>, vector<1x32x16x8xbf16>
    %87 = vector.shape_cast %86 : vector<1x32x16x8xbf16> to vector<32x16x8xbf16>
    %88 = vector.extract_strided_slice %87 {offsets = [0, 0, 0], sizes = [8, 16, 8], strides = [1, 1, 1]} : vector<32x16x8xbf16> to vector<8x16x8xbf16>
    %c0_65 = arith.constant 0 : index
    %c0_66 = arith.constant 0 : index
    %c0_67 = arith.constant 0 : index
    %c0_68 = arith.constant 0 : index
    %89 = vector.load %arg7[%c0_65, %c0_66, %c0_67, %c0_68] : memref<3x3x8x4xbf16, #tpu.memory_space<vmem>>, vector<1x1x8x4xbf16>
    %90 = vector.shape_cast %89 : vector<1x1x8x4xbf16> to vector<8x4xbf16>
    %91 = vector.shape_cast %88 : vector<8x16x8xbf16> to vector<128x8xbf16>
    %cst_69 = arith.constant dense<0.000000e+00> : vector<128x4xf32>
    %92 = tpu.matmul %91, %90, %cst_69 {dimension_numbers = #tpu.dot_dimension_numbers<[1], [0], [0], [1], [0, 0, 1, 1], [], []>} : vector<128x8xbf16>, vector<8x4xbf16>, vector<128x4xf32> -> vector<128x4xf32>
    %93 = vector.extract_strided_slice %87 {offsets = [12, 0, 0], sizes = [8, 16, 8], strides = [1, 1, 1]} : vector<32x16x8xbf16> to vector<8x16x8xbf16>
    %c1_70 = arith.constant 1 : index
    %c0_71 = arith.constant 0 : index
    %c0_72 = arith.constant 0 : index
    %c0_73 = arith.constant 0 : index
    %94 = vector.load %arg7[%c1_70, %c0_71, %c0_72, %c0_73] : memref<3x3x8x4xbf16, #tpu.memory_space<vmem>>, vector<1x1x8x4xbf16>
    %95 = vector.shape_cast %94 : vector<1x1x8x4xbf16> to vector<8x4xbf16>
    %96 = vector.shape_cast %93 : vector<8x16x8xbf16> to vector<128x8xbf16>
    %cst_74 = arith.constant dense<0.000000e+00> : vector<128x4xf32>
    %97 = tpu.matmul %96, %95, %cst_74 {dimension_numbers = #tpu.dot_dimension_numbers<[1], [0], [0], [1], [0, 0, 1, 1], [], []>} : vector<128x8xbf16>, vector<8x4xbf16>, vector<128x4xf32> -> vector<128x4xf32>
    %98 = arith.addf %92, %97 : vector<128x4xf32>
    %99 = vector.extract_strided_slice %87 {offsets = [24, 0, 0], sizes = [8, 16, 8], strides = [1, 1, 1]} : vector<32x16x8xbf16> to vector<8x16x8xbf16>
    %c2_75 = arith.constant 2 : index
    %c0_76 = arith.constant 0 : index
    %c0_77 = arith.constant 0 : index
    %c0_78 = arith.constant 0 : index
    %100 = vector.load %arg7[%c2_75, %c0_76, %c0_77, %c0_78] : memref<3x3x8x4xbf16, #tpu.memory_space<vmem>>, vector<1x1x8x4xbf16>
    %101 = vector.shape_cast %100 : vector<1x1x8x4xbf16> to vector<8x4xbf16>
    %102 = vector.shape_cast %99 : vector<8x16x8xbf16> to vector<128x8xbf16>
    %cst_79 = arith.constant dense<0.000000e+00> : vector<128x4xf32>
    %103 = tpu.matmul %102, %101, %cst_79 {dimension_numbers = #tpu.dot_dimension_numbers<[1], [0], [0], [1], [0, 0, 1, 1], [], []>} : vector<128x8xbf16>, vector<8x4xbf16>, vector<128x4xf32> -> vector<128x4xf32>
    %104 = arith.addf %98, %103 : vector<128x4xf32>
    %c32_i32_80 = arith.constant 32 : i32
    %105 = arith.addi %1, %c32_i32_80 : i32
    %c12_i32_81 = arith.constant 12 : i32
    %106 = arith.subi %105, %c12_i32_81 : i32
    %c0_82 = arith.constant 0 : index
    %107 = arith.index_cast %106 : i32 to index
    %c32_83 = arith.constant 32 : index
    %c0_84 = arith.constant 0 : index
    %108 = vector.load %arg2[%c0_82, %107, %c32_83, %c0_84] : memref<1x80x80x8xbf16, #tpu.memory_space<vmem>>, vector<1x32x16x8xbf16>
    %109 = vector.shape_cast %108 : vector<1x32x16x8xbf16> to vector<32x16x8xbf16>
    %110 = vector.extract_strided_slice %109 {offsets = [0, 0, 0], sizes = [8, 16, 8], strides = [1, 1, 1]} : vector<32x16x8xbf16> to vector<8x16x8xbf16>
    %c0_85 = arith.constant 0 : index
    %c1_86 = arith.constant 1 : index
    %c0_87 = arith.constant 0 : index
    %c0_88 = arith.constant 0 : index
    %111 = vector.load %arg7[%c0_85, %c1_86, %c0_87, %c0_88] : memref<3x3x8x4xbf16, #tpu.memory_space<vmem>>, vector<1x1x8x4xbf16>
    %112 = vector.shape_cast %111 : vector<1x1x8x4xbf16> to vector<8x4xbf16>
    %113 = vector.shape_cast %110 : vector<8x16x8xbf16> to vector<128x8xbf16>
    %cst_89 = arith.constant dense<0.000000e+00> : vector<128x4xf32>
    %114 = tpu.matmul %113, %112, %cst_89 {dimension_numbers = #tpu.dot_dimension_numbers<[1], [0], [0], [1], [0, 0, 1, 1], [], []>} : vector<128x8xbf16>, vector<8x4xbf16>, vector<128x4xf32> -> vector<128x4xf32>
    %115 = arith.addf %104, %114 : vector<128x4xf32>
    %116 = vector.extract_strided_slice %109 {offsets = [12, 0, 0], sizes = [8, 16, 8], strides = [1, 1, 1]} : vector<32x16x8xbf16> to vector<8x16x8xbf16>
    %c1_90 = arith.constant 1 : index
    %c1_91 = arith.constant 1 : index
    %c0_92 = arith.constant 0 : index
    %c0_93 = arith.constant 0 : index
    %117 = vector.load %arg7[%c1_90, %c1_91, %c0_92, %c0_93] : memref<3x3x8x4xbf16, #tpu.memory_space<vmem>>, vector<1x1x8x4xbf16>
    %118 = vector.shape_cast %117 : vector<1x1x8x4xbf16> to vector<8x4xbf16>
    %119 = vector.shape_cast %116 : vector<8x16x8xbf16> to vector<128x8xbf16>
    %cst_94 = arith.constant dense<0.000000e+00> : vector<128x4xf32>
    %120 = tpu.matmul %119, %118, %cst_94 {dimension_numbers = #tpu.dot_dimension_numbers<[1], [0], [0], [1], [0, 0, 1, 1], [], []>} : vector<128x8xbf16>, vector<8x4xbf16>, vector<128x4xf32> -> vector<128x4xf32>
    %121 = arith.addf %115, %120 : vector<128x4xf32>
    %122 = vector.extract_strided_slice %109 {offsets = [24, 0, 0], sizes = [8, 16, 8], strides = [1, 1, 1]} : vector<32x16x8xbf16> to vector<8x16x8xbf16>
    %c2_95 = arith.constant 2 : index
    %c1_96 = arith.constant 1 : index
    %c0_97 = arith.constant 0 : index
    %c0_98 = arith.constant 0 : index
    %123 = vector.load %arg7[%c2_95, %c1_96, %c0_97, %c0_98] : memref<3x3x8x4xbf16, #tpu.memory_space<vmem>>, vector<1x1x8x4xbf16>
    %124 = vector.shape_cast %123 : vector<1x1x8x4xbf16> to vector<8x4xbf16>
    %125 = vector.shape_cast %122 : vector<8x16x8xbf16> to vector<128x8xbf16>
    %cst_99 = arith.constant dense<0.000000e+00> : vector<128x4xf32>
    %126 = tpu.matmul %125, %124, %cst_99 {dimension_numbers = #tpu.dot_dimension_numbers<[1], [0], [0], [1], [0, 0, 1, 1], [], []>} : vector<128x8xbf16>, vector<8x4xbf16>, vector<128x4xf32> -> vector<128x4xf32>
    %127 = arith.addf %121, %126 : vector<128x4xf32>
    %c32_i32_100 = arith.constant 32 : i32
    %128 = arith.addi %1, %c32_i32_100 : i32
    %c12_i32_101 = arith.constant 12 : i32
    %129 = arith.subi %128, %c12_i32_101 : i32
    %c0_102 = arith.constant 0 : index
    %130 = arith.index_cast %129 : i32 to index
    %c44 = arith.constant 44 : index
    %c0_103 = arith.constant 0 : index
    %131 = vector.load %arg2[%c0_102, %130, %c44, %c0_103] : memref<1x80x80x8xbf16, #tpu.memory_space<vmem>>, vector<1x32x16x8xbf16>
    %132 = vector.shape_cast %131 : vector<1x32x16x8xbf16> to vector<32x16x8xbf16>
    %133 = vector.extract_strided_slice %132 {offsets = [0, 0, 0], sizes = [8, 16, 8], strides = [1, 1, 1]} : vector<32x16x8xbf16> to vector<8x16x8xbf16>
    %c0_104 = arith.constant 0 : index
    %c2_105 = arith.constant 2 : index
    %c0_106 = arith.constant 0 : index
    %c0_107 = arith.constant 0 : index
    %134 = vector.load %arg7[%c0_104, %c2_105, %c0_106, %c0_107] : memref<3x3x8x4xbf16, #tpu.memory_space<vmem>>, vector<1x1x8x4xbf16>
    %135 = vector.shape_cast %134 : vector<1x1x8x4xbf16> to vector<8x4xbf16>
    %136 = vector.shape_cast %133 : vector<8x16x8xbf16> to vector<128x8xbf16>
    %cst_108 = arith.constant dense<0.000000e+00> : vector<128x4xf32>
    %137 = tpu.matmul %136, %135, %cst_108 {dimension_numbers = #tpu.dot_dimension_numbers<[1], [0], [0], [1], [0, 0, 1, 1], [], []>} : vector<128x8xbf16>, vector<8x4xbf16>, vector<128x4xf32> -> vector<128x4xf32>
    %138 = arith.addf %127, %137 : vector<128x4xf32>
    %139 = vector.extract_strided_slice %132 {offsets = [12, 0, 0], sizes = [8, 16, 8], strides = [1, 1, 1]} : vector<32x16x8xbf16> to vector<8x16x8xbf16>
    %c1_109 = arith.constant 1 : index
    %c2_110 = arith.constant 2 : index
    %c0_111 = arith.constant 0 : index
    %c0_112 = arith.constant 0 : index
    %140 = vector.load %arg7[%c1_109, %c2_110, %c0_111, %c0_112] : memref<3x3x8x4xbf16, #tpu.memory_space<vmem>>, vector<1x1x8x4xbf16>
    %141 = vector.shape_cast %140 : vector<1x1x8x4xbf16> to vector<8x4xbf16>
    %142 = vector.shape_cast %139 : vector<8x16x8xbf16> to vector<128x8xbf16>
    %cst_113 = arith.constant dense<0.000000e+00> : vector<128x4xf32>
    %143 = tpu.matmul %142, %141, %cst_113 {dimension_numbers = #tpu.dot_dimension_numbers<[1], [0], [0], [1], [0, 0, 1, 1], [], []>} : vector<128x8xbf16>, vector<8x4xbf16>, vector<128x4xf32> -> vector<128x4xf32>
    %144 = arith.addf %138, %143 : vector<128x4xf32>
    %145 = vector.extract_strided_slice %132 {offsets = [24, 0, 0], sizes = [8, 16, 8], strides = [1, 1, 1]} : vector<32x16x8xbf16> to vector<8x16x8xbf16>
    %c2_114 = arith.constant 2 : index
    %c2_115 = arith.constant 2 : index
    %c0_116 = arith.constant 0 : index
    %c0_117 = arith.constant 0 : index
    %146 = vector.load %arg7[%c2_114, %c2_115, %c0_116, %c0_117] : memref<3x3x8x4xbf16, #tpu.memory_space<vmem>>, vector<1x1x8x4xbf16>
    %147 = vector.shape_cast %146 : vector<1x1x8x4xbf16> to vector<8x4xbf16>
    %148 = vector.shape_cast %145 : vector<8x16x8xbf16> to vector<128x8xbf16>
    %cst_118 = arith.constant dense<0.000000e+00> : vector<128x4xf32>
    %149 = tpu.matmul %148, %147, %cst_118 {dimension_numbers = #tpu.dot_dimension_numbers<[1], [0], [0], [1], [0, 0, 1, 1], [], []>} : vector<128x8xbf16>, vector<8x4xbf16>, vector<128x4xf32> -> vector<128x4xf32>
    %150 = arith.addf %144, %149 : vector<128x4xf32>
    %c0_119 = arith.constant 0 : index
    %c0_120 = arith.constant 0 : index
    %151 = vector.load %arg8[%c0_119, %c0_120] : memref<1x4xf32, #tpu.memory_space<vmem>>, vector<1x4xf32>
    %152 = vector.broadcast %151 : vector<1x4xf32> to vector<128x4xf32>
    %153 = arith.addf %150, %152 : vector<128x4xf32>
    %c32_i32_121 = arith.constant 32 : i32
    %154 = arith.addi %1, %c32_i32_121 : i32
    %c18_i32 = arith.constant 18 : i32
    %155 = arith.subi %154, %c18_i32 : i32
    %c0_122 = arith.constant 0 : index
    %156 = arith.index_cast %155 : i32 to index
    %c14 = arith.constant 14 : index
    %c0_123 = arith.constant 0 : index
    %157 = vector.load %arg2[%c0_122, %156, %c14, %c0_123] : memref<1x80x80x8xbf16, #tpu.memory_space<vmem>>, vector<1x44x16x8xbf16>
    %158 = vector.shape_cast %157 : vector<1x44x16x8xbf16> to vector<44x16x8xbf16>
    %159 = vector.extract_strided_slice %158 {offsets = [0, 0, 0], sizes = [8, 16, 8], strides = [1, 1, 1]} : vector<44x16x8xbf16> to vector<8x16x8xbf16>
    %c0_124 = arith.constant 0 : index
    %c0_125 = arith.constant 0 : index
    %c0_126 = arith.constant 0 : index
    %c0_127 = arith.constant 0 : index
    %160 = vector.load %arg9[%c0_124, %c0_125, %c0_126, %c0_127] : memref<3x3x8x4xbf16, #tpu.memory_space<vmem>>, vector<1x1x8x4xbf16>
    %161 = vector.shape_cast %160 : vector<1x1x8x4xbf16> to vector<8x4xbf16>
    %162 = vector.shape_cast %159 : vector<8x16x8xbf16> to vector<128x8xbf16>
    %cst_128 = arith.constant dense<0.000000e+00> : vector<128x4xf32>
    %163 = tpu.matmul %162, %161, %cst_128 {dimension_numbers = #tpu.dot_dimension_numbers<[1], [0], [0], [1], [0, 0, 1, 1], [], []>} : vector<128x8xbf16>, vector<8x4xbf16>, vector<128x4xf32> -> vector<128x4xf32>
    %164 = vector.extract_strided_slice %158 {offsets = [18, 0, 0], sizes = [8, 16, 8], strides = [1, 1, 1]} : vector<44x16x8xbf16> to vector<8x16x8xbf16>
    %c1_129 = arith.constant 1 : index
    %c0_130 = arith.constant 0 : index
    %c0_131 = arith.constant 0 : index
    %c0_132 = arith.constant 0 : index
    %165 = vector.load %arg9[%c1_129, %c0_130, %c0_131, %c0_132] : memref<3x3x8x4xbf16, #tpu.memory_space<vmem>>, vector<1x1x8x4xbf16>
    %166 = vector.shape_cast %165 : vector<1x1x8x4xbf16> to vector<8x4xbf16>
    %167 = vector.shape_cast %164 : vector<8x16x8xbf16> to vector<128x8xbf16>
    %cst_133 = arith.constant dense<0.000000e+00> : vector<128x4xf32>
    %168 = tpu.matmul %167, %166, %cst_133 {dimension_numbers = #tpu.dot_dimension_numbers<[1], [0], [0], [1], [0, 0, 1, 1], [], []>} : vector<128x8xbf16>, vector<8x4xbf16>, vector<128x4xf32> -> vector<128x4xf32>
    %169 = arith.addf %163, %168 : vector<128x4xf32>
    %170 = vector.extract_strided_slice %158 {offsets = [36, 0, 0], sizes = [8, 16, 8], strides = [1, 1, 1]} : vector<44x16x8xbf16> to vector<8x16x8xbf16>
    %c2_134 = arith.constant 2 : index
    %c0_135 = arith.constant 0 : index
    %c0_136 = arith.constant 0 : index
    %c0_137 = arith.constant 0 : index
    %171 = vector.load %arg9[%c2_134, %c0_135, %c0_136, %c0_137] : memref<3x3x8x4xbf16, #tpu.memory_space<vmem>>, vector<1x1x8x4xbf16>
    %172 = vector.shape_cast %171 : vector<1x1x8x4xbf16> to vector<8x4xbf16>
    %173 = vector.shape_cast %170 : vector<8x16x8xbf16> to vector<128x8xbf16>
    %cst_138 = arith.constant dense<0.000000e+00> : vector<128x4xf32>
    %174 = tpu.matmul %173, %172, %cst_138 {dimension_numbers = #tpu.dot_dimension_numbers<[1], [0], [0], [1], [0, 0, 1, 1], [], []>} : vector<128x8xbf16>, vector<8x4xbf16>, vector<128x4xf32> -> vector<128x4xf32>
    %175 = arith.addf %169, %174 : vector<128x4xf32>
    %c32_i32_139 = arith.constant 32 : i32
    %176 = arith.addi %1, %c32_i32_139 : i32
    %c18_i32_140 = arith.constant 18 : i32
    %177 = arith.subi %176, %c18_i32_140 : i32
    %c0_141 = arith.constant 0 : index
    %178 = arith.index_cast %177 : i32 to index
    %c32_142 = arith.constant 32 : index
    %c0_143 = arith.constant 0 : index
    %179 = vector.load %arg2[%c0_141, %178, %c32_142, %c0_143] : memref<1x80x80x8xbf16, #tpu.memory_space<vmem>>, vector<1x44x16x8xbf16>
    %180 = vector.shape_cast %179 : vector<1x44x16x8xbf16> to vector<44x16x8xbf16>
    %181 = vector.extract_strided_slice %180 {offsets = [0, 0, 0], sizes = [8, 16, 8], strides = [1, 1, 1]} : vector<44x16x8xbf16> to vector<8x16x8xbf16>
    %c0_144 = arith.constant 0 : index
    %c1_145 = arith.constant 1 : index
    %c0_146 = arith.constant 0 : index
    %c0_147 = arith.constant 0 : index
    %182 = vector.load %arg9[%c0_144, %c1_145, %c0_146, %c0_147] : memref<3x3x8x4xbf16, #tpu.memory_space<vmem>>, vector<1x1x8x4xbf16>
    %183 = vector.shape_cast %182 : vector<1x1x8x4xbf16> to vector<8x4xbf16>
    %184 = vector.shape_cast %181 : vector<8x16x8xbf16> to vector<128x8xbf16>
    %cst_148 = arith.constant dense<0.000000e+00> : vector<128x4xf32>
    %185 = tpu.matmul %184, %183, %cst_148 {dimension_numbers = #tpu.dot_dimension_numbers<[1], [0], [0], [1], [0, 0, 1, 1], [], []>} : vector<128x8xbf16>, vector<8x4xbf16>, vector<128x4xf32> -> vector<128x4xf32>
    %186 = arith.addf %175, %185 : vector<128x4xf32>
    %187 = vector.extract_strided_slice %180 {offsets = [18, 0, 0], sizes = [8, 16, 8], strides = [1, 1, 1]} : vector<44x16x8xbf16> to vector<8x16x8xbf16>
    %c1_149 = arith.constant 1 : index
    %c1_150 = arith.constant 1 : index
    %c0_151 = arith.constant 0 : index
    %c0_152 = arith.constant 0 : index
    %188 = vector.load %arg9[%c1_149, %c1_150, %c0_151, %c0_152] : memref<3x3x8x4xbf16, #tpu.memory_space<vmem>>, vector<1x1x8x4xbf16>
    %189 = vector.shape_cast %188 : vector<1x1x8x4xbf16> to vector<8x4xbf16>
    %190 = vector.shape_cast %187 : vector<8x16x8xbf16> to vector<128x8xbf16>
    %cst_153 = arith.constant dense<0.000000e+00> : vector<128x4xf32>
    %191 = tpu.matmul %190, %189, %cst_153 {dimension_numbers = #tpu.dot_dimension_numbers<[1], [0], [0], [1], [0, 0, 1, 1], [], []>} : vector<128x8xbf16>, vector<8x4xbf16>, vector<128x4xf32> -> vector<128x4xf32>
    %192 = arith.addf %186, %191 : vector<128x4xf32>
    %193 = vector.extract_strided_slice %180 {offsets = [36, 0, 0], sizes = [8, 16, 8], strides = [1, 1, 1]} : vector<44x16x8xbf16> to vector<8x16x8xbf16>
    %c2_154 = arith.constant 2 : index
    %c1_155 = arith.constant 1 : index
    %c0_156 = arith.constant 0 : index
    %c0_157 = arith.constant 0 : index
    %194 = vector.load %arg9[%c2_154, %c1_155, %c0_156, %c0_157] : memref<3x3x8x4xbf16, #tpu.memory_space<vmem>>, vector<1x1x8x4xbf16>
    %195 = vector.shape_cast %194 : vector<1x1x8x4xbf16> to vector<8x4xbf16>
    %196 = vector.shape_cast %193 : vector<8x16x8xbf16> to vector<128x8xbf16>
    %cst_158 = arith.constant dense<0.000000e+00> : vector<128x4xf32>
    %197 = tpu.matmul %196, %195, %cst_158 {dimension_numbers = #tpu.dot_dimension_numbers<[1], [0], [0], [1], [0, 0, 1, 1], [], []>} : vector<128x8xbf16>, vector<8x4xbf16>, vector<128x4xf32> -> vector<128x4xf32>
    %198 = arith.addf %192, %197 : vector<128x4xf32>
    %c32_i32_159 = arith.constant 32 : i32
    %199 = arith.addi %1, %c32_i32_159 : i32
    %c18_i32_160 = arith.constant 18 : i32
    %200 = arith.subi %199, %c18_i32_160 : i32
    %c0_161 = arith.constant 0 : index
    %201 = arith.index_cast %200 : i32 to index
    %c50 = arith.constant 50 : index
    %c0_162 = arith.constant 0 : index
    %202 = vector.load %arg2[%c0_161, %201, %c50, %c0_162] : memref<1x80x80x8xbf16, #tpu.memory_space<vmem>>, vector<1x44x16x8xbf16>
    %203 = vector.shape_cast %202 : vector<1x44x16x8xbf16> to vector<44x16x8xbf16>
    %204 = vector.extract_strided_slice %203 {offsets = [0, 0, 0], sizes = [8, 16, 8], strides = [1, 1, 1]} : vector<44x16x8xbf16> to vector<8x16x8xbf16>
    %c0_163 = arith.constant 0 : index
    %c2_164 = arith.constant 2 : index
    %c0_165 = arith.constant 0 : index
    %c0_166 = arith.constant 0 : index
    %205 = vector.load %arg9[%c0_163, %c2_164, %c0_165, %c0_166] : memref<3x3x8x4xbf16, #tpu.memory_space<vmem>>, vector<1x1x8x4xbf16>
    %206 = vector.shape_cast %205 : vector<1x1x8x4xbf16> to vector<8x4xbf16>
    %207 = vector.shape_cast %204 : vector<8x16x8xbf16> to vector<128x8xbf16>
    %cst_167 = arith.constant dense<0.000000e+00> : vector<128x4xf32>
    %208 = tpu.matmul %207, %206, %cst_167 {dimension_numbers = #tpu.dot_dimension_numbers<[1], [0], [0], [1], [0, 0, 1, 1], [], []>} : vector<128x8xbf16>, vector<8x4xbf16>, vector<128x4xf32> -> vector<128x4xf32>
    %209 = arith.addf %198, %208 : vector<128x4xf32>
    %210 = vector.extract_strided_slice %203 {offsets = [18, 0, 0], sizes = [8, 16, 8], strides = [1, 1, 1]} : vector<44x16x8xbf16> to vector<8x16x8xbf16>
    %c1_168 = arith.constant 1 : index
    %c2_169 = arith.constant 2 : index
    %c0_170 = arith.constant 0 : index
    %c0_171 = arith.constant 0 : index
    %211 = vector.load %arg9[%c1_168, %c2_169, %c0_170, %c0_171] : memref<3x3x8x4xbf16, #tpu.memory_space<vmem>>, vector<1x1x8x4xbf16>
    %212 = vector.shape_cast %211 : vector<1x1x8x4xbf16> to vector<8x4xbf16>
    %213 = vector.shape_cast %210 : vector<8x16x8xbf16> to vector<128x8xbf16>
    %cst_172 = arith.constant dense<0.000000e+00> : vector<128x4xf32>
    %214 = tpu.matmul %213, %212, %cst_172 {dimension_numbers = #tpu.dot_dimension_numbers<[1], [0], [0], [1], [0, 0, 1, 1], [], []>} : vector<128x8xbf16>, vector<8x4xbf16>, vector<128x4xf32> -> vector<128x4xf32>
    %215 = arith.addf %209, %214 : vector<128x4xf32>
    %216 = vector.extract_strided_slice %203 {offsets = [36, 0, 0], sizes = [8, 16, 8], strides = [1, 1, 1]} : vector<44x16x8xbf16> to vector<8x16x8xbf16>
    %c2_173 = arith.constant 2 : index
    %c2_174 = arith.constant 2 : index
    %c0_175 = arith.constant 0 : index
    %c0_176 = arith.constant 0 : index
    %217 = vector.load %arg9[%c2_173, %c2_174, %c0_175, %c0_176] : memref<3x3x8x4xbf16, #tpu.memory_space<vmem>>, vector<1x1x8x4xbf16>
    %218 = vector.shape_cast %217 : vector<1x1x8x4xbf16> to vector<8x4xbf16>
    %219 = vector.shape_cast %216 : vector<8x16x8xbf16> to vector<128x8xbf16>
    %cst_177 = arith.constant dense<0.000000e+00> : vector<128x4xf32>
    %220 = tpu.matmul %219, %218, %cst_177 {dimension_numbers = #tpu.dot_dimension_numbers<[1], [0], [0], [1], [0, 0, 1, 1], [], []>} : vector<128x8xbf16>, vector<8x4xbf16>, vector<128x4xf32> -> vector<128x4xf32>
    %221 = arith.addf %215, %220 : vector<128x4xf32>
    %c0_178 = arith.constant 0 : index
    %c0_179 = arith.constant 0 : index
    %222 = vector.load %arg10[%c0_178, %c0_179] : memref<1x4xf32, #tpu.memory_space<vmem>>, vector<1x4xf32>
    %223 = vector.broadcast %222 : vector<1x4xf32> to vector<128x4xf32>
    %224 = arith.addf %221, %223 : vector<128x4xf32>
    %225 = arith.truncf %11 : vector<128x4xf32> to vector<128x4xbf16>
    %c0_180 = arith.constant 0 : index
    %c0_181 = arith.constant 0 : index
    %c0_182 = arith.constant 0 : index
    %226 = vector.load %arg11[%c0_180, %c0_181, %c0_182] : memref<4x4x4xbf16, #tpu.memory_space<vmem>>, vector<1x4x4xbf16>
    %227 = vector.shape_cast %226 : vector<1x4x4xbf16> to vector<4x4xbf16>
    %cst_183 = arith.constant dense<0.000000e+00> : vector<128x4xf32>
    %228 = tpu.matmul %225, %227, %cst_183 {dimension_numbers = #tpu.dot_dimension_numbers<[1], [0], [0], [1], [0, 0, 1, 1], [], []>} : vector<128x4xbf16>, vector<4x4xbf16>, vector<128x4xf32> -> vector<128x4xf32>
    %229 = arith.truncf %82 : vector<128x4xf32> to vector<128x4xbf16>
    %c1_184 = arith.constant 1 : index
    %c0_185 = arith.constant 0 : index
    %c0_186 = arith.constant 0 : index
    %230 = vector.load %arg11[%c1_184, %c0_185, %c0_186] : memref<4x4x4xbf16, #tpu.memory_space<vmem>>, vector<1x4x4xbf16>
    %231 = vector.shape_cast %230 : vector<1x4x4xbf16> to vector<4x4xbf16>
    %cst_187 = arith.constant dense<0.000000e+00> : vector<128x4xf32>
    %232 = tpu.matmul %229, %231, %cst_187 {dimension_numbers = #tpu.dot_dimension_numbers<[1], [0], [0], [1], [0, 0, 1, 1], [], []>} : vector<128x4xbf16>, vector<4x4xbf16>, vector<128x4xf32> -> vector<128x4xf32>
    %233 = arith.addf %228, %232 : vector<128x4xf32>
    %234 = arith.truncf %153 : vector<128x4xf32> to vector<128x4xbf16>
    %c2_188 = arith.constant 2 : index
    %c0_189 = arith.constant 0 : index
    %c0_190 = arith.constant 0 : index
    %235 = vector.load %arg11[%c2_188, %c0_189, %c0_190] : memref<4x4x4xbf16, #tpu.memory_space<vmem>>, vector<1x4x4xbf16>
    %236 = vector.shape_cast %235 : vector<1x4x4xbf16> to vector<4x4xbf16>
    %cst_191 = arith.constant dense<0.000000e+00> : vector<128x4xf32>
    %237 = tpu.matmul %234, %236, %cst_191 {dimension_numbers = #tpu.dot_dimension_numbers<[1], [0], [0], [1], [0, 0, 1, 1], [], []>} : vector<128x4xbf16>, vector<4x4xbf16>, vector<128x4xf32> -> vector<128x4xf32>
    %238 = arith.addf %233, %237 : vector<128x4xf32>
    %239 = arith.truncf %224 : vector<128x4xf32> to vector<128x4xbf16>
    %c3 = arith.constant 3 : index
    %c0_192 = arith.constant 0 : index
    %c0_193 = arith.constant 0 : index
    %240 = vector.load %arg11[%c3, %c0_192, %c0_193] : memref<4x4x4xbf16, #tpu.memory_space<vmem>>, vector<1x4x4xbf16>
    %241 = vector.shape_cast %240 : vector<1x4x4xbf16> to vector<4x4xbf16>
    %cst_194 = arith.constant dense<0.000000e+00> : vector<128x4xf32>
    %242 = tpu.matmul %239, %241, %cst_194 {dimension_numbers = #tpu.dot_dimension_numbers<[1], [0], [0], [1], [0, 0, 1, 1], [], []>} : vector<128x4xbf16>, vector<4x4xbf16>, vector<128x4xf32> -> vector<128x4xf32>
    %243 = arith.addf %238, %242 : vector<128x4xf32>
    %c0_195 = arith.constant 0 : index
    %c0_196 = arith.constant 0 : index
    %244 = vector.load %arg12[%c0_195, %c0_196] : memref<1x4xf32, #tpu.memory_space<vmem>>, vector<1x4xf32>
    %245 = vector.broadcast %244 : vector<1x4xf32> to vector<128x4xf32>
    %246 = arith.addf %243, %245 : vector<128x4xf32>
    %247 = vector.shape_cast %246 : vector<128x4xf32> to vector<8x16x4xf32>
    %c0_197 = arith.constant 0 : index
    %c0_198 = arith.constant 0 : index
    %c0_199 = arith.constant 0 : index
    %c0_200 = arith.constant 0 : index
    %248 = vector.load %arg13[%c0_197, %c0_198, %c0_199, %c0_200] : memref<1x8x16x4xf32, #tpu.memory_space<vmem>>, vector<1x8x16x4xf32>
    %249 = vector.shape_cast %248 : vector<1x8x16x4xf32> to vector<8x16x4xf32>
    %250 = vector.shape_cast %247 : vector<8x16x4xf32> to vector<1x8x16x4xf32>
    tpu.vector_store %arg13[%c0_197, %c0_198, %c0_199, %c0_200], %250 {strides = array<i32>} : memref<1x8x16x4xf32, #tpu.memory_space<vmem>>, vector<1x8x16x4xf32>,
    %251 = vector.shape_cast %11 : vector<128x4xf32> to vector<8x16x4xf32>
    %c0_201 = arith.constant 0 : index
    %c0_202 = arith.constant 0 : index
    %c0_203 = arith.constant 0 : index
    %c0_204 = arith.constant 0 : index
    %252 = vector.load %arg14[%c0_201, %c0_202, %c0_203, %c0_204] : memref<1x8x16x4xf32, #tpu.memory_space<vmem>>, vector<1x8x16x4xf32>
    %253 = vector.shape_cast %252 : vector<1x8x16x4xf32> to vector<8x16x4xf32>
    %254 = vector.shape_cast %251 : vector<8x16x4xf32> to vector<1x8x16x4xf32>
    tpu.vector_store %arg14[%c0_201, %c0_202, %c0_203, %c0_204], %254 {strides = array<i32>} : memref<1x8x16x4xf32, #tpu.memory_space<vmem>>, vector<1x8x16x4xf32>,
    %255 = vector.shape_cast %82 : vector<128x4xf32> to vector<8x16x4xf32>
    %c0_205 = arith.constant 0 : index
    %c0_206 = arith.constant 0 : index
    %c0_207 = arith.constant 0 : index
    %c0_208 = arith.constant 0 : index
    %256 = vector.load %arg15[%c0_205, %c0_206, %c0_207, %c0_208] : memref<1x8x16x4xf32, #tpu.memory_space<vmem>>, vector<1x8x16x4xf32>
    %257 = vector.shape_cast %256 : vector<1x8x16x4xf32> to vector<8x16x4xf32>
    %258 = vector.shape_cast %255 : vector<8x16x4xf32> to vector<1x8x16x4xf32>
    tpu.vector_store %arg15[%c0_205, %c0_206, %c0_207, %c0_208], %258 {strides = array<i32>} : memref<1x8x16x4xf32, #tpu.memory_space<vmem>>, vector<1x8x16x4xf32>,
    %259 = vector.shape_cast %153 : vector<128x4xf32> to vector<8x16x4xf32>
    %c0_209 = arith.constant 0 : index
    %c0_210 = arith.constant 0 : index
    %c0_211 = arith.constant 0 : index
    %c0_212 = arith.constant 0 : index
    %260 = vector.load %arg16[%c0_209, %c0_210, %c0_211, %c0_212] : memref<1x8x16x4xf32, #tpu.memory_space<vmem>>, vector<1x8x16x4xf32>
    %261 = vector.shape_cast %260 : vector<1x8x16x4xf32> to vector<8x16x4xf32>
    %262 = vector.shape_cast %259 : vector<8x16x4xf32> to vector<1x8x16x4xf32>
    tpu.vector_store %arg16[%c0_209, %c0_210, %c0_211, %c0_212], %262 {strides = array<i32>} : memref<1x8x16x4xf32, #tpu.memory_space<vmem>>, vector<1x8x16x4xf32>,
    %263 = vector.shape_cast %224 : vector<128x4xf32> to vector<8x16x4xf32>
    %c0_213 = arith.constant 0 : index
    %c0_214 = arith.constant 0 : index
    %c0_215 = arith.constant 0 : index
    %c0_216 = arith.constant 0 : index
    %264 = vector.load %arg17[%c0_213, %c0_214, %c0_215, %c0_216] : memref<1x8x16x4xf32, #tpu.memory_space<vmem>>, vector<1x8x16x4xf32>
    %265 = vector.shape_cast %264 : vector<1x8x16x4xf32> to vector<8x16x4xf32>
    %266 = vector.shape_cast %263 : vector<8x16x4xf32> to vector<1x8x16x4xf32>
    tpu.vector_store %arg17[%c0_213, %c0_214, %c0_215, %c0_216], %266 {strides = array<i32>} : memref<1x8x16x4xf32, #tpu.memory_space<vmem>>, vector<1x8x16x4xf32>,
    return
  }
  func.func @transform_0(%arg0: i32, %arg1: i32) -> (i32, i32, i32, i32) {
    %c0_i32 = arith.constant 0 : i32
    %c0_i32_0 = arith.constant 0 : i32
    %c0_i32_1 = arith.constant 0 : i32
    %c0_i32_2 = arith.constant 0 : i32
    return %arg0, %c0_i32, %c0_i32_0, %c0_i32_1 : i32, i32, i32, i32
  }
  func.func @transform_1(%arg0: i32, %arg1: i32) -> (i32, i32) {
    %c0_i32 = arith.constant 0 : i32
    %c0_i32_0 = arith.constant 0 : i32
    %c0_i32_1 = arith.constant 0 : i32
    return %c0_i32, %c0_i32_0 : i32, i32
  }
  func.func @transform_2(%arg0: i32, %arg1: i32) -> (i32, i32) {
    %c0_i32 = arith.constant 0 : i32
    %c0_i32_0 = arith.constant 0 : i32
    %c0_i32_1 = arith.constant 0 : i32
    return %c0_i32, %c0_i32_0 : i32, i32
  }
  func.func @transform_3(%arg0: i32, %arg1: i32) -> (i32, i32, i32, i32) {
    %c0_i32 = arith.constant 0 : i32
    %c0_i32_0 = arith.constant 0 : i32
    %c0_i32_1 = arith.constant 0 : i32
    %c0_i32_2 = arith.constant 0 : i32
    %c0_i32_3 = arith.constant 0 : i32
    return %c0_i32, %c0_i32_0, %c0_i32_1, %c0_i32_2 : i32, i32, i32, i32
  }
  func.func @transform_4(%arg0: i32, %arg1: i32) -> (i32, i32) {
    %c0_i32 = arith.constant 0 : i32
    %c0_i32_0 = arith.constant 0 : i32
    %c0_i32_1 = arith.constant 0 : i32
    return %c0_i32, %c0_i32_0 : i32, i32
  }
  func.func @transform_5(%arg0: i32, %arg1: i32) -> (i32, i32, i32, i32) {
    %c0_i32 = arith.constant 0 : i32
    %c0_i32_0 = arith.constant 0 : i32
    %c0_i32_1 = arith.constant 0 : i32
    %c0_i32_2 = arith.constant 0 : i32
    %c0_i32_3 = arith.constant 0 : i32
    return %c0_i32, %c0_i32_0, %c0_i32_1, %c0_i32_2 : i32, i32, i32, i32
  }
  func.func @transform_6(%arg0: i32, %arg1: i32) -> (i32, i32) {
    %c0_i32 = arith.constant 0 : i32
    %c0_i32_0 = arith.constant 0 : i32
    %c0_i32_1 = arith.constant 0 : i32
    return %c0_i32, %c0_i32_0 : i32, i32
  }
  func.func @transform_7(%arg0: i32, %arg1: i32) -> (i32, i32, i32, i32) {
    %c0_i32 = arith.constant 0 : i32
    %c0_i32_0 = arith.constant 0 : i32
    %c0_i32_1 = arith.constant 0 : i32
    %c0_i32_2 = arith.constant 0 : i32
    %c0_i32_3 = arith.constant 0 : i32
    return %c0_i32, %c0_i32_0, %c0_i32_1, %c0_i32_2 : i32, i32, i32, i32
  }
  func.func @transform_8(%arg0: i32, %arg1: i32) -> (i32, i32) {
    %c0_i32 = arith.constant 0 : i32
    %c0_i32_0 = arith.constant 0 : i32
    %c0_i32_1 = arith.constant 0 : i32
    return %c0_i32, %c0_i32_0 : i32, i32
  }
  func.func @transform_9(%arg0: i32, %arg1: i32) -> (i32, i32, i32) {
    %c0_i32 = arith.constant 0 : i32
    %c0_i32_0 = arith.constant 0 : i32
    %c0_i32_1 = arith.constant 0 : i32
    %c0_i32_2 = arith.constant 0 : i32
    return %c0_i32, %c0_i32_0, %c0_i32_1 : i32, i32, i32
  }
  func.func @transform_10(%arg0: i32, %arg1: i32) -> (i32, i32) {
    %c0_i32 = arith.constant 0 : i32
    %c0_i32_0 = arith.constant 0 : i32
    %c0_i32_1 = arith.constant 0 : i32
    return %c0_i32, %c0_i32_0 : i32, i32
  }
  func.func @transform_11(%arg0: i32, %arg1: i32) -> (i32, i32, i32, i32) {
    %c0_i32 = arith.constant 0 : i32
    %c0_i32_0 = arith.constant 0 : i32
    %c0_i32_1 = arith.constant 0 : i32
    return %arg0, %arg1, %c0_i32, %c0_i32_0 : i32, i32, i32, i32
  }
  func.func @transform_12(%arg0: i32, %arg1: i32) -> (i32, i32, i32, i32) {
    %c0_i32 = arith.constant 0 : i32
    %c0_i32_0 = arith.constant 0 : i32
    %c0_i32_1 = arith.constant 0 : i32
    return %arg0, %arg1, %c0_i32, %c0_i32_0 : i32, i32, i32, i32
  }
  func.func @transform_13(%arg0: i32, %arg1: i32) -> (i32, i32, i32, i32) {
    %c0_i32 = arith.constant 0 : i32
    %c0_i32_0 = arith.constant 0 : i32
    %c0_i32_1 = arith.constant 0 : i32
    return %arg0, %arg1, %c0_i32, %c0_i32_0 : i32, i32, i32, i32
  }
  func.func @transform_14(%arg0: i32, %arg1: i32) -> (i32, i32, i32, i32) {
    %c0_i32 = arith.constant 0 : i32
    %c0_i32_0 = arith.constant 0 : i32
    %c0_i32_1 = arith.constant 0 : i32
    return %arg0, %arg1, %c0_i32, %c0_i32_0 : i32, i32, i32, i32
  }
  func.func @transform_15(%arg0: i32, %arg1: i32) -> (i32, i32, i32, i32) {
    %c0_i32 = arith.constant 0 : i32
    %c0_i32_0 = arith.constant 0 : i32
    %c0_i32_1 = arith.constant 0 : i32
    return %arg0, %arg1, %c0_i32, %c0_i32_0 : i32, i32, i32, i32
  }
}

</mosaic_0001>

<bundles_post_ra>
// kernel: tpu_custom_call.1
= control target key start
LH: loop header
LB: loop body
LE: loop exit
PB: predicated region body
PF: predicated region fallthrough
CT: control target
= control target key end

     0   :  { %s10997_s18 = smov 0   ;;  %s10999_s19 = smov 0   ;;  %s13290_s0 = inlined_call_operand.vmem [shape: bf16[2,80,80,8], index: 0, kind: input, shape index: {}]   ;;  %s13291_s1 = inlined_call_operand.vmem [shape: bf16[8,4], index: 1, kind: input, shape index: {}]   ;;  %s13292_s2 = inlined_call_operand.vmem [shape: f32[1,4], index: 2, kind: input, shape index: {}]   ;;  %s13293_s3 = inlined_call_operand.vmem [shape: bf16[3,3,8,4], index: 3, kind: input, shape index: {}]   ;;  %s13294_s4 = inlined_call_operand.vmem [shape: f32[1,4], index: 4, kind: input, shape index: {}]   ;;  %s13295_s5 = inlined_call_operand.vmem [shape: bf16[3,3,8,4], index: 5, kind: input, shape index: {}]   ;;  %s13296_s6 = inlined_call_operand.vmem [shape: f32[1,4], index: 6, kind: input, shape index: {}]   ;;  %s13297_s7 = inlined_call_operand.vmem [shape: bf16[3,3,8,4], index: 7, kind: input, shape index: {}]   ;;  %s13298_s8 = inlined_call_operand.vmem [shape: f32[1,4], index: 8, kind: input, shape index: {}]   ;;  %s13299_s9 = inlined_call_operand.vmem [shape: bf16[4,4,4], index: 9, kind: input, shape index: {}]   ;;  %s13300_s10 = inlined_call_operand.vmem [shape: f32[1,4], index: 10, kind: input, shape index: {}]   ;;  %s13301_s11 = inlined_call_operand.vmem [shape: f32[2,16,16,4], index: 11, kind: output, shape index: {0}]   ;;  %s13302_s12 = inlined_call_operand.vmem [shape: f32[2,16,16,4], index: 12, kind: output, shape index: {1}]   ;;  %s13303_s13 = inlined_call_operand.vmem [shape: f32[2,16,16,4], index: 13, kind: output, shape index: {2}]   ;;  %s13304_s14 = inlined_call_operand.vmem [shape: f32[2,16,16,4], index: 14, kind: output, shape index: {3}]   ;;  %s13305_s15 = inlined_call_operand.vmem [shape: f32[2,16,16,4], index: 15, kind: output, shape index: {4}]  }
   0x1   :  { %13312 = sst [smem:[#allocation8_spill]] %s13291_s1  ;;  %s11001_s20 = smov 0  }
   0x2   :  { %s11003_s21 = smov 0   ;;  %s11005_s22 = smov 0  }
   0x3 LB: > { %s35_s23 = sadd.s32 1, %s10907_s20  ;;  %s38_s24 = sadd.s32 1, %s10911_s21  ;;  %s10915_s22 = sphi %s11005_s22, %s26_s22   ;;  %s10911_s21 = sphi %s11003_s21, %s13345_s21   ;;  %s10907_s20 = sphi %s11001_s20, %s13344_s20   ;;  %s10903_s19 = sphi %s10999_s19, %s13343_s19   ;;  %s10899_s18 = sphi %s10997_s18, %s13342_s18  }
   0x4   : > { %p36_p0 = scmp.ge.s32.totalorder %s35_s23, 2  ;;  %p8224_p1 = scmp.ge.s32.totalorder %s10915_s22, 1 }
   0x5   : > { %p468_p2 = scmp.lt.s32.totalorder %s10915_s22, 5 }
   0x6   : > { %s13347_s23 = smov (%p36_p0, %s35_s23), 0  ;;  %s13349_s24 = smov (!%p36_p0, %s38_s24), %s10911_s21 }
   0x7   : > { %p469_p3 = pnand %p8224_p1, %p468_p2  ;;  %p40_p4 = scmp.ge.s32.totalorder %s13349_s24, 2 }
   0x9   : > { %s13351_s24 = smov (%p40_p4, %s13349_s24), 0  ;;  %472 = sbr.rel (%p469_p3) target bundleno = 976 (0x3d0), region = 64 }
   0xa   : > { %13313 = sst [smem:[#allocation2_spill]] %s13351_s24 }
  0x10   : > { %s13314_s1 = sld [smem:[#allocation8_spill]]  ;;  %vm716_vm0 = vcmask 1043456   ;;  %p561_p5 = scmp.lt.s32.totalorder %s10903_s19, 1  ;;  %v8388_v2 = vld [vmem:[%s13293_s3 + $0x18] sm:$0xf]  ;;  %vm906_vm1 = vcmask 1042432  }
  0x11   : > { %10731 = vmatprep.subr.msk.bf16.mxu1 %vm716_vm0, %v8388_v2  ;;  %v1410_v3 = vsel %vm716_vm0, %v8388_v2, 0  ;;  %v8429_v4 = vld [vmem:[%s13293_s3 + $0x4] sm:$0xf]  ;;  %v8351_v5 = vld [vmem:[%s13293_s3 + $0xc] sm:$0xf]  ;;  %s8247_s25 = smul.u32 320, %s10899_s18 }
  0x12   : > { %s13353_s19 = smov (!%p561_p5, %s10903_s19), 1  ;;  %9775 = vmatpush3.bf16.msra.mxu1 %v1410_v3  ;;  %vm907_vm2 = vcmask 1046532   ;;  %vm691_vm3 = vcmask 64512   ;;  %v11064_v8 = vld [vmem:[%s13293_s3] sm:$0xf]  ;;  %v1076_v10 = vsel %vm716_vm0, %v8351_v5, 0 }
  0x13   : > { %s10760_s26 = smul.u32 3200, %s13353_s19  ;;  %10732 = vmatprep.subr.msk.bf16.mxu1 %vm716_vm0, %v8429_v4  ;;  %vm11056_vm4 = vmor %vm906_vm1, %vm907_vm2  ;;  %v1604_v22 = vsel %vm716_vm0, %v8429_v4, 0  ;;  %v11113_v44 = vld [vmem:[%s13293_s3 + $0x10] sm:$0xf]  ;;  %vm2900_vm5 = vcmask 1041408   ;;  %vm2901_vm6 = vcmask 1045508  }
  0x14   : > { %vm11401_vm7 = vmor %vm2900_vm5, %vm2901_vm6  ;;  %vm2125_vm8 = vcmask 1040384   ;;  %vm2126_vm9 = vcmask 1044484   ;;  %s8228_s16 = sshll.u32 %s13353_s19, 5  ;;  %vm7237_vm11 = vcmask 31744  }
  0x15   : > { %vm11595_vm10 = vmor %vm2125_vm8, %vm2126_vm9 }
  0x16   : > { %v643_v0 = vld [vmem:[%s13314_s1] sm:$0xf]  ;;  %s565_s1 = scalar_lea.vmem %s13290_s0, %s10760_s26  ;;  %s8226_s26 = sshll.u32 %s10899_s18, 3 }
  0x17   : > { %10728 = vmatprep.subr.msk.bf16.mxu0 %vm716_vm0, %v643_v0  ;;  %v718_v1 = vsel %vm716_vm0, %v643_v0, 0  ;;  %s11054_s24 = scalar_lea.vmem %s565_s1, %s8247_s25  ;;  %p11938_p6 = scmp.lt.s32.totalorder %s8226_s26, 15 }
  0x18   : > { %9721 = vmatpush3.bf16.msra.mxu0 %v718_v1  ;;  %v10801_v7 = vld [vmem:[%s11054_s24 + $0x510] sm:$0xff]   ;;  %v10802_v9 = vld [vmem:[%s11054_s24 + $0x538] sm:$0xff]   ;;  %v11071_v12 = vld [vmem:[%s11054_s24 + $0x600] sm:$0xf] }
  0x19   : > { %10729 = vmatprep.subr.msk.bf16.mxu0 %vm716_vm0, %v8351_v5  ;;  %9722 = vmatprep.mubr.msk.bf16.mxu0 %vm691_vm3, %v10801_v7  ;;  %v8319_v11 = vld [vmem:[%s11054_s24 + $0x5fc] sm:$0xe]  ;;  %v8321_v13 = vld [vmem:[%s11054_s24 + $0x604] sm:$0x1]  ;;  %v1015_v15 = vrot.slane %v11071_v12, 5  ;;  %v10804_v27 = vld [vmem:[%s11054_s24 + $0x588] sm:$0xff]  }
  0x1a   : > { %v8356_v14 = vrot.slane %v8319_v11, 9  ;;  %v1018_v16 = vrot.slane %v8321_v13, 5  ;;  %v8322_v17 = vld [vmem:[%s11054_s24 + $0x624] sm:$0xe]  ;;  %v11079_v19 = vld [vmem:[%s11054_s24 + $0x628] sm:$0xf] }
  0x1b   : > { %9723 = vmatmul.mubr.msk.bf16.vlgmr.msra.gmra.mrb[0].mxu0 %vm691_vm3, %v10802_v9  ;;  %v10803_v18 = vld [vmem:[%s11054_s24 + $0x560] sm:$0xff]   ;;  %v8324_v20 = vld [vmem:[%s11054_s24 + $0x62c] sm:$0x1]  ;;  %v8357_v21 = vrot.slane %v8322_v17, 9  ;;  %v1017_v24 = vrot.slane %v1015_v15, 4  ;;  %v1022_v25 = vrot.slane %v11079_v19, 5 }
  0x1c   : > { %9739 = vmatpush3.bf16.msra.mxu0 %v1076_v10  ;;  %v1016_v23 = vsel %vm11056_vm4, %v8356_v14, %v1015_v15  ;;  %v1025_v26 = vrot.slane %v8324_v20, 5  ;;  %9726 = vmatprep.mubr.msk.bf16.mxu0 %vm691_vm3, %v10803_v18  ;;  %v8325_v31 = vld [vmem:[%s11054_s24 + $0x64c] sm:$0xe]  ;;  %v11096_v32 = vld [vmem:[%s11054_s24 + $0x650] sm:$0xf]  ;;  %v10806_v61 = vld [vmem:[%s11054_s24 + $0x5d8] sm:$0xff]  }
  0x1d   : > { %10730 = vmatprep.subr.msk.bf16.mxu0 %vm716_vm0, %v11064_v8  ;;  %v1019_v28 = vsel %vm11056_vm4, %v1017_v24, %v1018_v16  ;;  %v1023_v29 = vsel %vm11056_vm4, %v8357_v21, %v1022_v25  ;;  %v1024_v30 = vrot.slane %v1022_v25, 4  ;;  %v10805_v33 = vld [vmem:[%s11054_s24 + $0x5b0] sm:$0xff]   ;;  %v8389_v36 = vrot.slane %v8325_v31, 9  ;;  %v11107_v41 = vld [vmem:[%s11054_s24 + $0x678] sm:$0xf]  ;;  %v10807_v7 = vld [vmem:[%s11054_s24 + $0x600] sm:$0xff]  }
  0x1e   : > { %v11099_v34 = vcombine.low %v1016_v23, %v1019_v28  ;;  %v8327_v35 = vld [vmem:[%s11054_s24 + $0x654] sm:$0x1]  ;;  %v1333_v37 = vrot.slane %v11096_v32, 5  ;;  %v8328_v38 = vld [vmem:[%s11054_s24 + $0x674] sm:$0xe]  ;;  %v1340_v48 = vrot.slane %v11107_v41, 5 }
  0x1f   : > { %v1026_v39 = vsel %vm11056_vm4, %v1024_v30, %v1025_v26  ;;  %v1336_v40 = vrot.slane %v8327_v35, 5  ;;  %v8330_v42 = vld [vmem:[%s11054_s24 + $0x67c] sm:$0x1]  ;;  %v8390_v43 = vrot.slane %v8328_v38, 9  ;;  %v8331_v52 = vld [vmem:[%s11054_s24 + $0x69c] sm:$0xe] }
  0x20   : > { %9776 = vmatprep.mubr.msk.bf16.mxu1 %vm691_vm3, %v11099_v34  ;;  %v11117_v45 = vcombine.low %v1023_v29, %v1026_v39  ;;  %v1334_v46 = vsel %vm11056_vm4, %v8389_v36, %v1333_v37  ;;  %v1335_v47 = vrot.slane %v1333_v37, 4  ;;  %v1343_v49 = vrot.slane %v8330_v42, 5  ;;  %v11130_v53 = vld [vmem:[%s11054_s24 + $0x6a0] sm:$0xf]  ;;  %v8333_v56 = vld [vmem:[%s11054_s24 + $0x6a4] sm:$0x1] }
  0x21   : > { %v1342_v51 = vrot.slane %v1340_v48, 4  ;;  %v1341_v55 = vsel %vm11056_vm4, %v8390_v43, %v1340_v48  ;;  %v8391_v57 = vrot.slane %v8331_v52, 9  ;;  %v1347_v58 = vrot.slane %v11130_v53, 5  ;;  %v8334_v59 = vld [vmem:[%s11054_s24 + $0x6c4] sm:$0xe]  ;;  %s13355_s26 = smov (!%p11938_p6, %s8226_s26), 15 }
  0x22   : > { %9777 = vmatmul.mubr.msk.bf16.vlgmr.msra.gmra.mrb[0].mxu1 %vm691_vm3, %v11117_v45  ;;  %v1337_v50 = vsel %vm11056_vm4, %v1335_v47, %v1336_v40  ;;  %v1350_v62 = vrot.slane %v8333_v56, 5  ;;  %v11141_v63 = vld [vmem:[%s11054_s24 + $0x6c8] sm:$0xf]  ;;  %v8336_v0 = vld [vmem:[%s11054_s24 + $0x6cc] sm:$0x1]  ;;  %v8392_v5 = vrot.slane %v8334_v59, 9 }
  0x23   : > { %9727 = vmatmul.mubr.msk.bf16.gmra.mrb[4].mxu0 %vm691_vm3, %v10804_v27  ;;  %9793 = vmatpush3.bf16.msra.mxu1 %v1604_v22  ;;  %v8395_v54 = vcombine.low %v1334_v46, %v1337_v50  ;;  %v1344_v60 = vsel %vm11056_vm4, %v1342_v51, %v1343_v49  ;;  %v1348_v1 = vsel %vm11056_vm4, %v8391_v57, %v1347_v58  ;;  %v1349_v2 = vrot.slane %v1347_v58, 4  ;;  %v8337_v13 = vld [vmem:[%s11054_s24 + $0x6ec] sm:$0xe]  ;;  %v11155_v14 = vld [vmem:[%s11054_s24 + $0x6f0] sm:$0xf]  ;;  %s8227_s1 = sshll.u32 %s13355_s26, 1 }
  0x24   : > { %9730 = vmatprep.mubr.msk.bf16.mxu0 %vm691_vm3, %v10805_v33  ;;  %10733 = vmatprep.subr.msk.bf16.mxu1 %vm716_vm0, %v11113_v44  ;;  %v1354_v3 = vrot.slane %v11141_v63, 5  ;;  %v8396_v4 = vcombine.low %v1341_v55, %v1344_v60  ;;  %v1357_v11 = vrot.slane %v8336_v0, 5  ;;  %v8339_v16 = vld [vmem:[%s11054_s24 + $0x6f4] sm:$0x1]  ;;  %v8393_v17 = vrot.slane %v8337_v13, 9  ;;  %v10808_v40 = vld [vmem:[%s11054_s24 + $0x628] sm:$0xff]   ;;  %s573_s19 = sadd.s32 %s8228_s16, %s8227_s1 }
  0x25   : > { %9780 = vmatprep.mubr.msk.bf16.mxu1 %vm691_vm3, %v8395_v54  ;;  %v1351_v9 = vsel %vm11056_vm4, %v1349_v2, %v1350_v62  ;;  %v1361_v18 = vrot.slane %v11155_v14, 5  ;;  %v1364_v20 = vrot.slane %v8339_v16, 5  ;;  %v8340_v21 = vld [vmem:[%s11054_s24 + $0x714] sm:$0xe]  ;;  %v11162_v22 = vld [vmem:[%s11054_s24 + $0x718] sm:$0xf] }
  0x26   : > { %v1356_v10 = vrot.slane %v1354_v3, 4  ;;  %v8397_v15 = vcombine.low %v1348_v1, %v1351_v9  ;;  %v1355_v23 = vsel %vm11056_vm4, %v8392_v5, %v1354_v3  ;;  %v8342_v25 = vld [vmem:[%s11054_s24 + $0x71c] sm:$0x1]  ;;  %v8301_v26 = vld [vmem:[%s11054_s24 + $0x50c] sm:$0xe]  ;;  %v1368_v29 = vrot.slane %v11162_v22, 5 }
  0x27   : > { %v1363_v24 = vrot.slane %v1361_v18, 4  ;;  %v11171_v27 = vld [vmem:[%s11054_s24 + $0x510] sm:$0xf]  ;;  %v8303_v30 = vld [vmem:[%s11054_s24 + $0x514] sm:$0x1]  ;;  %v8349_v31 = vrot.slane %v8301_v26, 9  ;;  %v1362_v35 = vsel %vm11056_vm4, %v8393_v17, %v1361_v18 }
  0x28   : > { %v1358_v28 = vsel %vm11056_vm4, %v1356_v10, %v1357_v11  ;;  %v953_v33 = vrot.slane %v11171_v27, 5  ;;  %v956_v37 = vrot.slane %v8303_v30, 5  ;;  %v8304_v38 = vld [vmem:[%s11054_s24 + $0x534] sm:$0xe]  ;;  %v11185_v39 = vld [vmem:[%s11054_s24 + $0x538] sm:$0xf] }
  0x29   : > { %v1365_v36 = vsel %vm11056_vm4, %v1363_v24, %v1364_v20  ;;  %v8394_v42 = vrot.slane %v8340_v21, 9  ;;  %v8306_v47 = vld [vmem:[%s11054_s24 + $0x53c] sm:$0x1]  ;;  %v8398_v48 = vcombine.low %v1355_v23, %v1358_v28  ;;  %v8350_v49 = vrot.slane %v8304_v38, 9  ;;  %v8307_v57 = vld [vmem:[%s11054_s24 + $0x55c] sm:$0xe] }
  0x2a   : > { %9781 = vmatmul.mubr.msk.bf16.gmra.mrb[4].mxu1 %vm691_vm3, %v8396_v4  ;;  %v954_v43 = vsel %vm11056_vm4, %v8349_v31, %v953_v33  ;;  %v955_v46 = vrot.slane %v953_v33, 4  ;;  %v960_v50 = vrot.slane %v11185_v39, 5  ;;  %v963_v51 = vrot.slane %v8306_v47, 5  ;;  %v11198_v60 = vld [vmem:[%s11054_s24 + $0x560] sm:$0xf]  ;;  %s11993_s17 = sshll.u32 %s573_s19, 3 }
  0x2b   : > { %9731 = vmatmul.mubr.msk.bf16.gmra.mrb[8].mxu0 %vm691_vm3, %v10806_v61  ;;  %9784 = vmatprep.mubr.msk.bf16.mxu1 %vm691_vm3, %v8397_v15  ;;  %v8399_v52 = vcombine.low %v1362_v35, %v1365_v36  ;;  %v1370_v54 = vrot.slane %v1368_v29, 4  ;;  %v1371_v55 = vrot.slane %v8342_v25, 5  ;;  %v8309_v61 = vld [vmem:[%s11054_s24 + $0x564] sm:$0x1]  ;;  %v8352_v62 = vrot.slane %v8307_v57, 9  ;;  %s12018_s18 = scalar_lea.vmem %s13302_s12, %s11993_s17  ;;  %s12818_s26 = scalar_lea.vmem %s13303_s13, %s11993_s17 }
  0x2c   : > { %9734 = vmatprep.mubr.msk.bf16.mxu0 %vm691_vm3, %v10807_v7  ;;  %v957_v56 = vsel %vm11056_vm4, %v955_v46, %v956_v37  ;;  %v962_v59 = vrot.slane %v960_v50, 4  ;;  %v987_v0 = vrot.slane %v11198_v60, 5  ;;  %v961_v1 = vsel %vm11056_vm4, %v8350_v49, %v960_v50  ;;  %v8310_v4 = vld [vmem:[%s11054_s24 + $0x584] sm:$0xe]  ;;  %v11212_v5 = vld [vmem:[%s11054_s24 + $0x588] sm:$0xf]  ;;  %s13192_s30 = scalar_lea.vmem %s13305_s15, %s11993_s17  ;;  %s13241_s25 = scalar_lea.vmem %s13301_s11, %s11993_s17 }
  0x2d   : > { %v11195_v58 = vcombine.low %v954_v43, %v957_v56  ;;  %v990_v3 = vrot.slane %v8309_v61, 5  ;;  %v1369_v7 = vsel %vm11056_vm4, %v8394_v42, %v1368_v29  ;;  %v1372_v9 = vsel %vm11056_vm4, %v1370_v54, %v1371_v55  ;;  %v8312_v13 = vld [vmem:[%s11054_s24 + $0x58c] sm:$0x1]  ;;  %v11223_v15 = vld [vmem:[%s11054_s24 + $0x420] sm:$0xf] }
  0x2e   : > { %v964_v2 = vsel %vm11056_vm4, %v962_v59, %v963_v51  ;;  %v988_v10 = vsel %vm11056_vm4, %v8352_v62, %v987_v0  ;;  %v989_v11 = vrot.slane %v987_v0, 4  ;;  %v8409_v16 = vld [vmem:[%s11054_s24 + $0x424] sm:$0xf]  ;;  %v994_v17 = vrot.slane %v11212_v5, 5  ;;  %v8313_v23 = vld [vmem:[%s11054_s24 + $0x5ac] sm:$0xe] }
  0x2f   : > { %v11227_v18 = vcombine.low %v961_v1, %v964_v2  ;;  %v8353_v21 = vrot.slane %v8310_v4, 9  ;;  %v8400_v24 = vcombine.low %v1369_v7, %v1372_v9  ;;  %v997_v28 = vrot.slane %v8312_v13, 5  ;;  %v11233_v29 = vld [vmem:[%s11054_s24 + $0x5b0] sm:$0xf]  ;;  %v8315_v30 = vld [vmem:[%s11054_s24 + $0x5b4] sm:$0x1] }
  0x30   : > { %v991_v20 = vsel %vm11056_vm4, %v989_v11, %v990_v3  ;;  %v996_v26 = vrot.slane %v994_v17, 4  ;;  %v8430_v31 = vcombine.low %v11223_v15, %v8409_v16  ;;  %v8354_v33 = vrot.slane %v8313_v23, 9  ;;  %v11239_v37 = vld [vmem:[%s11054_s24 + $0x5d8] sm:$0xf]  ;;  %v11248_v42 = vld [vmem:[%s13295_s5 + $0xc] sm:$0xf] }
  0x31   : > { %v8360_v25 = vcombine.low %v988_v10, %v991_v20  ;;  %v1001_v35 = vrot.slane %v11233_v29, 5  ;;  %v1004_v36 = vrot.slane %v8315_v30, 5  ;;  %v1212_v38 = vsel %vm716_vm0, %v11064_v8, 0  ;;  %v11252_v43 = vld [vmem:[%s11054_s24 + $0x448] sm:$0xf] }
  0x32   : > { %9785 = vmatmul.mubr.msk.bf16.gmra.mrb[8].mxu1 %vm691_vm3, %v8398_v48  ;;  %v8410_v46 = vld [vmem:[%s11054_s24 + $0x44c] sm:$0xf]  ;;  %v995_v8 = vsel %vm11056_vm4, %v8353_v21, %v994_v17  ;;  %v998_v47 = vsel %vm11056_vm4, %v996_v26, %v997_v28  ;;  %v1008_v48 = vrot.slane %v11239_v37, 5  ;;  %v8316_v51 = vld [vmem:[%s11054_s24 + $0x5d4] sm:$0xe]  ;;  %v1764_v2 = vsel %vm716_vm0, %v11113_v44, 0 }
  0x33   : > { %9735 = vmatmul.mubr.msk.bf16.gmra.mrb[12].mxu0 %vm691_vm3, %v10808_v40  ;;  %9788 = vmatprep.mubr.msk.bf16.mxu1 %vm691_vm3, %v8399_v52  ;;  %v1003_v40 = vrot.slane %v1001_v35, 4  ;;  %v1002_v49 = vsel %vm11056_vm4, %v8354_v33, %v1001_v35  ;;  %v8318_v52 = vld [vmem:[%s11054_s24 + $0x5dc] sm:$0x1]  ;;  %v11269_v54 = vld [vmem:[%s11054_s24 + $0x470] sm:$0xf]  ;;  %v8431_v56 = vcombine.low %v11252_v43, %v8410_v46  ;;  %v8361_v57 = vcombine.low %v995_v8, %v998_v47 }
  0x34   : > { %9740 = vmatprep.mubr.msk.bf16.mxu0 %vm691_vm3, %v11195_v58  ;;  %v8411_v55 = vld [vmem:[%s11054_s24 + $0x474] sm:$0xf]  ;;  %v8355_v61 = vrot.slane %v8316_v51, 9  ;;  %v1010_v62 = vrot.slane %v1008_v48, 4  ;;  %v1011_v0 = vrot.slane %v8318_v52, 5  ;;  %v911_v4 = vrot.slane %v11223_v15, 5 }
  0x35   : > { %v1005_v50 = vsel %vm11056_vm4, %v1003_v40, %v1004_v36  ;;  %v8432_v1 = vcombine.low %v11269_v54, %v8411_v55  ;;  %v11282_v3 = vld [vmem:[%s13293_s3 + $0x1c] sm:$0xf]  ;;  %v11293_v44 = vld [vmem:[%s11054_s24 + $0x498] sm:$0xf]  ;;  %v11297_v11 = vld [vmem:[%s11054_s24 + $0x4c0] sm:$0xf] }
  0x36   : > { %v8362_v59 = vcombine.low %v1002_v49, %v1005_v50  ;;  %v1009_v7 = vsel %vm11056_vm4, %v8355_v61, %v1008_v48  ;;  %v1012_v9 = vsel %vm11056_vm4, %v1010_v62, %v1011_v0  ;;  %v8412_v10 = vld [vmem:[%s11054_s24 + $0x49c] sm:$0xf]  ;;  %v8413_v13 = vld [vmem:[%s11054_s24 + $0x4c4] sm:$0xf]  ;;  %v913_v21 = vrot.slane %v911_v4, 4 }
  0x37   : > { %v8283_v15 = vld [vmem:[%s11054_s24 + $0x41c] sm:$0xe]  ;;  %v8285_v16 = vld [vmem:[%s11054_s24 + $0x424] sm:$0x1]  ;;  %v8363_v17 = vcombine.low %v1009_v7, %v1012_v9  ;;  %v8433_v20 = vcombine.low %v11293_v44, %v8412_v10  ;;  %v8434_v23 = vcombine.low %v11297_v11, %v8413_v13  ;;  %v918_v26 = vrot.slane %v11252_v43, 5 }
  0x38   : > { %v925_v28 = vrot.slane %v11269_v54, 5  ;;  %v11311_v30 = vld [vmem:[%s11054_s24 + $0x4e8] sm:$0xf]  ;;  %v8286_v36 = vld [vmem:[%s11054_s24 + $0x444] sm:$0xe]  ;;  %v932_v55 = vrot.slane %v11293_v44, 5 }
  0x39   : > { %v8415_v40 = vld [vmem:[%s11054_s24 + $0x514] sm:$0xf]  ;;  %v8289_v43 = vld [vmem:[%s11054_s24 + $0x46c] sm:$0xe]  ;;  %v920_v8 = vrot.slane %v918_v26, 4 }
  0x3a   : > { %9789 = vmatmul.mubr.msk.bf16.gmra.mrb[12].mxu1 %vm691_vm3, %v8400_v24  ;;  %v8343_v24 = vrot.slane %v8283_v15, 9  ;;  %v8291_v46 = vld [vmem:[%s11054_s24 + $0x474] sm:$0x1]  ;;  %v927_v50 = vrot.slane %v925_v28, 4  ;;  %v8436_v51 = vcombine.low %v11171_v27, %v8415_v40  ;;  %v8345_v52 = vrot.slane %v8289_v43, 9 }
  0x3b   : > { %9741 = vmatmul.mubr.msk.bf16.vlgmr.msra.gmra.mrb[16].mxu0 %vm691_vm3, %v11227_v18  ;;  %9794 = vmatprep.mubr.msk.bf16.mxu1 %vm691_vm3, %v8430_v31  ;;  %v8414_v31 = vld [vmem:[%s11054_s24 + $0x4ec] sm:$0xf]  ;;  %v928_v54 = vrot.slane %v8291_v46, 5  ;;  %v8292_v62 = vld [vmem:[%s11054_s24 + $0x494] sm:$0xe]  ;;  %v1924_v40 = vsel %vm716_vm0, %v11282_v3, 0 }
  0x3c   : > { %9744 = vmatprep.mubr.msk.bf16.mxu0 %vm691_vm3, %v8360_v25  ;;  %9757 = vmatpush3.bf16.msra.mxu0 %v1212_v38  ;;  %v914_v25 = vrot.slane %v8285_v16, 5  ;;  %v912_v33 = vsel %vm11056_vm4, %v8343_v24, %v911_v4  ;;  %v8288_v38 = vld [vmem:[%s11054_s24 + $0x44c] sm:$0x1]  ;;  %v8435_v47 = vcombine.low %v11311_v30, %v8414_v31  ;;  %v926_v61 = vsel %vm11056_vm4, %v8345_v52, %v925_v28  ;;  %v8294_v0 = vld [vmem:[%s11054_s24 + $0x49c] sm:$0x1] }
  0x3d   : > { %10738 = vmatprep.subr.msk.bf16.mxu0 %vm716_vm0, %v11248_v42  ;;  %v921_v49 = vrot.slane %v8288_v38, 5  ;;  %v934_v4 = vrot.slane %v932_v55, 4  ;;  %v8346_v10 = vrot.slane %v8292_v62, 9  ;;  %v8417_v28 = vld [vmem:[%s11054_s24 + $0x564] sm:$0xf] }
  0x3e   : > { %v915_v35 = vsel %vm11056_vm4, %v913_v21, %v914_v25  ;;  %v8298_v25 = vld [vmem:[%s11054_s24 + $0x4e4] sm:$0xe]  ;;  %v8447_v38 = vcombine.low %v11198_v60, %v8417_v28  ;;  %v8631_v43 = vld [vmem:[%s11054_s24 + $0x50c] sm:$0xf]  ;;  %v11382_v46 = vld [vmem:[%s13293_s3 + $0x8] sm:$0xf] }
  0x3f   : > { %v8374_v48 = vcombine.low %v912_v33, %v915_v35  ;;  %v922_v27 = vsel %vm11056_vm4, %v920_v8, %v921_v49  ;;  %v933_v21 = vsel %vm11056_vm4, %v8346_v10, %v932_v55  ;;  %v8348_v35 = vrot.slane %v8298_v25, 9  ;;  %v8632_v49 = vld [vmem:[%s11054_s24 + $0x510] sm:$0x3]  ;;  %v8633_v62 = vld [vmem:[%s11054_s24 + $0x530] sm:$0xc] }
  0x40   : > { %v8639_v25 = vld [vmem:[%s11054_s24 + $0x580] sm:$0xc] }
  0x42   : > { %9795 = vmatmul.mubr.msk.bf16.vlgmr.msra.gmra.mrb[0].mxu1 %vm691_vm3, %v8431_v56  ;;  %v939_v56 = vrot.slane %v11297_v11, 5  ;;  %v935_v11 = vrot.slane %v8294_v0, 5  ;;  %v8635_v0 = vld [vmem:[%s11054_s24 + $0x538] sm:$0x3] }
  0x43   : > { %9745 = vmatmul.mubr.msk.bf16.gmra.mrb[20].mxu0 %vm691_vm3, %v8361_v57  ;;  %9811 = vmatpush3.bf16.msra.mxu1 %v1764_v2  ;;  %v8297_v2 = vld [vmem:[%s11054_s24 + $0x4c4] sm:$0x1] }
  0x44   : > { %9748 = vmatprep.mubr.msk.bf16.mxu0 %vm691_vm3, %v8362_v59  ;;  %9798 = vmatprep.mubr.msk.bf16.mxu1 %vm691_vm3, %v8432_v1  ;;  %v8416_v59 = vld [vmem:[%s11054_s24 + $0x53c] sm:$0xf]  ;;  %v941_v13 = vrot.slane %v939_v56, 4  ;;  %v942_v16 = vrot.slane %v8297_v2, 5  ;;  %v8421_v2 = vld [vmem:[%s11054_s24 + $0x604] sm:$0xf] }
  0x45   : > { %10734 = vmatprep.subr.msk.bf16.mxu1 %vm716_vm0, %v11282_v3  ;;  %v8295_v1 = vld [vmem:[%s11054_s24 + $0x4bc] sm:$0xe]  ;;  %v8437_v9 = vcombine.low %v11185_v39, %v8416_v59  ;;  %v946_v39 = vrot.slane %v11311_v30, 5  ;;  %v8418_v3 = vld [vmem:[%s11054_s24 + $0x58c] sm:$0xf] }
  0x46   : > { %v8347_v15 = vrot.slane %v8295_v1, 9  ;;  %v943_v24 = vsel %vm11056_vm4, %v941_v13, %v942_v16  ;;  %v8637_v59 = vld [vmem:[%s11054_s24 + $0x55c] sm:$0xf]  ;;  %v8451_v13 = vcombine.low %v11071_v12, %v8421_v2 }
  0x47   : > { %v948_v31 = vrot.slane %v946_v39, 4  ;;  %v947_v8 = vsel %vm11056_vm4, %v8348_v35, %v946_v39  ;;  %v3001_v1 = vrot.slane %v8637_v59, 6  ;;  %v8640_v39 = vld [vmem:[%s11054_s24 + $0x584] sm:$0xf] }
  0x49   : > { %v3003_v16 = vrot.slane %v3001_v1, 4 }
  0x4a   : > { %9799 = vmatmul.mubr.msk.bf16.gmra.mrb[4].mxu1 %vm691_vm3, %v8433_v20  ;;  %v11355_v20 = vld [vmem:[%s13295_s5] sm:$0xf] }
  0x4b   : > { %9749 = vmatmul.mubr.msk.bf16.gmra.mrb[24].mxu0 %vm691_vm3, %v8363_v17  ;;  %9802 = vmatprep.mubr.msk.bf16.mxu1 %vm691_vm3, %v8434_v23  ;;  %v3090_v17 = vsel %vm716_vm0, %v11248_v42, 0  ;;  %v936_v23 = vsel %vm11056_vm4, %v934_v4, %v935_v11  ;;  %v940_v42 = vsel %vm11056_vm4, %v8347_v15, %v939_v56  ;;  %v2990_v56 = vrot.slane %v8632_v49, 6  ;;  %v8636_v4 = vld [vmem:[%s11054_s24 + $0x558] sm:$0xc] }
  0x4c   : > { %9752 = vmatprep.mubr.msk.bf16.mxu0 %vm691_vm3, %v11099_v34  ;;  %v8344_v34 = vrot.slane %v8286_v36, 9  ;;  %v8377_v30 = vcombine.low %v933_v21, %v936_v23  ;;  %v8378_v33 = vcombine.low %v940_v42, %v943_v24  ;;  %v2997_v11 = vrot.slane %v8635_v0, 6  ;;  %v8643_v21 = vld [vmem:[%s11054_s24 + $0x5ac] sm:$0xf] }
  0x4d   : > { %v8689_v15 = vrot.slane %v8636_v4, 10  ;;  %v3008_v42 = vrot.slane %v8640_v39, 6  ;;  %v3015_v28 = vrot.slane %v8643_v21, 6  ;;  %v8608_v39 = vld [vmem:[%s11054_s24 + $0x330] sm:$0x3] }
  0x4e   : > { %v919_v57 = vsel %vm11056_vm4, %v8344_v34, %v918_v26  ;;  %v8300_v26 = vld [vmem:[%s11054_s24 + $0x4ec] sm:$0x1]  ;;  %v8630_v34 = vld [vmem:[%s11054_s24 + $0x508] sm:$0xc]  ;;  %v11488_v21 = vld [vmem:[%s11054_s24 + $0x354] sm:$0xf] }
  0x4f   : > { %v8375_v7 = vcombine.low %v919_v57, %v922_v27  ;;  %v949_v36 = vrot.slane %v8300_v26, 5  ;;  %v8634_v57 = vld [vmem:[%s11054_s24 + $0x534] sm:$0xf]  ;;  %v3002_v24 = vsel %vm11401_vm7, %v8689_v15, %v3001_v1  ;;  %v8641_v26 = vld [vmem:[%s11054_s24 + $0x588] sm:$0x3] }
  0x50   : > { %v8606_v15 = vld [vmem:[%s11054_s24 + $0x328] sm:$0xc] }
  0x51   : > { %v950_v60 = vsel %vm11056_vm4, %v948_v31, %v949_v36  ;;  %v8644_v31 = vld [vmem:[%s11054_s24 + $0x5b0] sm:$0x3]  ;;  %v10870_v27 = vld [vmem:[%s11054_s24 + $0x808] sm:$0xff]  }
  0x52   : > { %9803 = vmatmul.mubr.msk.bf16.gmra.mrb[8].mxu1 %vm691_vm3, %v8435_v47  ;;  %v2987_v47 = vrot.slane %v8631_v43, 6  ;;  %v3011_v43 = vrot.slane %v8641_v26, 6  ;;  %v8678_v26 = vrot.slane %v8606_v15, 10 }
  0x53   : > { %9753 = vmatmul.mubr.msk.bf16.gmra.mrb[28].mxu0 %vm691_vm3, %v11117_v45  ;;  %9806 = vmatprep.mubr.msk.bf16.mxu1 %vm691_vm3, %v8436_v51  ;;  %v929_v45 = vsel %vm11056_vm4, %v927_v50, %v928_v54  ;;  %v8379_v50 = vcombine.low %v947_v8, %v950_v60  ;;  %v8687_v54 = vrot.slane %v8630_v34, 10  ;;  %v3017_v60 = vrot.slane %v3015_v28, 4 }
  0x54   : > { %9758 = vmatprep.mubr.msk.bf16.mxu0 %vm691_vm3, %v8374_v48  ;;  %v8376_v44 = vcombine.low %v926_v61, %v929_v45  ;;  %v8419_v48 = vld [vmem:[%s11054_s24 + $0x5b4] sm:$0xf]  ;;  %v2989_v55 = vrot.slane %v2987_v47, 4  ;;  %v3238_v34 = vsel %vm716_vm0, %v11355_v20, 0 }
  0x55   : > { %v8449_v52 = vcombine.low %v11233_v29, %v8419_v48  ;;  %v2994_v29 = vrot.slane %v8634_v57, 6  ;;  %v2988_v61 = vsel %vm11401_vm7, %v8687_v54, %v2987_v47  ;;  %v8646_v47 = vld [vmem:[%s11054_s24 + $0x5d4] sm:$0xf]  ;;  %v8649_v48 = vld [vmem:[%s11054_s24 + $0x5fc] sm:$0xf] }
  0x56   : > { %v2991_v45 = vsel %vm11401_vm7, %v2989_v55, %v2990_v56  ;;  %v8648_v56 = vld [vmem:[%s11054_s24 + $0x5f8] sm:$0xc]  ;;  %v8650_v57 = vld [vmem:[%s11054_s24 + $0x600] sm:$0x3]  ;;  %v3029_v59 = vrot.slane %v8649_v48, 6 }
  0x57   : > { %v2996_v10 = vrot.slane %v2994_v29, 4  ;;  %v8693_v2 = vrot.slane %v8648_v56, 10  ;;  %v3032_v4 = vrot.slane %v8650_v57, 6  ;;  %v8614_v57 = vld [vmem:[%s11054_s24 + $0x380] sm:$0x3] }
  0x59   : > { %v2998_v23 = vsel %vm11401_vm7, %v2996_v10, %v2997_v11  ;;  %v8607_v11 = vld [vmem:[%s11054_s24 + $0x32c] sm:$0xf] }
  0x5a   : > { %9807 = vmatmul.mubr.msk.bf16.gmra.mrb[12].mxu1 %vm691_vm3, %v8437_v9 }
  0x5b   : > { %9759 = vmatmul.mubr.msk.bf16.vlgmr.msra.gmra.mrb[16].mxu0 %vm691_vm3, %v8375_v7  ;;  %9812 = vmatprep.mubr.msk.bf16.mxu1 %vm691_vm3, %v8436_v51  ;;  %v8448_v51 = vcombine.low %v11212_v5, %v8418_v3  ;;  %v8420_v5 = vld [vmem:[%s11054_s24 + $0x5dc] sm:$0xf]  ;;  %v8638_v7 = vld [vmem:[%s11054_s24 + $0x560] sm:$0x3]  ;;  %v3018_v3 = vrot.slane %v8644_v31, 6  ;;  %v2908_v31 = vrot.slane %v8608_v39, 6 }
  0x5c   : > { %9762 = vmatprep.mubr.msk.bf16.mxu0 %vm691_vm3, %v8376_v44  ;;  %9901 = vmatpush3.bf16.msra.mxu0 %v3090_v17  ;;  %v8688_v44 = vrot.slane %v8633_v62, 10  ;;  %v3004_v17 = vrot.slane %v8638_v7, 6  ;;  %v8651_v7 = vld [vmem:[%s11054_s24 + $0x620] sm:$0xc] }
  0x5d   : > { %10739 = vmatprep.subr.msk.bf16.mxu0 %vm716_vm0, %v11355_v20  ;;  %v8645_v20 = vld [vmem:[%s11054_s24 + $0x5d0] sm:$0xc]  ;;  %v3019_v55 = vsel %vm11401_vm7, %v3017_v60, %v3018_v3 }
  0x5e   : > { %v2995_v12 = vsel %vm11401_vm7, %v8688_v44, %v2994_v29  ;;  %v8652_v29 = vld [vmem:[%s11054_s24 + $0x624] sm:$0xf]  ;;  %v11476_v44 = vld [vmem:[%s11054_s24 + $0x628] sm:$0x3] }
  0x5f   : > { %v8696_v35 = vcombine.low %v2995_v12, %v2998_v23  ;;  %v3036_v10 = vrot.slane %v8652_v29, 6  ;;  %v8694_v12 = vrot.slane %v8651_v7, 10  ;;  %v3039_v23 = vrot.slane %v11476_v44, 6  ;;  %v11574_v44 = vld [vmem:[%s11054_s24 + $0x474] sm:$0xf] }
  0x62   : > { %9813 = vmatmul.mubr.msk.bf16.vlgmr.msra.gmra.mrb[0].mxu1 %vm691_vm3, %v8437_v9  ;;  %v8695_v9 = vcombine.low %v2988_v61, %v2991_v45  ;;  %v8692_v45 = vrot.slane %v8645_v20, 10 }
  0x63   : > { %9763 = vmatmul.mubr.msk.bf16.gmra.mrb[20].mxu0 %vm691_vm3, %v8377_v30  ;;  %9829 = vmatpush3.bf16.msra.mxu1 %v1924_v40  ;;  %v8642_v30 = vld [vmem:[%s11054_s24 + $0x5a8] sm:$0xc]  ;;  %v3010_v40 = vrot.slane %v3008_v42, 4 }
  0x64   : > { %9766 = vmatprep.mubr.msk.bf16.mxu0 %vm691_vm3, %v8378_v33  ;;  %9816 = vmatprep.mubr.msk.bf16.mxu1 %vm691_vm3, %v8447_v38  ;;  %v8690_v38 = vrot.slane %v8639_v25, 10  ;;  %v8691_v8 = vrot.slane %v8642_v30, 10  ;;  %v3038_v25 = vrot.slane %v3036_v10, 4  ;;  %v11508_v30 = vld [vmem:[%s11054_s24 + $0x424] sm:$0xf] }
  0x65   : > { %10735 = vmatprep.subr.msk.bf16.mxu1 %vm716_vm0, %v11382_v46  ;;  %v2130_v48 = vrot.slane %v11508_v30, 7 }
  0x66   : > { %v3009_v49 = vsel %vm11401_vm7, %v8690_v38, %v3008_v42  ;;  %v3016_v54 = vsel %vm11401_vm7, %v8691_v8, %v3015_v28  ;;  %v2905_v42 = vrot.slane %v8607_v11, 6  ;;  %v11505_v28 = vld [vmem:[%s11054_s24 + $0x350] sm:$0xc]  ;;  %v11525_v8 = vld [vmem:[%s11054_s24 + $0x37c] sm:$0xf] }
  0x67   : > { %v8699_v0 = vcombine.low %v3016_v54, %v3019_v55  ;;  %v8679_v20 = vrot.slane %v11505_v28, 10  ;;  %v3037_v54 = vsel %vm11401_vm7, %v8694_v12, %v3036_v10  ;;  %v2132_v7 = vrot.slane %v2130_v48, 4  ;;  %v8884_v12 = vld [vmem:[%s11054_s24 + $0x58c] sm:$0xc] }
  0x68   : > { %v2906_v55 = vsel %vm11401_vm7, %v8678_v26, %v2905_v42  ;;  %v11605_v26 = vld [vmem:[%s11054_s24 + $0x4a0] sm:$0x7] }
  0x6a   : > { %9817 = vmatmul.mubr.msk.bf16.gmra.mrb[4].mxu1 %vm691_vm3, %v8448_v51  ;;  %v8647_v51 = vld [vmem:[%s11054_s24 + $0x5d8] sm:$0x3] }
  0x6b   : > { %9767 = vmatmul.mubr.msk.bf16.gmra.mrb[24].mxu0 %vm691_vm3, %v8379_v50  ;;  %9820 = vmatprep.mubr.msk.bf16.mxu1 %vm691_vm3, %v8449_v52  ;;  %v3012_v50 = vsel %vm11401_vm7, %v3010_v40, %v3011_v43  ;;  %v3022_v52 = vrot.slane %v8646_v47, 6  ;;  %v3025_v62 = vrot.slane %v8647_v51, 6  ;;  %v11519_v40 = vld [vmem:[%s11054_s24 + $0x420] sm:$0x8]  ;;  %v11522_v43 = vld [vmem:[%s11054_s24 + $0x428] sm:$0x7] }
  0x6c   : > { %9770 = vmatprep.mubr.msk.bf16.mxu0 %vm691_vm3, %v11195_v58  ;;  %v8450_v58 = vcombine.low %v11239_v37, %v8420_v5  ;;  %v8422_v37 = vld [vmem:[%s11054_s24 + $0x62c] sm:$0xf]  ;;  %v8423_v5 = vld [vmem:[%s11054_s24 + $0x654] sm:$0xf]  ;;  %v8698_v61 = vcombine.low %v3009_v49, %v3012_v50  ;;  %v2907_v47 = vrot.slane %v2905_v42, 4  ;;  %v8537_v56 = vrot.slane %v11519_v40, 11 }
  0x6d   : > { %v8452_v33 = vcombine.low %v11079_v19, %v8422_v37  ;;  %v11452_v19 = vld [vmem:[%s13295_s5 + $0x18] sm:$0xf]  ;;  %v3024_v1 = vrot.slane %v3022_v52, 4  ;;  %v8425_v37 = vld [vmem:[%s11054_s24 + $0x6a4] sm:$0xf]  ;;  %v2144_v42 = vrot.slane %v11574_v44, 7 }
  0x6e   : > { %v11533_v49 = vld [vmem:[%s11054_s24 + $0x450] sm:$0x7]  ;;  %v8464_v50 = vcombine.low %v11130_v53, %v8425_v37  ;;  %v2919_v53 = vrot.slane %v11525_v8, 6 }
  0x72   : > { %9821 = vmatmul.mubr.msk.bf16.gmra.mrb[8].mxu1 %vm691_vm3, %v8450_v58  ;;  %v8462_v58 = vcombine.low %v11096_v32, %v8423_v5  ;;  %v8561_v32 = vld [vmem:[%s13293_s3 + $0x14] sm:$0xf]  ;;  %v8426_v5 = vld [vmem:[%s11054_s24 + $0x6cc] sm:$0xf] }
  0x73   : > { %9771 = vmatmul.mubr.msk.bf16.gmra.mrb[28].mxu0 %vm691_vm3, %v11227_v18  ;;  %9824 = vmatprep.mubr.msk.bf16.mxu1 %vm691_vm3, %v8451_v13  ;;  %v3005_v18 = vsel %vm11401_vm7, %v3003_v16, %v3004_v17  ;;  %v8424_v16 = vld [vmem:[%s11054_s24 + $0x67c] sm:$0xf]  ;;  %v3023_v17 = vsel %vm11401_vm7, %v8692_v45, %v3022_v52 }
  0x74   : > { %9902 = vmatprep.mubr.msk.bf16.mxu0 %vm691_vm3, %v8695_v9  ;;  %v8697_v36 = vcombine.low %v3002_v24, %v3005_v18  ;;  %v3031_v9 = vrot.slane %v3029_v59, 4  ;;  %v3030_v24 = vsel %vm11401_vm7, %v8693_v2, %v3029_v59  ;;  %v8463_v60 = vcombine.low %v11107_v41, %v8424_v16  ;;  %v11540_v41 = vld [vmem:[%s11054_s24 + $0x378] sm:$0xc]  ;;  %v11550_v59 = vld [vmem:[%s11054_s24 + $0x3a0] sm:$0xc] }
  0x75   : > { %v8427_v2 = vld [vmem:[%s11054_s24 + $0x6f4] sm:$0xf]  ;;  %v8680_v11 = vrot.slane %v11540_v41, 10  ;;  %v8681_v15 = vrot.slane %v11550_v59, 10  ;;  %v11584_v16 = vld [vmem:[%s11054_s24 + $0x470] sm:$0x8] }
  0x76   : > { %v3033_v18 = vsel %vm11401_vm7, %v3031_v9, %v3032_v4  ;;  %v2909_v4 = vsel %vm11401_vm7, %v2907_v47, %v2908_v31  ;;  %v8617_v9 = vld [vmem:[%s11054_s24 + $0x3a8] sm:$0x3]  ;;  %v8466_v28 = vcombine.low %v11155_v14, %v8427_v2  ;;  %v8539_v30 = vrot.slane %v11584_v16, 11  ;;  %v8620_v41 = vld [vmem:[%s11054_s24 + $0x3d0] sm:$0x3] }
  0x77   : > { %v8701_v3 = vcombine.low %v3030_v24, %v3033_v18  ;;  %v11601_v24 = vld [vmem:[%s11054_s24 + $0x498] sm:$0x8]  ;;  %v8465_v18 = vcombine.low %v11141_v63, %v8426_v5  ;;  %v8618_v63 = vld [vmem:[%s11054_s24 + $0x3c8] sm:$0xc]  ;;  %v2131_v14 = vsel %vm11595_vm10, %v8537_v56, %v2130_v48  ;;  %v2154_v47 = vrot.slane %v11605_v26, 7 }
  0x78   : > { %v8622_v56 = vld [vmem:[%s11054_s24 + $0x3f4] sm:$0xf]  ;;  %v8489_v5 = vld [vmem:[%s11054_s24 + $0x4c4] sm:$0xf]  ;;  %v11649_v2 = vld [vmem:[%s11054_s24 + $0x41c] sm:$0xf] }
  0x79   : > { %v2940_v44 = vrot.slane %v8622_v56, 6  ;;  %v11659_v16 = vld [vmem:[%s11054_s24 + $0x4e8] sm:$0x8] }
  0x7a   : > { %9825 = vmatmul.mubr.msk.bf16.gmra.mrb[12].mxu1 %vm691_vm3, %v8452_v33 }
  0x7b   : > { %9903 = vmatmul.mubr.msk.bf16.vlgmr.msra.gmra.mrb[32].mxu0 %vm691_vm3, %v8696_v35  ;;  %9830 = vmatprep.mubr.msk.bf16.mxu1 %vm691_vm3, %v8451_v13  ;;  %v2233_v13 = vsel %vm716_vm0, %v11382_v46, 0  ;;  %v3026_v46 = vsel %vm11401_vm7, %v3024_v1, %v3025_v62  ;;  %v2912_v35 = vrot.slane %v11488_v21, 6  ;;  %v2140_v62 = vrot.slane %v11533_v49, 7 }
  0x7c   : > { %9906 = vmatprep.mubr.msk.bf16.mxu0 %vm691_vm3, %v8697_v36  ;;  %9919 = vmatpush3.bf16.msra.mxu0 %v3238_v34  ;;  %v11516_v36 = vld [vmem:[%s11054_s24 + $0x44c] sm:$0xf]  ;;  %v8700_v38 = vcombine.low %v3023_v17, %v3026_v46  ;;  %v11530_v34 = vld [vmem:[%s11054_s24 + $0x448] sm:$0x8]  ;;  %v3040_v1 = vsel %vm11401_vm7, %v3038_v25, %v3039_v23  ;;  %v2921_v17 = vrot.slane %v2919_v53, 4  ;;  %v2929_v23 = vrot.slane %v8617_v9, 6 }
  0x7d   : > { %10740 = vmatprep.subr.msk.bf16.mxu0 %vm716_vm0, %v11452_v19  ;;  %v2137_v52 = vrot.slane %v11516_v36, 7  ;;  %v2914_v29 = vrot.slane %v2912_v35, 4  ;;  %v8538_v45 = vrot.slane %v11530_v34, 11  ;;  %v11591_v46 = vld [vmem:[%s11054_s24 + $0x49c] sm:$0xf]  ;;  %v8702_v37 = vcombine.low %v3037_v54, %v3040_v1 }
  0x7e   : > { %v8711_v25 = vcombine.low %v2906_v55, %v2909_v4  ;;  %v2151_v31 = vrot.slane %v11591_v46, 7  ;;  %v8682_v54 = vrot.slane %v8618_v63, 10  ;;  %v11640_v55 = vld [vmem:[%s11054_s24 + $0x3f0] sm:$0xc]  ;;  %v2936_v1 = vrot.slane %v8620_v41, 6 }
  0x7f   : > { %v11579_v10 = vrot.slane %v2137_v52, 4  ;;  %v8683_v9 = vrot.slane %v11640_v55, 10  ;;  %v2145_v34 = vsel %vm11595_vm10, %v8539_v30, %v2144_v42  ;;  %v8495_v41 = vld [vmem:[%s11054_s24 + $0x514] sm:$0xf] }
  0x82   : > { %9831 = vmatmul.mubr.msk.bf16.vlgmr.msra.gmra.mrb[0].mxu1 %vm691_vm3, %v8452_v33  ;;  %v11511_v33 = vld [vmem:[%s11054_s24 + $0x358] sm:$0x3] }
  0x83   : > { %9907 = vmatmul.mubr.msk.bf16.gmra.mrb[36].mxu0 %vm691_vm3, %v8698_v61  ;;  %9847 = vmatpush3.bf16.msra.mxu1 %v2233_v13  ;;  %v2915_v51 = vrot.slane %v11511_v33, 6  ;;  %v2133_v61 = vrot.slane %v11522_v43, 7  ;;  %v2922_v13 = vrot.slane %v8614_v57, 6  ;;  %v8619_v33 = vld [vmem:[%s11054_s24 + $0x3cc] sm:$0xf] }
  0x84   : > { %9910 = vmatprep.mubr.msk.bf16.mxu0 %vm691_vm3, %v8699_v0  ;;  %9834 = vmatprep.mubr.msk.bf16.mxu1 %vm691_vm3, %v8462_v58  ;;  %v11560_v0 = vld [vmem:[%s11054_s24 + $0x3a4] sm:$0xf]  ;;  %v11570_v58 = vsel %vm716_vm0, %v8561_v32, 0  ;;  %v2933_v48 = vrot.slane %v8619_v33, 6  ;;  %v11644_v57 = vld [vmem:[%s11054_s24 + $0x3f8] sm:$0x3] }
  0x85   : > { %10736 = vmatprep.subr.msk.bf16.mxu1 %vm716_vm0, %v8561_v32  ;;  %v2926_v39 = vrot.slane %v11560_v0, 6  ;;  %v11588_v32 = vld [vmem:[%s11054_s24 + $0x478] sm:$0x7]  ;;  %v2916_v40 = vsel %vm11401_vm7, %v2914_v29, %v2915_v51  ;;  %v2134_v43 = vsel %vm11595_vm10, %v2132_v7, %v2133_v61  ;;  %v11636_v51 = vrot.slane %v2151_v31, 4  ;;  %v11702_v33 = vld [vmem:[%s11054_s24 + $0x4f0] sm:$0x7] }
  0x86   : > { %v2147_v21 = vrot.slane %v11588_v32, 7  ;;  %v8545_v29 = vcombine.low %v2131_v14, %v2134_v43  ;;  %v2935_v0 = vrot.slane %v2933_v48, 4  ;;  %v3468_v32 = vsel %vm716_vm0, %v11452_v19, 0  ;;  %v8627_v43 = vld [vmem:[%s11054_s24 + $0x440] sm:$0xc] }
  0x87   : > { %v2928_v8 = vrot.slane %v2926_v39, 4  ;;  %v2927_v4 = vsel %vm11401_vm7, %v8681_v15, %v2926_v39  ;;  %v2138_v15 = vsel %vm11595_vm10, %v8538_v45, %v2137_v52  ;;  %v2943_v39 = vrot.slane %v11644_v57, 6  ;;  %v8624_v52 = vld [vmem:[%s11054_s24 + $0x418] sm:$0xc] }
  0x88   : > { %v2141_v19 = vsel %vm11595_vm10, %v11579_v10, %v2140_v62  ;;  %v2934_v49 = vsel %vm11401_vm7, %v8682_v54, %v2933_v48  ;;  %v2937_v62 = vsel %vm11401_vm7, %v2935_v0, %v2936_v1  ;;  %v8626_v10 = vld [vmem:[%s11054_s24 + $0x420] sm:$0x3]  ;;  %v8684_v63 = vrot.slane %v8624_v52, 10  ;;  %v8655_v54 = vld [vmem:[%s11054_s24 + $0x6ec] sm:$0xf] }
  0x89   : > { %v2930_v7 = vsel %vm11401_vm7, %v2928_v8, %v2929_v23  ;;  %v11678_v23 = vld [vmem:[%s13295_s5 + $0x4] sm:$0xf]  ;;  %v8546_v8 = vcombine.low %v2138_v15, %v2141_v19  ;;  %v2155_v56 = vsel %vm11595_vm10, %v11636_v51, %v2154_v47  ;;  %v2941_v57 = vsel %vm11401_vm7, %v8683_v9, %v2940_v44  ;;  %v8656_v9 = vld [vmem:[%s11054_s24 + $0x6f0] sm:$0x3] }
  0x8a   : > { %9835 = vmatmul.mubr.msk.bf16.gmra.mrb[4].mxu1 %vm691_vm3, %v8463_v60  ;;  %v2146_v60 = vrot.slane %v2144_v42, 4  ;;  %v8714_v36 = vcombine.low %v2927_v4, %v2930_v7  ;;  %v8685_v51 = vrot.slane %v8627_v43, 10  ;;  %v3365_v4 = vrot.slane %v8655_v54, 6  ;;  %v8654_v7 = vld [vmem:[%s11054_s24 + $0x6e8] sm:$0xc] }
  0x8b   : > { %9911 = vmatmul.mubr.msk.bf16.gmra.mrb[40].mxu0 %vm691_vm3, %v8700_v38  ;;  %9838 = vmatprep.mubr.msk.bf16.mxu1 %vm691_vm3, %v8464_v50  ;;  %v2913_v38 = vsel %vm11401_vm7, %v8679_v20, %v2912_v35  ;;  %v8428_v35 = vld [vmem:[%s11054_s24 + $0x71c] sm:$0xf]  ;;  %v2920_v50 = vsel %vm11401_vm7, %v8680_v11, %v2919_v53  ;;  %v2923_v20 = vsel %vm11401_vm7, %v2921_v17, %v2922_v13  ;;  %v8488_v11 = vld [vmem:[%s11054_s24 + $0x4c0] sm:$0x8]  ;;  %v2158_v13 = vrot.slane %v8489_v5, 7 }
  0x8c   : > { %9914 = vmatprep.mubr.msk.bf16.mxu0 %vm691_vm3, %v8701_v3  ;;  %v8540_v3 = vrot.slane %v11601_v24, 11  ;;  %v8467_v59 = vcombine.low %v11162_v22, %v8428_v35  ;;  %v8712_v53 = vcombine.low %v2913_v38, %v2916_v40  ;;  %v8713_v61 = vcombine.low %v2920_v50, %v2923_v20  ;;  %v8490_v22 = vld [vmem:[%s11054_s24 + $0x4c8] sm:$0x7]  ;;  %v11662_v17 = vld [vmem:[%s11054_s24 + $0x4ec] sm:$0xf] }
  0x8d   : > { %v2148_v45 = vsel %vm11595_vm10, %v2146_v60, %v2147_v21  ;;  %v8541_v42 = vrot.slane %v8488_v11, 11  ;;  %v2161_v30 = vrot.slane %v8490_v22, 7  ;;  %v8542_v38 = vrot.slane %v11659_v16, 11  ;;  %v8629_v60 = vld [vmem:[%s11054_s24 + $0x448] sm:$0x3] }
  0x8e   : > { %v2165_v40 = vrot.slane %v11662_v17, 7  ;;  %v8715_v21 = vcombine.low %v2934_v49, %v2937_v62  ;;  %v2950_v35 = vrot.slane %v8626_v10, 6  ;;  %v8494_v50 = vld [vmem:[%s11054_s24 + $0x510] sm:$0x8]  ;;  %v8547_v20 = vcombine.low %v2145_v34, %v2148_v45  ;;  %v8496_v5 = vld [vmem:[%s11054_s24 + $0x518] sm:$0x7] }
  0x8f   : > { %v2152_v55 = vsel %vm11595_vm10, %v8540_v3, %v2151_v31  ;;  %v2168_v31 = vrot.slane %v11702_v33, 7  ;;  %v11740_v3 = vld [vmem:[%s13293_s3 + $0x20] sm:$0xf]  ;;  %v8543_v1 = vrot.slane %v8494_v50, 11  ;;  %v8497_v11 = vld [vmem:[%s11054_s24 + $0x538] sm:$0x8] }
  0x90   : > { %v2167_v26 = vrot.slane %v2165_v40, 4  ;;  %v2175_v15 = vrot.slane %v8496_v5, 7  ;;  %v3367_v34 = vrot.slane %v3365_v4, 4  ;;  %v3368_v52 = vrot.slane %v8656_v9, 6  ;;  %v8657_v45 = vld [vmem:[%s11054_s24 + $0x710] sm:$0xc] }
  0x91   : > { %v8659_v49 = vld [vmem:[%s11054_s24 + $0x718] sm:$0x3]  ;;  %v8661_v62 = vld [vmem:[%s11054_s24 + $0x73c] sm:$0xf] }
  0x92   : > { %9839 = vmatmul.mubr.msk.bf16.gmra.mrb[8].mxu1 %vm691_vm3, %v8465_v18  ;;  %v11699_v18 = vld [vmem:[%s11054_s24 + $0x444] sm:$0xf]  ;;  %v2169_v33 = vsel %vm11595_vm10, %v2167_v26, %v2168_v31  ;;  %v3369_v17 = vsel %vm11401_vm7, %v3367_v34, %v3368_v52  ;;  %v3375_v50 = vrot.slane %v8659_v49, 6  ;;  %v8667_v31 = vld [vmem:[%s11054_s24 + $0x78c] sm:$0xf] }
  0x93   : > { %9915 = vmatmul.mubr.msk.bf16.gmra.mrb[44].mxu0 %vm691_vm3, %v8702_v37  ;;  %9842 = vmatprep.mubr.msk.bf16.mxu1 %vm691_vm3, %v8466_v28  ;;  %v2947_v37 = vrot.slane %v11649_v2, 6  ;;  %v2160_v28 = vrot.slane %v2158_v13, 4  ;;  %v2954_v48 = vrot.slane %v11699_v18, 6  ;;  %v8498_v2 = vld [vmem:[%s11054_s24 + $0x53c] sm:$0xf] }
  0x94   : > { %9920 = vmatprep.mubr.msk.bf16.mxu0 %vm691_vm3, %v8711_v25  ;;  %v2942_v25 = vrot.slane %v2940_v44, 4  ;;  %v2179_v19 = vrot.slane %v8498_v2, 7  ;;  %v8501_v26 = vld [vmem:[%s11054_s24 + $0x564] sm:$0xf]  ;;  %v8502_v2 = vld [vmem:[%s11054_s24 + $0x568] sm:$0x7] }
  0x95   : > { %v2949_v14 = vrot.slane %v2947_v37, 4  ;;  %v2162_v24 = vsel %vm11595_vm10, %v2160_v28, %v2161_v30  ;;  %v2948_v47 = vsel %vm11401_vm7, %v8684_v63, %v2947_v37  ;;  %v2956_v0 = vrot.slane %v2954_v48, 4  ;;  %v8499_v37 = vld [vmem:[%s11054_s24 + $0x540] sm:$0x7]  ;;  %v8660_v28 = vld [vmem:[%s11054_s24 + $0x738] sm:$0xc] }
  0x96   : > { %v2944_v46 = vsel %vm11401_vm7, %v2942_v25, %v2943_v39  ;;  %v8658_v39 = vld [vmem:[%s11054_s24 + $0x714] sm:$0xf]  ;;  %v2955_v10 = vsel %vm11401_vm7, %v8685_v51, %v2954_v48  ;;  %v8544_v25 = vrot.slane %v8497_v11, 11  ;;  %v2166_v30 = vsel %vm11595_vm10, %v8542_v38, %v2165_v40  ;;  %v8666_v11 = vld [vmem:[%s11054_s24 + $0x788] sm:$0xc] }
  0x97   : > { %v8716_v44 = vcombine.low %v2941_v57, %v2944_v46  ;;  %v2182_v43 = vrot.slane %v8499_v37, 7  ;;  %v3379_v38 = vrot.slane %v8661_v62, 6  ;;  %v8550_v54 = vcombine.low %v2166_v30, %v2169_v33  ;;  %v8665_v57 = vld [vmem:[%s11054_s24 + $0x768] sm:$0x3]  ;;  %v8670_v62 = vld [vmem:[%s11054_s24 + $0x7b4] sm:$0xf] }
  0x98   : > { %v2370_v9 = vrot.slane %v8501_v26, 7  ;;  %v2373_v37 = vrot.slane %v8502_v2, 7  ;;  %v8732_v52 = vrot.slane %v8666_v11, 10  ;;  %v8507_v30 = vld [vmem:[%s11054_s24 + $0x5b4] sm:$0xf] }
  0x99   : > { %v3381_v46 = vrot.slane %v3379_v38, 4  ;;  %v11830_v33 = vld [vmem:[%s13295_s5 + $0x10] sm:$0xf]  ;;  %v8676_v26 = vld [vmem:[%s11054_s24 + $0x804] sm:$0xf] }
  0x9a   : > { %9843 = vmatmul.mubr.msk.bf16.gmra.mrb[12].mxu1 %vm691_vm3, %v8467_v59  ;;  %v2159_v59 = vsel %vm11595_vm10, %v8541_v42, %v2158_v13  ;;  %v3372_v42 = vrot.slane %v8658_v39, 6  ;;  %v2372_v34 = vrot.slane %v2370_v9, 4  ;;  %v8513_v2 = vld [vmem:[%s11054_s24 + $0x604] sm:$0xf]  ;;  %v3414_v11 = vrot.slane %v8676_v26, 6 }
  0x9b   : > { %9921 = vmatmul.mubr.msk.bf16.vlgmr.msra.gmra.mrb[32].mxu0 %vm691_vm3, %v8712_v53  ;;  %9848 = vmatprep.mubr.msk.bf16.mxu1 %vm691_vm3, %v8545_v29  ;;  %v2957_v53 = vrot.slane %v8629_v60, 6  ;;  %v2172_v29 = vrot.slane %v8495_v41, 7  ;;  %v8549_v22 = vcombine.low %v2159_v59, %v2162_v24  ;;  %v8664_v60 = vld [vmem:[%s11054_s24 + $0x764] sm:$0xf]  ;;  %v8518_v26 = vld [vmem:[%s11054_s24 + $0x650] sm:$0x8] }
  0x9c   : > { %9924 = vmatprep.mubr.msk.bf16.mxu0 %vm691_vm3, %v8713_v61  ;;  %9937 = vmatpush3.bf16.msra.mxu0 %v3468_v32  ;;  %v2951_v61 = vsel %vm11401_vm7, %v2949_v14, %v2950_v35  ;;  %v8662_v14 = vld [vmem:[%s11054_s24 + $0x740] sm:$0x3]  ;;  %v8729_v35 = vrot.slane %v8657_v45, 10  ;;  %v3374_v48 = vrot.slane %v3372_v42, 4  ;;  %v3386_v24 = vrot.slane %v8664_v60, 6 }
  0x9d   : > { %10741 = vmatprep.subr.msk.bf16.mxu0 %vm716_vm0, %v11678_v23  ;;  %v8717_v13 = vcombine.low %v2948_v47, %v2951_v61  ;;  %v2174_v32 = vrot.slane %v2172_v29, 4  ;;  %v2958_v18 = vsel %vm11401_vm7, %v2956_v0, %v2957_v53  ;;  %v2173_v63 = vsel %vm11595_vm10, %v8543_v1, %v2172_v29  ;;  %v8500_v1 = vld [vmem:[%s11054_s24 + $0x560] sm:$0x8] }
  0x9e   : > { %v8718_v40 = vcombine.low %v2955_v10, %v2958_v18  ;;  %v3382_v41 = vrot.slane %v8662_v14, 6  ;;  %v2180_v47 = vsel %vm11595_vm10, %v8544_v25, %v2179_v19  ;;  %v3373_v53 = vsel %vm11401_vm7, %v8729_v35, %v3372_v42  ;;  %v8669_v18 = vld [vmem:[%s11054_s24 + $0x7b0] sm:$0xc]  ;;  %v8671_v25 = vld [vmem:[%s11054_s24 + $0x7b8] sm:$0x3] }
  0x9f   : > { %v3376_v5 = vsel %vm11401_vm7, %v3374_v48, %v3375_v50  ;;  %v3389_v0 = vrot.slane %v8665_v57, 6  ;;  %v8562_v39 = vrot.slane %v8500_v1, 11  ;;  %v8673_v42 = vld [vmem:[%s11054_s24 + $0x7dc] sm:$0xf]  ;;  %v2374_v35 = vsel %vm11595_vm10, %v2372_v34, %v2373_v37  ;;  %v8506_v48 = vld [vmem:[%s11054_s24 + $0x5b0] sm:$0x8] }
  0xa0   : > { %v2384_v50 = vrot.slane %v8507_v30, 7  ;;  %v8510_v57 = vld [vmem:[%s11054_s24 + $0x5dc] sm:$0xf] }
  0xa2   : > { %9849 = vmatmul.mubr.msk.bf16.vlgmr.msra.gmra.mrb[0].mxu1 %vm691_vm3, %v8546_v8  ;;  %v2176_v8 = vsel %vm11595_vm10, %v2174_v32, %v2175_v15 }
  0xa3   : > { %9925 = vmatmul.mubr.msk.bf16.gmra.mrb[36].mxu0 %vm691_vm3, %v8714_v36  ;;  %9865 = vmatpush3.bf16.msra.mxu1 %v11570_v58  ;;  %v8548_v58 = vcombine.low %v2152_v55, %v2155_v56  ;;  %v8728_v36 = vrot.slane %v8654_v7, 10  ;;  %v8663_v56 = vld [vmem:[%s11054_s24 + $0x760] sm:$0xc]  ;;  %v8551_v59 = vcombine.low %v2173_v63, %v2176_v8  ;;  %v3388_v7 = vrot.slane %v3386_v24, 4 }
  0xa4   : > { %9928 = vmatprep.mubr.msk.bf16.mxu0 %vm691_vm3, %v8715_v21  ;;  %9852 = vmatprep.mubr.msk.bf16.mxu1 %vm691_vm3, %v8547_v20  ;;  %v2181_v21 = vrot.slane %v2179_v19, 4  ;;  %v8730_v20 = vrot.slane %v8660_v28, 10  ;;  %v8731_v61 = vrot.slane %v8663_v56, 10  ;;  %v8503_v19 = vld [vmem:[%s11054_s24 + $0x588] sm:$0x8]  ;;  %v3698_v28 = vsel %vm716_vm0, %v11678_v23, 0 }
  0xa5   : > { %10737 = vmatprep.subr.msk.bf16.mxu1 %vm716_vm0, %v11740_v3  ;;  %v3366_v16 = vsel %vm11401_vm7, %v8728_v36, %v3365_v4  ;;  %v3383_v4 = vsel %vm11401_vm7, %v3381_v46, %v3382_v41  ;;  %v8505_v36 = vld [vmem:[%s11054_s24 + $0x590] sm:$0x7]  ;;  %v3390_v23 = vsel %vm11401_vm7, %v3388_v7, %v3389_v0  ;;  %v8563_v14 = vrot.slane %v8503_v19, 11  ;;  %v8508_v56 = vld [vmem:[%s11054_s24 + $0x5b8] sm:$0x7] }
  0xa6   : > { %v8736_v55 = vcombine.low %v3366_v16, %v3369_v17  ;;  %v2183_v51 = vsel %vm11595_vm10, %v2181_v21, %v2182_v43  ;;  %v3380_v29 = vsel %vm11401_vm7, %v8730_v20, %v3379_v38  ;;  %v3387_v63 = vsel %vm11401_vm7, %v8731_v61, %v3386_v24  ;;  %v8674_v20 = vld [vmem:[%s11054_s24 + $0x7e0] sm:$0x3] }
  0xa7   : > { %v8552_v32 = vcombine.low %v2180_v47, %v2183_v51  ;;  %v8738_v15 = vcombine.low %v3380_v29, %v3383_v4  ;;  %v3400_v43 = vrot.slane %v8670_v62, 6  ;;  %v2380_v16 = vrot.slane %v8505_v36, 7  ;;  %v11866_v4 = vld [vmem:[%s13297_s7 + $0xc] sm:$0xf] }
  0xa8   : > { %v3407_v8 = vrot.slane %v8673_v42, 6  ;;  %v2371_v21 = vsel %vm11595_vm10, %v8562_v39, %v2370_v9  ;;  %v8739_v41 = vcombine.low %v3387_v63, %v3390_v23  ;;  %v3410_v51 = vrot.slane %v8674_v20, 6  ;;  %v8509_v9 = vld [vmem:[%s11054_s24 + $0x5d8] sm:$0x8] }
  0xa9   : > { %v3402_v46 = vrot.slane %v3400_v43, 4  ;;  %v2386_v29 = vrot.slane %v2384_v50, 4  ;;  %v2387_v61 = vrot.slane %v8508_v56, 7  ;;  %v2398_v19 = vrot.slane %v8513_v2, 7 }
  0xaa   : > { %9853 = vmatmul.mubr.msk.bf16.gmra.mrb[4].mxu1 %vm691_vm3, %v8548_v58  ;;  %v11812_v58 = vld [vmem:[%s11054_s24 + $0x58c] sm:$0xf]  ;;  %v3409_v47 = vrot.slane %v3407_v8, 4  ;;  %v8565_v42 = vrot.slane %v8509_v9, 11  ;;  %v3880_v2 = vsel %vm716_vm0, %v11830_v33, 0 }
  0xab   : > { %9929 = vmatmul.mubr.msk.bf16.gmra.mrb[40].mxu0 %vm691_vm3, %v8716_v44  ;;  %9856 = vmatprep.mubr.msk.bf16.mxu1 %vm691_vm3, %v8549_v22  ;;  %v3393_v44 = vrot.slane %v8667_v31, 6  ;;  %v8668_v22 = vld [vmem:[%s11054_s24 + $0x790] sm:$0x3]  ;;  %v2377_v10 = vrot.slane %v11812_v58, 7  ;;  %v8568_v31 = vcombine.low %v2371_v21, %v2374_v35  ;;  %v8511_v58 = vld [vmem:[%s11054_s24 + $0x5e0] sm:$0x7]  ;;  %v2388_v37 = vsel %vm11595_vm10, %v2386_v29, %v2387_v61 }
  0xac   : > { %9932 = vmatprep.mubr.msk.bf16.mxu0 %vm691_vm3, %v8717_v13  ;;  %v8737_v13 = vcombine.low %v3373_v53, %v3376_v5  ;;  %v3396_v49 = vrot.slane %v8668_v22, 6  ;;  %v2661_v53 = vsel %vm716_vm0, %v11740_v3, 0  ;;  %v8564_v5 = vrot.slane %v8506_v48, 11  ;;  %v8517_v48 = vld [vmem:[%s11054_s24 + $0x630] sm:$0x7] }
  0xad   : > { %v3395_v45 = vrot.slane %v3393_v44, 4  ;;  %v3394_v17 = vsel %vm11401_vm7, %v8732_v52, %v3393_v44  ;;  %v2379_v60 = vrot.slane %v2377_v10, 4  ;;  %v2378_v0 = vsel %vm11595_vm10, %v8563_v14, %v2377_v10  ;;  %v8512_v52 = vld [vmem:[%s11054_s24 + $0x600] sm:$0x8] }
  0xae   : > { %v2391_v44 = vrot.slane %v8510_v57, 7  ;;  %v2385_v39 = vsel %vm11595_vm10, %v8564_v5, %v2384_v50  ;;  %v3416_v10 = vrot.slane %v3414_v11, 4  ;;  %v2394_v30 = vrot.slane %v8511_v58, 7  ;;  %v10831_v5 = vld [vmem:[%s11054_s24 + $0x380] sm:$0xff]  }
  0xaf   : > { %v3397_v38 = vsel %vm11401_vm7, %v3395_v45, %v3396_v49  ;;  %v2381_v1 = vsel %vm11595_vm10, %v2379_v60, %v2380_v16  ;;  %v8514_v45 = vld [vmem:[%s11054_s24 + $0x608] sm:$0x7]  ;;  %v8566_v63 = vrot.slane %v8512_v52, 11  ;;  %v2400_v23 = vrot.slane %v2398_v19, 4  ;;  %v8515_v60 = vld [vmem:[%s11054_s24 + $0x628] sm:$0x8] }
  0xb0   : > { %v8569_v36 = vcombine.low %v2378_v0, %v2381_v1  ;;  %v2401_v14 = vrot.slane %v8514_v45, 7  ;;  %v2408_v57 = vrot.slane %v8517_v48, 7  ;;  %v8583_v29 = vrot.slane %v8518_v26, 11  ;;  %v8522_v1 = vld [vmem:[%s11054_s24 + $0x67c] sm:$0xf] }
  0xb1   : > { %v2399_v21 = vsel %vm11595_vm10, %v8566_v63, %v2398_v19  ;;  %v8528_v52 = vld [vmem:[%s11054_s24 + $0x6cc] sm:$0xf]  ;;  %v5298_v45 = vsel %vm716_vm0, %v11866_v4, 0  ;;  %v8529_v63 = vld [vmem:[%s11054_s24 + $0x6d0] sm:$0x7] }
  0xb2   : > { %9857 = vmatmul.mubr.msk.bf16.gmra.mrb[8].mxu1 %vm691_vm3, %v8550_v54  ;;  %v8733_v54 = vrot.slane %v8669_v18, 10  ;;  %v2402_v35 = vsel %vm11595_vm10, %v2400_v23, %v2401_v14  ;;  %v12005_v26 = vld [vmem:[%s13292_s2] ss:$0 sm:$0xff] }
  0xb3   : > { %9933 = vmatmul.mubr.msk.bf16.gmra.mrb[44].mxu0 %vm691_vm3, %v8718_v40  ;;  %9860 = vmatprep.mubr.msk.bf16.mxu1 %vm691_vm3, %v8551_v59  ;;  %v8672_v40 = vld [vmem:[%s11054_s24 + $0x7d8] sm:$0xc] }
  0xb4   : > { %9938 = vmatprep.mubr.msk.bf16.mxu0 %vm691_vm3, %v8736_v55  ;;  %v3403_v55 = vrot.slane %v8671_v25, 6  ;;  %v8734_v24 = vrot.slane %v8672_v40, 10  ;;  %v3401_v3 = vsel %vm11401_vm7, %v8733_v54, %v3400_v43  ;;  %v8570_v25 = vcombine.low %v2385_v39, %v2388_v37  ;;  %v8516_v43 = vld [vmem:[%s11054_s24 + $0x62c] sm:$0xf]  ;;  %v10833_v39 = vld [vmem:[%s11054_s24 + $0x3d0] sm:$0xff]  }
  0xb5   : > { %v8572_v54 = vcombine.low %v2399_v21, %v2402_v35  ;;  %v2608_v35 = vrot.slane %v8529_v63, 7  ;;  %v9033_v63 = vld [vmem:[%s11054_s24 + $0x55c] sm:$0x7] }
  0xb6   : > { %v3404_v7 = vsel %vm11401_vm7, %v3402_v46, %v3403_v55  ;;  %v3408_v22 = vsel %vm11401_vm7, %v8734_v24, %v3407_v8  ;;  %v2405_v8 = vrot.slane %v8516_v43, 7  ;;  %v8567_v55 = vrot.slane %v8515_v60, 11  ;;  %v10835_v60 = vld [vmem:[%s11054_s24 + $0x420] sm:$0xff]  }
  0xb7   : > { %v8741_v34 = vcombine.low %v3401_v3, %v3404_v7  ;;  %v8525_v3 = vld [vmem:[%s11054_s24 + $0x6a4] sm:$0xf]  ;;  %v11933_v7 = vld [vmem:[%s13295_s5 + $0x1c] sm:$0xf] }
  0xb8   : > { %v2407_v56 = vrot.slane %v2405_v8, 4  ;;  %v2406_v46 = vsel %vm11595_vm10, %v8567_v55, %v2405_v8  ;;  %v8533_v55 = vld [vmem:[%s11054_s24 + $0x718] sm:$0x8] }
  0xba   : > { %9861 = vmatmul.mubr.msk.bf16.gmra.mrb[12].mxu1 %vm691_vm3, %v8552_v32  ;;  %v2409_v24 = vsel %vm11595_vm10, %v2407_v56, %v2408_v57  ;;  %v9026_v56 = vld [vmem:[%s11054_s24 + $0x508] sm:$0xf] }
  0xbb   : > { %9939 = vmatmul.mubr.msk.bf16.vlgmr.msra.gmra.mrb[32].mxu0 %vm691_vm3, %v8737_v13  ;;  %9866 = vmatprep.mubr.msk.bf16.mxu1 %vm691_vm3, %v8551_v59  ;;  %v8740_v59 = vcombine.low %v3394_v17, %v3397_v38  ;;  %v3411_v13 = vsel %vm11401_vm7, %v3409_v47, %v3410_v51  ;;  %v2392_v38 = vsel %vm11595_vm10, %v8565_v42, %v2391_v44  ;;  %v10830_v47 = vld [vmem:[%s11054_s24 + $0x358] sm:$0xff]  }
  0xbc   : > { %9942 = vmatprep.mubr.msk.bf16.mxu0 %vm691_vm3, %v8738_v15  ;;  %9955 = vmatpush3.bf16.msra.mxu0 %v3698_v28  ;;  %v8677_v15 = vld [vmem:[%s11054_s24 + $0x808] sm:$0x3]  ;;  %v8742_v49 = vcombine.low %v3408_v22, %v3411_v13  ;;  %v2393_v28 = vrot.slane %v2391_v44, 4  ;;  %v8520_v51 = vld [vmem:[%s11054_s24 + $0x658] sm:$0x7]  ;;  %v2598_v22 = vrot.slane %v8525_v3, 7 }
  0xbd   : > { %10742 = vmatprep.subr.msk.bf16.mxu0 %vm716_vm0, %v11830_v33  ;;  %v3417_v18 = vrot.slane %v8677_v15, 6  ;;  %v2587_v0 = vrot.slane %v8520_v51, 7  ;;  %v2591_v33 = vrot.slane %v8522_v1, 7  ;;  %v8521_v44 = vld [vmem:[%s11054_s24 + $0x678] sm:$0x8]  ;;  %v10832_v13 = vld [vmem:[%s11054_s24 + $0x3a8] sm:$0xff]  }
  0xbe   : > { %v2395_v40 = vsel %vm11595_vm10, %v2393_v28, %v2394_v30  ;;  %v8526_v15 = vld [vmem:[%s11054_s24 + $0x6a8] sm:$0x7]  ;;  %v8584_v19 = vrot.slane %v8521_v44, 11  ;;  %v8527_v30 = vld [vmem:[%s11054_s24 + $0x6c8] sm:$0x8]  ;;  %v8588_v3 = vrot.slane %v8533_v55, 11 }
  0xbf   : > { %v3418_v17 = vsel %vm11401_vm7, %v3416_v10, %v3417_v18  ;;  %v8571_v20 = vcombine.low %v2392_v38, %v2395_v40  ;;  %v2601_v10 = vrot.slane %v8526_v15, 7  ;;  %v8531_v18 = vld [vmem:[%s11054_s24 + $0x6f4] sm:$0xf]  ;;  %v8532_v38 = vld [vmem:[%s11054_s24 + $0x6f8] sm:$0x7]  ;;  %v8586_v8 = vrot.slane %v8527_v30, 11 }
  0xc0   : > { %v2592_v42 = vsel %vm11595_vm10, %v8584_v19, %v2591_v33  ;;  %v2612_v43 = vrot.slane %v8531_v18, 7 }
  0xc2   : > { %9867 = vmatmul.mubr.msk.bf16.vlgmr.msra.gmra.mrb[0].mxu1 %vm691_vm3, %v8552_v32  ;;  %v8675_v32 = vld [vmem:[%s11054_s24 + $0x800] sm:$0xc] }
  0xc3   : > { %9943 = vmatmul.mubr.msk.bf16.gmra.mrb[36].mxu0 %vm691_vm3, %v8739_v41  ;;  %9883 = vmatpush3.bf16.msra.mxu1 %v2661_v53  ;;  %v8735_v62 = vrot.slane %v8675_v32, 10  ;;  %v10829_v41 = vld [vmem:[%s11054_s24 + $0x330] sm:$0xff]   ;;  %v8573_v53 = vcombine.low %v2406_v46, %v2409_v24  ;;  %v8524_v32 = vld [vmem:[%s11054_s24 + $0x6a0] sm:$0x8]  ;;  %v8535_v46 = vld [vmem:[%s11054_s24 + $0x720] sm:$0x7] }
  0xc4   : > { %9946 = vmatprep.mubr.msk.bf16.mxu0 %vm691_vm3, %v8740_v59  ;;  %9870 = vmatprep.mubr.msk.bf16.mxu1 %vm691_vm3, %v8568_v31  ;;  %v8519_v59 = vld [vmem:[%s11054_s24 + $0x654] sm:$0xf] }
  0xc5   : > { %10747 = vmatprep.subr.msk.bf16.mxu1 %vm716_vm0, %v11866_v4  ;;  %v3415_v16 = vsel %vm11401_vm7, %v8735_v62, %v3414_v11  ;;  %v2584_v31 = vrot.slane %v8519_v59, 7  ;;  %v8523_v11 = vld [vmem:[%s11054_s24 + $0x680] sm:$0x7]  ;;  %v2600_v62 = vrot.slane %v2598_v22, 4  ;;  %v2605_v4 = vrot.slane %v8528_v52, 7 }
  0xc6   : > { %v8743_v50 = vcombine.low %v3415_v16, %v3418_v17  ;;  %v10834_v16 = vld [vmem:[%s11054_s24 + $0x3f8] sm:$0xff]   ;;  %v8530_v17 = vld [vmem:[%s11054_s24 + $0x6f0] sm:$0x8] }
  0xc7   : > { %v2586_v61 = vrot.slane %v2584_v31, 4  ;;  %v2585_v9 = vsel %vm11595_vm10, %v8583_v29, %v2584_v31  ;;  %v2602_v14 = vsel %vm11595_vm10, %v2600_v62, %v2601_v10  ;;  %v2607_v21 = vrot.slane %v2605_v4, 4  ;;  %v9025_v31 = vld [vmem:[%s11054_s24 + $0x504] sm:$0x8]  ;;  %v9032_v52 = vld [vmem:[%s11054_s24 + $0x558] sm:$0xf] }
  0xc8   : > { %v2606_v57 = vsel %vm11595_vm10, %v8586_v8, %v2605_v4  ;;  %v9030_v10 = vld [vmem:[%s11054_s24 + $0x534] sm:$0x7] }
  0xc9   : > { %v2588_v58 = vsel %vm11595_vm10, %v2586_v61, %v2587_v0  ;;  %v2609_v59 = vsel %vm11595_vm10, %v2607_v21, %v2608_v35  ;;  %v10836_v0 = vld [vmem:[%s11054_s24 + $0x448] sm:$0xff]   ;;  %v5205_v35 = vrot.slane %v9030_v10, 7 }
  0xca   : > { %9871 = vmatmul.mubr.msk.bf16.gmra.mrb[4].mxu1 %vm691_vm3, %v8569_v36  ;;  %v8589_v37 = vcombine.low %v2585_v9, %v2588_v58  ;;  %v2593_v36 = vrot.slane %v2591_v33, 4  ;;  %v8592_v61 = vcombine.low %v2606_v57, %v2609_v59  ;;  %v2622_v9 = vrot.slane %v8535_v46, 7  ;;  %v10837_v58 = vld [vmem:[%s11054_s24 + $0x510] sm:$0xff]  }
  0xcb   : > { %9947 = vmatmul.mubr.msk.bf16.gmra.mrb[40].mxu0 %vm691_vm3, %v8741_v34  ;;  %9874 = vmatprep.mubr.msk.bf16.mxu1 %vm691_vm3, %v8570_v25  ;;  %v2594_v34 = vrot.slane %v8523_v11, 7  ;;  %v11966_v25 = vld [vmem:[%s13297_s7] sm:$0xf]  ;;  %v4062_v59 = vsel %vm716_vm0, %v11933_v7, 0 }
  0xcc   : > { %9950 = vmatprep.mubr.msk.bf16.mxu0 %vm691_vm3, %v8742_v49  ;;  %v8585_v49 = vrot.slane %v8524_v32, 11 }
  0xcd   : > { %v2595_v28 = vsel %vm11595_vm10, %v2593_v36, %v2594_v34  ;;  %v9028_v34 = vld [vmem:[%s11054_s24 + $0x52c] sm:$0x8] }
  0xce   : > { %v2599_v23 = vsel %vm11595_vm10, %v8585_v49, %v2598_v22  ;;  %v8590_v40 = vcombine.low %v2592_v42, %v2595_v28  ;;  %v9031_v42 = vld [vmem:[%s11054_s24 + $0x554] sm:$0x8] }
  0xcf   : > { %v8591_v48 = vcombine.low %v2599_v23, %v2602_v14  ;;  %v5209_v23 = vrot.slane %v9032_v52, 7 }
  0xd1   : > { %v5211_v57 = vrot.slane %v5209_v23, 4 }
  0xd2   : > { %9875 = vmatmul.mubr.msk.bf16.gmra.mrb[8].mxu1 %vm691_vm3, %v8571_v20  ;;  %v8587_v20 = vrot.slane %v8530_v17, 11  ;;  %v9083_v17 = vrot.slane %v9028_v34, 11  ;;  %v10841_v34 = vld [vmem:[%s11054_s24 + $0x5b0] sm:$0xff]  }
  0xd3   : > { %9951 = vmatmul.mubr.msk.bf16.gmra.mrb[44].mxu0 %vm691_vm3, %v8743_v50  ;;  %9878 = vmatprep.mubr.msk.bf16.mxu1 %vm691_vm3, %v8572_v54  ;;  %v8534_v50 = vld [vmem:[%s11054_s24 + $0x71c] sm:$0xf] }
  0xd4   : > { %9956 = vmatprep.mubr.msk.bf16.mxu0 %vm691_vm3, %v10829_v41  ;;  %v2614_v41 = vrot.slane %v2612_v43, 4  ;;  %v2619_v24 = vrot.slane %v8534_v50, 7 }
  0xd6   : > { %v2621_v33 = vrot.slane %v2619_v24, 4  ;;  %v2620_v49 = vsel %vm11595_vm10, %v8588_v3, %v2619_v24  ;;  %v12098_v24 = vld [vmem:[%s11054_s24 + $0x5a8] sm:$0xf] }
  0xd8   : > { %v2623_v62 = vsel %vm11595_vm10, %v2621_v33, %v2622_v9  ;;  %v9037_v33 = vld [vmem:[%s11054_s24 + $0x5a4] sm:$0x8]  ;;  %v9039_v9 = vld [vmem:[%s11054_s24 + $0x5ac] sm:$0x7] }
  0xda   : > { %9879 = vmatmul.mubr.msk.bf16.gmra.mrb[12].mxu1 %vm691_vm3, %v8573_v53 }
  0xdb   : > { %9957 = vmatmul.mubr.msk.bf16.vlgmr.msra.gmra.mrb[32].mxu0 %vm691_vm3, %v10830_v47  ;;  %9884 = vmatprep.mubr.msk.bf16.mxu1 %vm691_vm3, %v8572_v54  ;;  %v2615_v54 = vrot.slane %v8532_v38, 7  ;;  %v2613_v47 = vsel %vm11595_vm10, %v8587_v20, %v2612_v43  ;;  %v8594_v43 = vcombine.low %v2620_v49, %v2623_v62  ;;  %v10839_v38 = vld [vmem:[%s11054_s24 + $0x560] sm:$0xff]   ;;  %v5446_v62 = vsel %vm716_vm0, %v11966_v25, 0 }
  0xdc   : > { %9960 = vmatprep.mubr.msk.bf16.mxu0 %vm691_vm3, %v10831_v5  ;;  %9973 = vmatpush3.bf16.msra.mxu0 %v3880_v2  ;;  %v5195_v5 = vrot.slane %v9026_v56, 7 }
  0xdd   : > { %10743 = vmatprep.subr.msk.bf16.mxu0 %vm716_vm0, %v11933_v7  ;;  %v2616_v51 = vsel %vm11595_vm10, %v2614_v41, %v2615_v54  ;;  %v5212_v54 = vrot.slane %v9033_v63, 7  ;;  %v12435_v7 = vld [vmem:[%s11054_s24 + $0x428] sm:$0xf] }
  0xde   : > { %v8593_v22 = vcombine.low %v2613_v47, %v2616_v51  ;;  %v9034_v47 = vld [vmem:[%s11054_s24 + $0x57c] sm:$0x8] }
  0xdf   : > { %v5213_v3 = vsel %vm11595_vm10, %v5211_v57, %v5212_v54 }
  0xe2   : > { %9885 = vmatmul.mubr.msk.bf16.vlgmr.msra.gmra.mrb[0].mxu1 %vm691_vm3, %v8573_v53  ;;  %v9027_v53 = vld [vmem:[%s11054_s24 + $0x50c] sm:$0x7] }
  0xe3   : > { %9961 = vmatmul.mubr.msk.bf16.gmra.mrb[36].mxu0 %vm691_vm3, %v10832_v13  ;;  %10063 = vmatpush3.bf16.msra.mxu1 %v5298_v45  ;;  %v12029_v13 = vld [vmem:[%s11054_s24 + $0x530] sm:$0xf]  ;;  %v5198_v19 = vrot.slane %v9027_v53, 7  ;;  %v12491_v53 = vld [vmem:[%s11054_s24 + $0x8a0] sm:$0xf] }
  0xe4   : > { %9964 = vmatprep.mubr.msk.bf16.mxu0 %vm691_vm3, %v10833_v39  ;;  %9888 = vmatprep.mubr.msk.bf16.mxu1 %vm691_vm3, %v8589_v37  ;;  %v9082_v39 = vrot.slane %v9025_v31, 11  ;;  %v5197_v37 = vrot.slane %v5195_v5, 4  ;;  %v5202_v18 = vrot.slane %v12029_v13, 7  ;;  %v12103_v31 = vld [vmem:[%s13295_s5 + $0x8] sm:$0xf] }
  0xe5   : > { %10748 = vmatprep.subr.msk.bf16.mxu1 %vm716_vm0, %v11966_v25 }
  0xe6   : > { %v5196_v28 = vsel %vm11595_vm10, %v9082_v39, %v5195_v5  ;;  %v5199_v30 = vsel %vm11595_vm10, %v5197_v37, %v5198_v19  ;;  %v5204_v21 = vrot.slane %v5202_v18, 4  ;;  %v5203_v5 = vsel %vm11595_vm10, %v9083_v17, %v5202_v18  ;;  %v12145_v18 = vld [vmem:[%s11054_s24 + $0x5d0] sm:$0xf] }
  0xe7   : > { %v9090_v41 = vcombine.low %v5196_v28, %v5199_v30  ;;  %v9086_v30 = vrot.slane %v9037_v33, 11 }
  0xea   : > { %9889 = vmatmul.mubr.msk.bf16.gmra.mrb[4].mxu1 %vm691_vm3, %v8590_v40 }
  0xeb   : > { %9965 = vmatmul.mubr.msk.bf16.gmra.mrb[40].mxu0 %vm691_vm3, %v10834_v16  ;;  %9892 = vmatprep.mubr.msk.bf16.mxu1 %vm691_vm3, %v8591_v48  ;;  %v10838_v16 = vld [vmem:[%s11054_s24 + $0x538] sm:$0xff]   ;;  %v12077_v48 = vld [vmem:[%s11054_s24 + $0x580] sm:$0xf] }
  0xec   : > { %9968 = vmatprep.mubr.msk.bf16.mxu0 %vm691_vm3, %v10835_v60  ;;  %v9084_v60 = vrot.slane %v9031_v42, 11  ;;  %v5216_v51 = vrot.slane %v12077_v48, 7  ;;  %v9043_v48 = vld [vmem:[%s11054_s24 + $0x5f4] sm:$0x8] }
  0xee   : > { %v9724_v29 = vpop.f32.mrb[0].mxu0  ;;  %v5218_v37 = vrot.slane %v5216_v51, 4 }
  0xef   : > { %v12022_v1 = vadd.f32 %v9724_v29, %v12005_v26  ;;  %v754_v2 = vpop.f32.mrb[1].mxu0  ;;  %v5206_v29 = vsel %vm11595_vm10, %v5204_v21, %v5205_v35  ;;  %v9042_v21 = vld [vmem:[%s11054_s24 + $0x5d4] sm:$0x7]  ;;  %v5230_v35 = vrot.slane %v12145_v18, 7  ;;  %v9001_v18 = vld [vmem:[%s11054_s24 + $0x234] sm:$0x8] }
  0xf0   : > { %v12026_v44 = vadd.f32 %v12005_v26, %v754_v2  ;;  %v9725_v11 = vpop.f32.mrb[2].mxu0  ;;  %v5210_v2 = vsel %vm11595_vm10, %v9084_v60, %v5209_v23  ;;  %v9091_v39 = vcombine.low %v5203_v5, %v5206_v29  ;;  %v5226_v23 = vrot.slane %v9039_v9, 7  ;;  %v9060_v60 = vld [vmem:[%s11054_s24 + $0x854] sm:$0x7] }
  0xf1   : > { %7828 = vst.msk [vmem:[%s12018_s18 + $0x10] sm:$0xff] %vm7237_vm11, %v12022_v1  ;;  %v12035_v32 = vadd.f32 %v9725_v11, %v12005_v26  ;;  %v757_v15 = vpop.f32.mrb[3].mxu0  ;;  %v9092_v10 = vcombine.low %v5210_v2, %v5213_v3  ;;  %v10843_v2 = vld [vmem:[%s11054_s24 + $0x600] sm:$0xff]  }
  0xf2   : > { %7826 = vst.msk [vmem:[%s12018_s18] sm:$0xff] %vm7237_vm11, %v12026_v44  ;;  %v12041_v36 = vadd.f32 %v12005_v26, %v757_v15  ;;  %9893 = vmatmul.mubr.msk.bf16.gmra.mrb[8].mxu1 %vm691_vm3, %v8592_v61  ;;  %v10840_v61 = vld [vmem:[%s11054_s24 + $0x588] sm:$0xff]  }
  0xf3   : > { %9969 = vmatmul.mubr.msk.bf16.gmra.mrb[44].mxu0 %vm691_vm3, %v10836_v0  ;;  %7829 = vst.msk [vmem:[%s12018_s18 + $0x18] sm:$0xff] %vm7237_vm11, %v12035_v32  ;;  %9896 = vmatprep.mubr.msk.bf16.mxu1 %vm691_vm3, %v8593_v22  ;;  %v9036_v0 = vld [vmem:[%s11054_s24 + $0x584] sm:$0x7]  ;;  %v9085_v22 = vrot.slane %v9034_v47, 11  ;;  %v9047_v47 = vld [vmem:[%s11054_s24 + $0x620] sm:$0xf] }
  0xf4   : > { %9974 = vmatprep.mubr.msk.bf16.mxu0 %vm691_vm3, %v10837_v58  ;;  %7827 = vst.msk [vmem:[%s12018_s18 + $0x8] sm:$0xff] %vm7237_vm11, %v12041_v36  ;;  %v5223_v58 = vrot.slane %v12098_v24, 7  ;;  %v5219_v19 = vrot.slane %v9036_v0, 7  ;;  %v10842_v24 = vld [vmem:[%s11054_s24 + $0x5d8] sm:$0xff]   ;;  %v5233_v0 = vrot.slane %v9042_v21, 7 }
  0xf5   : > { %v9003_v21 = vld [vmem:[%s11054_s24 + $0x23c] sm:$0x7] }
  0xf6   : > { %v9728_v14 = vpop.f32.mrb[4].mxu0  ;;  %v5225_v63 = vrot.slane %v5223_v58, 4 }
  0xf7   : > { %v12074_v40 = vadd.f32 %v9728_v14, %v12005_v26  ;;  %v770_v8 = vpop.f32.mrb[5].mxu0  ;;  %v9040_v14 = vld [vmem:[%s11054_s24 + $0x5cc] sm:$0x8] }
  0xf8   : > { %v12080_v50 = vadd.f32 %v12005_v26, %v770_v8  ;;  %v9729_v20 = vpop.f32.mrb[6].mxu0  ;;  %v5220_v8 = vsel %vm11595_vm10, %v5218_v37, %v5219_v19  ;;  %v5227_v54 = vsel %vm11595_vm10, %v5225_v63, %v5226_v23  ;;  %v9087_v29 = vrot.slane %v9040_v14, 11  ;;  %v9048_v19 = vld [vmem:[%s11054_s24 + $0x624] sm:$0x7]  ;;  %v10844_v63 = vld [vmem:[%s11054_s24 + $0x628] sm:$0xff]  }
  0xf9   : > { %7832 = vst.msk [vmem:[%s12018_s18 + $0x30] sm:$0xff] %vm7237_vm11, %v12074_v40  ;;  %v12086_v55 = vadd.f32 %v9729_v20, %v12005_v26  ;;  %v773_v56 = vpop.f32.mrb[7].mxu0  ;;  %v9045_v20 = vld [vmem:[%s11054_s24 + $0x5fc] sm:$0x7] }
  0xfa   : > { %7830 = vst.msk [vmem:[%s12018_s18 + $0x20] sm:$0xff] %vm7237_vm11, %v12080_v50  ;;  %v12094_v46 = vadd.f32 %v12005_v26, %v773_v56  ;;  %9897 = vmatmul.mubr.msk.bf16.gmra.mrb[12].mxu1 %vm691_vm3, %v8594_v43  ;;  %v9044_v43 = vld [vmem:[%s11054_s24 + $0x5f8] sm:$0xf] }
  0xfb   : > { %9975 = vmatmul.mubr.msk.bf16.vlgmr.msra.gmra.mrb[32].mxu0 %vm691_vm3, %v10838_v16  ;;  %7833 = vst.msk [vmem:[%s12018_s18 + $0x38] sm:$0xff] %vm7237_vm11, %v12086_v55  ;;  %10064 = vmatprep.mubr.msk.bf16.mxu1 %vm691_vm3, %v9090_v41  ;;  %v12165_v16 = vld [vmem:[%s13297_s7 + $0x18] sm:$0xf]  ;;  %v5224_v41 = vsel %vm11595_vm10, %v9086_v30, %v5223_v58  ;;  %v5237_v56 = vrot.slane %v9044_v43, 7  ;;  %v9088_v58 = vrot.slane %v9043_v48, 11 }
  0xfc   : > { %9978 = vmatprep.mubr.msk.bf16.mxu0 %vm691_vm3, %v10839_v38  ;;  %7831 = vst.msk [vmem:[%s12018_s18 + $0x28] sm:$0xff] %vm7237_vm11, %v12094_v46  ;;  %9991 = vmatpush3.bf16.msra.mxu0 %v4062_v59  ;;  %v5217_v38 = vsel %vm11595_vm10, %v9085_v22, %v5216_v51  ;;  %v9094_v9 = vcombine.low %v5224_v41, %v5227_v54  ;;  %v9046_v22 = vld [vmem:[%s11054_s24 + $0x61c] sm:$0x8]  ;;  %v9073_v41 = vrot.slane %v9001_v18, 11  ;;  %v9008_v54 = vld [vmem:[%s11054_s24 + $0x288] sm:$0xf] }
  0xfd   : > { %10744 = vmatprep.subr.msk.bf16.mxu0 %vm716_vm0, %v12103_v31  ;;  %v9093_v59 = vcombine.low %v5217_v38, %v5220_v8  ;;  %v5239_v37 = vrot.slane %v5237_v56, 4  ;;  %v9089_v23 = vrot.slane %v9046_v22, 11  ;;  %v5238_v14 = vsel %vm11595_vm10, %v9088_v58, %v5237_v56  ;;  %v10845_v8 = vld [vmem:[%s11054_s24 + $0x6f0] sm:$0xff]   ;;  %v10847_v18 = vld [vmem:[%s11054_s24 + $0x740] sm:$0xff]  }
  0xfe   : > { %v9732_v11 = vpop.f32.mrb[8].mxu0  ;;  %v5247_v38 = vrot.slane %v9048_v19, 7 }
  0xff   : > { %v12136_v13 = vadd.f32 %v9732_v11, %v12005_v26  ;;  %v786_v15 = vpop.f32.mrb[9].mxu0  ;;  %v5240_v11 = vrot.slane %v9045_v20, 7  ;;  %v9005_v20 = vld [vmem:[%s11054_s24 + $0x260] sm:$0xf] }
 0x100   : > { %v12140_v52 = vadd.f32 %v12005_v26, %v786_v15  ;;  %v9733_v49 = vpop.f32.mrb[10].mxu0  ;;  %v5120_v56 = vrot.slane %v9005_v20, 7  ;;  %v9012_v20 = vld [vmem:[%s11054_s24 + $0x2b4] sm:$0x7] }
 0x101   : > { %13322 = vst [vmem:[#allocation3_spill] sm:$0xff] %v12136_v13  ;;  %7836 = vst.msk [vmem:[%s12018_s18 + $0x50] sm:$0xff] %vm7237_vm11, %v12136_v13  ;;  %v12151_v42 = vadd.f32 %v9733_v49, %v12005_v26  ;;  %v789_v28 = vpop.f32.mrb[11].mxu0  ;;  %v5241_v43 = vsel %vm11595_vm10, %v5239_v37, %v5240_v11  ;;  %v10846_v11 = vld [vmem:[%s11054_s24 + $0x718] sm:$0xff]  }
 0x102   : > { %7834 = vst.msk [vmem:[%s12018_s18 + $0x40] sm:$0xff] %vm7237_vm11, %v12140_v52  ;;  %v12157_v25 = vadd.f32 %v12005_v26, %v789_v28  ;;  %10065 = vmatmul.mubr.msk.bf16.vlgmr.msra.gmra.mrb[16].mxu1 %vm691_vm3, %v9091_v39  ;;  %v5231_v28 = vsel %vm11595_vm10, %v9087_v29, %v5230_v35  ;;  %v5122_v22 = vrot.slane %v5120_v56, 4 }
 0x103   : > { %9979 = vmatmul.mubr.msk.bf16.gmra.mrb[36].mxu0 %vm691_vm3, %v10840_v61  ;;  %7837 = vst.msk [vmem:[%s12018_s18 + $0x58] sm:$0xff] %vm7237_vm11, %v12151_v42  ;;  %10081 = vmatpush3.bf16.msra.mxu1 %v5446_v62  ;;  %v5232_v61 = vrot.slane %v5230_v35, 4  ;;  %v9002_v62 = vld [vmem:[%s11054_s24 + $0x238] sm:$0xf] }
 0x104   : > { %9982 = vmatprep.mubr.msk.bf16.mxu0 %vm691_vm3, %v10841_v34  ;;  %7835 = vst.msk [vmem:[%s12018_s18 + $0x48] sm:$0xff] %vm7237_vm11, %v12157_v25  ;;  %10068 = vmatprep.mubr.msk.bf16.mxu1 %vm691_vm3, %v9092_v10  ;;  %v5244_v34 = vrot.slane %v9047_v47, 7  ;;  %v5113_v48 = vrot.slane %v9002_v62, 7  ;;  %v5116_v47 = vrot.slane %v9003_v21, 7 }
 0x105   : > { %10749 = vmatprep.subr.msk.bf16.mxu1 %vm716_vm0, %v12165_v16  ;;  %v5234_v30 = vsel %vm11595_vm10, %v5232_v61, %v5233_v0  ;;  %v9007_v61 = vld [vmem:[%s11054_s24 + $0x284] sm:$0x8]  ;;  %v9009_v0 = vld [vmem:[%s11054_s24 + $0x28c] sm:$0x7] }
 0x106   : > { %v9736_v57 = vpop.f32.mrb[12].mxu0  ;;  %v5246_v35 = vrot.slane %v5244_v34, 4  ;;  %v5115_v29 = vrot.slane %v5113_v48, 4  ;;  %v9075_v37 = vrot.slane %v9007_v61, 11  ;;  %v5130_v19 = vrot.slane %v9009_v0, 7  ;;  %v10849_v61 = vld [vmem:[%s11054_s24 + $0x790] sm:$0xff]  }
 0x107   : > { %v12197_v51 = vadd.f32 %v9736_v57, %v12005_v26  ;;  %v802_v5 = vpop.f32.mrb[13].mxu0  ;;  %v9095_v57 = vcombine.low %v5231_v28, %v5234_v30  ;;  %v5114_v62 = vsel %vm11595_vm10, %v9073_v41, %v5113_v48  ;;  %v4380_v30 = vsel %vm716_vm0, %v12103_v31, 0  ;;  %v9010_v48 = vld [vmem:[%s11054_s24 + $0x2ac] sm:$0x8]  ;;  %v9017_v0 = vld [vmem:[%s11054_s24 + $0x300] sm:$0xf] }
 0x108   : > { %v12201_v3 = vadd.f32 %v12005_v26, %v802_v5  ;;  %v9737_v33 = vpop.f32.mrb[14].mxu0  ;;  %v9006_v5 = vld [vmem:[%s11054_s24 + $0x264] sm:$0x7] }
 0x109   : > { %13323 = vst [vmem:[#allocation4_spill] sm:$0xff] %v12197_v51  ;;  %7840 = vst.msk [vmem:[%s12018_s18 + $0x70] sm:$0xff] %vm7237_vm11, %v12197_v51  ;;  %v12208_v15 = vadd.f32 %v9737_v33, %v12005_v26  ;;  %v805_v39 = vpop.f32.mrb[15].mxu0  ;;  %v5245_v33 = vsel %vm11595_vm10, %v9089_v23, %v5244_v34  ;;  %v5117_v34 = vsel %vm11595_vm10, %v5115_v29, %v5116_v47  ;;  %v5137_v29 = vrot.slane %v9012_v20, 7 }
 0x10a   : > { %13324 = vst [vmem:[#allocation5_spill] sm:$0xff] %v12201_v3  ;;  %7838 = vst.msk [vmem:[%s12018_s18 + $0x60] sm:$0xff] %vm7237_vm11, %v12201_v3  ;;  %v12215_v49 = vadd.f32 %v12005_v26, %v805_v39  ;;  %10069 = vmatmul.mubr.msk.bf16.gmra.mrb[20].mxu1 %vm691_vm3, %v9093_v59  ;;  %v9004_v59 = vld [vmem:[%s11054_s24 + $0x25c] sm:$0x8]  ;;  %v5123_v39 = vrot.slane %v9006_v5, 7  ;;  %v9076_v5 = vrot.slane %v9010_v48, 11 }
 0x10b   : > { %13325 = vst [vmem:[#allocation6_spill] sm:$0xff] %v12208_v15  ;;  %9983 = vmatmul.mubr.msk.bf16.gmra.mrb[40].mxu0 %vm691_vm3, %v10842_v24  ;;  %7841 = vst.msk [vmem:[%s12018_s18 + $0x78] sm:$0xff] %vm7237_vm11, %v12208_v15  ;;  %10072 = vmatprep.mubr.msk.bf16.mxu1 %vm691_vm3, %v9094_v9  ;;  %v9096_v24 = vcombine.low %v5238_v14, %v5241_v43  ;;  %v5248_v9 = vsel %vm11595_vm10, %v5246_v35, %v5247_v38  ;;  %v9074_v58 = vrot.slane %v9004_v59, 11  ;;  %v9014_v14 = vld [vmem:[%s11054_s24 + $0x2d8] sm:$0xf] }
 0x10c   : > { %13326 = vst [vmem:[#allocation7_spill] sm:$0xff] %v12215_v49  ;;  %9986 = vmatprep.mubr.msk.bf16.mxu0 %vm691_vm3, %v10843_v2  ;;  %7839 = vst.msk [vmem:[%s12018_s18 + $0x68] sm:$0xff] %vm7237_vm11, %v12215_v49  ;;  %v5127_v2 = vrot.slane %v9008_v54, 7  ;;  %v9097_v23 = vcombine.low %v5245_v33, %v5248_v9  ;;  %v9106_v43 = vcombine.low %v5114_v62, %v5117_v34  ;;  %v12271_v38 = vld [vmem:[%s13295_s5 + $0x14] sm:$0xf]  ;;  %v5141_v35 = vrot.slane %v9014_v14, 7 }
 0x10d   : > { %v5121_v31 = vsel %vm11595_vm10, %v9074_v58, %v5120_v56  ;;  %v5124_v21 = vsel %vm11595_vm10, %v5122_v22, %v5123_v39  ;;  %v9015_v59 = vld [vmem:[%s11054_s24 + $0x2dc] sm:$0x7]  ;;  %v5676_v22 = vsel %vm716_vm0, %v12165_v16, 0  ;;  %v9020_v39 = vld [vmem:[%s11054_s24 + $0x328] sm:$0xf] }
 0x10e   : > { %v5129_v28 = vrot.slane %v5127_v2, 4  ;;  %v5128_v41 = vsel %vm11595_vm10, %v9075_v37, %v5127_v2  ;;  %v9107_v47 = vcombine.low %v5121_v31, %v5124_v21  ;;  %v5143_v9 = vrot.slane %v5141_v35, 4  ;;  %v8852_v37 = vld [vmem:[%s11054_s24 + $0x338] sm:$0xf]  ;;  %v12303_v62 = vld [vmem:[%s13297_s7 + $0x4] sm:$0xf] }
 0x10f   : > { %v5144_v58 = vrot.slane %v9015_v59, 7  ;;  %v5155_v14 = vrot.slane %v9020_v39, 7  ;;  %v12320_v31 = vld [vmem:[%s11054_s24 + $0x350] sm:$0xf]  ;;  %v8851_v21 = vld [vmem:[%s11054_s24 + $0x334] sm:$0xc] }
 0x110   : > { %v5131_v54 = vsel %vm11595_vm10, %v5129_v28, %v5130_v19  ;;  %v5148_v19 = vrot.slane %v9017_v0, 7  ;;  %v8853_v48 = vld [vmem:[%s11054_s24 + $0x33c] sm:$0x3]  ;;  %v8854_v39 = vld [vmem:[%s11054_s24 + $0x35c] sm:$0xc] }
 0x111   : > { %v9108_v2 = vcombine.low %v5128_v41, %v5131_v54  ;;  %v9021_v54 = vld [vmem:[%s11054_s24 + $0x32c] sm:$0x7]  ;;  %v4280_v0 = vrot.slane %v8853_v48, 6 }
 0x112   : > { %10073 = vmatmul.mubr.msk.bf16.gmra.mrb[24].mxu1 %vm691_vm3, %v9095_v57  ;;  %v9013_v57 = vld [vmem:[%s11054_s24 + $0x2d4] sm:$0x8]  ;;  %v5150_v20 = vrot.slane %v5148_v19, 4 }
 0x113   : > { %9987 = vmatmul.mubr.msk.bf16.gmra.mrb[44].mxu0 %vm691_vm3, %v10844_v63  ;;  %10076 = vmatprep.mubr.msk.bf16.mxu1 %vm691_vm3, %v9096_v24  ;;  %v9011_v63 = vld [vmem:[%s11054_s24 + $0x2b0] sm:$0xf]  ;;  %v10848_v24 = vld [vmem:[%s11054_s24 + $0x768] sm:$0xff]   ;;  %v9077_v33 = vrot.slane %v9013_v57, 11 }
 0x114   : > { %9992 = vmatprep.mubr.msk.bf16.mxu0 %vm691_vm3, %v10845_v8  ;;  %v5134_v8 = vrot.slane %v9011_v63, 7 }
 0x115   : > { %v5142_v63 = vsel %vm11595_vm10, %v9077_v33, %v5141_v35  ;;  %v9019_v35 = vld [vmem:[%s11054_s24 + $0x324] sm:$0x8] }
 0x116   : > { %v5136_v56 = vrot.slane %v5134_v8, 4  ;;  %v5135_v34 = vsel %vm11595_vm10, %v9076_v5, %v5134_v8  ;;  %v10851_v8 = vld [vmem:[%s11054_s24 + $0x7e0] sm:$0xff]   ;;  %v9079_v33 = vrot.slane %v9019_v35, 11 }
 0x117   : > { %v8855_v5 = vld [vmem:[%s11054_s24 + $0x360] sm:$0xf]  ;;  %v8857_v35 = vld [vmem:[%s11054_s24 + $0x384] sm:$0xc] }
 0x118   : > { %v5138_v16 = vsel %vm11595_vm10, %v5136_v56, %v5137_v29  ;;  %v5162_v56 = vrot.slane %v12320_v31, 7  ;;  %v8924_v29 = vrot.slane %v8851_v21, 10 }
 0x119   : > { %v9109_v57 = vcombine.low %v5135_v34, %v5138_v16  ;;  %v4284_v34 = vrot.slane %v8855_v5, 6 }
 0x11a   : > { %10077 = vmatmul.mubr.msk.bf16.gmra.mrb[28].mxu1 %vm691_vm3, %v9097_v23  ;;  %v5145_v23 = vsel %vm11595_vm10, %v5143_v9, %v5144_v58  ;;  %v5157_v9 = vrot.slane %v5155_v14, 4  ;;  %v5158_v58 = vrot.slane %v9021_v54, 7  ;;  %v5164_v21 = vrot.slane %v5162_v56, 4  ;;  %v8859_v54 = vld [vmem:[%s11054_s24 + $0x38c] sm:$0x3] }
 0x11b   : > { %9993 = vmatmul.mubr.msk.bf16.vlgmr.msra.gmra.mrb[32].mxu0 %vm691_vm3, %v10846_v11  ;;  %10082 = vmatprep.mubr.msk.bf16.mxu1 %vm691_vm3, %v9106_v43  ;;  %v9016_v11 = vld [vmem:[%s11054_s24 + $0x2fc] sm:$0x8]  ;;  %v4277_v43 = vrot.slane %v8852_v37, 6  ;;  %v9110_v59 = vcombine.low %v5142_v63, %v5145_v23  ;;  %v8856_v37 = vld [vmem:[%s11054_s24 + $0x364] sm:$0x3] }
 0x11c   : > { %9996 = vmatprep.mubr.msk.bf16.mxu0 %vm691_vm3, %v10847_v18  ;;  %10009 = vmatpush3.bf16.msra.mxu0 %v4380_v30  ;;  %v9018_v18 = vld [vmem:[%s11054_s24 + $0x304] sm:$0x7]  ;;  %v9078_v28 = vrot.slane %v9016_v11, 11  ;;  %v10850_v30 = vld [vmem:[%s11054_s24 + $0x7b8] sm:$0xff]   ;;  %v12334_v11 = vld [vmem:[%s11054_s24 + $0x388] sm:$0xf] }
 0x11d   : > { %10745 = vmatprep.subr.msk.bf16.mxu0 %vm716_vm0, %v12271_v38  ;;  %v5151_v41 = vrot.slane %v9018_v18, 7  ;;  %v9049_v23 = vld [vmem:[%s11054_s24 + $0x7d4] sm:$0x8]  ;;  %v4278_v48 = vsel %vm11401_vm7, %v8924_v29, %v4277_v43 }
 0x11e   : > { %v5149_v16 = vsel %vm11595_vm10, %v9078_v28, %v5148_v19  ;;  %v4291_v28 = vrot.slane %v12334_v11, 6  ;;  %v8926_v11 = vrot.slane %v8857_v35, 10 }
 0x11f   : > { %v5152_v18 = vsel %vm11595_vm10, %v5150_v20, %v5151_v41  ;;  %v5159_v20 = vsel %vm11595_vm10, %v5157_v9, %v5158_v58  ;;  %v8925_v41 = vrot.slane %v8854_v39, 10 }
 0x120   : > { %v4293_v39 = vrot.slane %v4291_v28, 4 }
 0x122   : > { %10083 = vmatmul.mubr.msk.bf16.vlgmr.msra.gmra.mrb[16].mxu1 %vm691_vm3, %v9107_v47  ;;  %v9024_v47 = vld [vmem:[%s11054_s24 + $0x354] sm:$0x7] }
 0x123   : > { %9997 = vmatmul.mubr.msk.bf16.gmra.mrb[36].mxu0 %vm691_vm3, %v10848_v24  ;;  %10099 = vmatpush3.bf16.msra.mxu1 %v5676_v22  ;;  %v9022_v24 = vld [vmem:[%s11054_s24 + $0x34c] sm:$0x8]  ;;  %v5165_v63 = vrot.slane %v9024_v47, 7  ;;  %v9123_v47 = vrot.slane %v9049_v23, 11  ;;  %v12373_v23 = vld [vmem:[%s11054_s24 + $0x3b0] sm:$0xf] }
 0x124   : > { %10000 = vmatprep.mubr.msk.bf16.mxu0 %vm691_vm3, %v10849_v61  ;;  %10086 = vmatprep.mubr.msk.bf16.mxu1 %vm691_vm3, %v9108_v2  ;;  %v4279_v61 = vrot.slane %v4277_v43, 4  ;;  %v9050_v2 = vld [vmem:[%s11054_s24 + $0x7d8] sm:$0xf]  ;;  %v9080_v22 = vrot.slane %v9022_v24, 11  ;;  %v4286_v43 = vrot.slane %v4284_v34, 4  ;;  %v4287_v24 = vrot.slane %v8856_v37, 6 }
 0x125   : > { %10750 = vmatprep.subr.msk.bf16.mxu1 %vm716_vm0, %v12303_v62  ;;  %v5573_v31 = vrot.slane %v9050_v2, 7  ;;  %v12365_v2 = vld [vmem:[%s11054_s24 + $0x7fc] sm:$0x8]  ;;  %v4294_v37 = vrot.slane %v8859_v54, 6  ;;  %v4298_v54 = vrot.slane %v12373_v23, 6 }
 0x126   : > { %v4281_v19 = vsel %vm11401_vm7, %v4279_v61, %v4280_v0 }
 0x127   : > { %v8932_v61 = vcombine.low %v4278_v48, %v4281_v19  ;;  %v5575_v0 = vrot.slane %v5573_v31, 4  ;;  %v12381_v48 = vld [vmem:[%s11054_s24 + $0x3d8] sm:$0xf]  ;;  %v5166_v19 = vsel %vm11595_vm10, %v5164_v21, %v5165_v63  ;;  %v5574_v63 = vsel %vm11595_vm10, %v9123_v47, %v5573_v31  ;;  %v9057_v47 = vld [vmem:[%s11054_s24 + $0x82c] sm:$0x7] }
 0x128   : > { %v9124_v21 = vrot.slane %v12365_v2, 11  ;;  %v4295_v31 = vsel %vm11401_vm7, %v4293_v39, %v4294_v37  ;;  %v12421_v39 = vld [vmem:[%s11054_s24 + $0x84c] sm:$0x8] }
 0x12a   : > { %10087 = vmatmul.mubr.msk.bf16.gmra.mrb[20].mxu1 %vm691_vm3, %v9109_v57 }
 0x12b   : > { %10001 = vmatmul.mubr.msk.bf16.gmra.mrb[40].mxu0 %vm691_vm3, %v10850_v30  ;;  %v9051_v30 = vld [vmem:[%s11054_s24 + $0x7dc] sm:$0x7]  ;;  %10090 = vmatprep.mubr.msk.bf16.mxu1 %vm691_vm3, %v9110_v59  ;;  %v10852_v59 = vld [vmem:[%s11054_s24 + $0x808] sm:$0xff]  }
 0x12c   : > { %10004 = vmatprep.mubr.msk.bf16.mxu0 %vm691_vm3, %v10851_v8  ;;  %v5156_v8 = vsel %vm11595_vm10, %v9079_v33, %v5155_v14  ;;  %v5576_v5 = vrot.slane %v9051_v30, 7  ;;  %v9111_v14 = vcombine.low %v5149_v16, %v5152_v18  ;;  %v12368_v33 = vld [vmem:[%s11054_s24 + $0x800] sm:$0xf]  ;;  %v5163_v16 = vsel %vm11595_vm10, %v9080_v22, %v5162_v56  ;;  %v9054_v18 = vld [vmem:[%s11054_s24 + $0x804] sm:$0x7] }
 0x12d   : > { %v9112_v58 = vcombine.low %v5156_v8, %v5159_v20  ;;  %v4285_v8 = vsel %vm11401_vm7, %v8925_v41, %v4284_v34  ;;  %v4288_v20 = vsel %vm11401_vm7, %v4286_v43, %v4287_v24  ;;  %v5580_v35 = vrot.slane %v12368_v33, 7  ;;  %v8860_v56 = vld [vmem:[%s11054_s24 + $0x3ac] sm:$0xc]  ;;  %v12393_v22 = vld [vmem:[%s11054_s24 + $0x828] sm:$0xf] }
 0x12e   : > { %v12359_v57 = vpop.f32.mrb[16].mxu0  ;;  %v5577_v34 = vsel %vm11595_vm10, %v5575_v0, %v5576_v5  ;;  %v8862_v41 = vld [vmem:[%s11054_s24 + $0x3b4] sm:$0x3]  ;;  %v5583_v43 = vrot.slane %v9054_v18, 7  ;;  %v4292_v24 = vsel %vm11401_vm7, %v8926_v11, %v4291_v28  ;;  %v4305_v5 = vrot.slane %v12381_v48, 6 }
 0x12f   : > { %v12362_v29 = vpop.f32.mrb[17].mxu0  ;;  %v8933_v0 = vcombine.low %v4285_v8, %v4288_v20  ;;  %v5587_v2 = vrot.slane %v12393_v22, 7  ;;  %v8863_v33 = vld [vmem:[%s11054_s24 + $0x3d4] sm:$0xc]  ;;  %v9131_v18 = vcombine.low %v5574_v63, %v5577_v34  ;;  %v5582_v10 = vrot.slane %v5580_v35, 4 }
 0x130   : > { %v12370_v9 = vpop.f32.mrb[18].mxu0  ;;  %v8927_v28 = vrot.slane %v8860_v56, 10  ;;  %v4301_v11 = vrot.slane %v8862_v41, 6  ;;  %v8934_v48 = vcombine.low %v4292_v24, %v4295_v31  ;;  %v12427_v20 = vld [vmem:[%s11054_s24 + $0x400] sm:$0xf]  ;;  %v5590_v63 = vrot.slane %v9057_v47, 7 }
 0x131   : > { %v12375_v30 = vpop.f32.mrb[19].mxu0  ;;  %v8928_v34 = vrot.slane %v8863_v33, 10  ;;  %v4307_v56 = vrot.slane %v4305_v5, 4  ;;  %v5589_v17 = vrot.slane %v5587_v2, 4  ;;  %v5581_v24 = vsel %vm11595_vm10, %v9124_v21, %v5580_v35 }
 0x132   : > { %10091 = vmatmul.mubr.msk.bf16.gmra.mrb[24].mxu1 %vm691_vm3, %v9111_v14  ;;  %v12412_v14 = vld [vmem:[%s11054_s24 + $0x850] sm:$0xf]  ;;  %v5584_v31 = vsel %vm11595_vm10, %v5582_v10, %v5583_v43  ;;  %v5906_v47 = vsel %vm716_vm0, %v12303_v62, 0  ;;  %v4312_v33 = vrot.slane %v12427_v20, 6  ;;  %v4299_v10 = vsel %vm11401_vm7, %v8927_v28, %v4298_v54  ;;  %v8866_v43 = vld [vmem:[%s11054_s24 + $0x3fc] sm:$0xc] }
 0x133   : > { %10005 = vmatmul.mubr.msk.bf16.gmra.mrb[44].mxu0 %vm691_vm3, %v10852_v59  ;;  %v9055_v59 = vld [vmem:[%s11054_s24 + $0x824] sm:$0x8]  ;;  %10094 = vmatprep.mubr.msk.bf16.mxu1 %vm691_vm3, %v9112_v58  ;;  %v8865_v58 = vld [vmem:[%s11054_s24 + $0x3dc] sm:$0x3]  ;;  %v13306_v8 = vrot.slane %v12412_v14, 7  ;;  %v9126_v35 = vrot.slane %v12421_v39, 11 }
 0x134   : > { %10010 = vmatprep.mubr.msk.bf16.mxu0 %vm691_vm3, %v8932_v61  ;;  %v9113_v61 = vcombine.low %v5163_v16, %v5166_v19  ;;  %v4300_v16 = vrot.slane %v4298_v54, 4  ;;  %v9125_v19 = vrot.slane %v9055_v59, 11  ;;  %v4308_v26 = vrot.slane %v8865_v58, 6  ;;  %v12448_v58 = vld [vmem:[%s11054_s24 + $0x878] sm:$0xf] }
 0x135   : > { %v4626_v59 = vsel %vm716_vm0, %v12271_v38, 0  ;;  %v12453_v38 = vld [vmem:[%s13295_s5 + $0x20] sm:$0xf]  ;;  %v5596_v21 = vrot.slane %v13306_v8, 4  ;;  %v9061_v28 = vld [vmem:[%s11054_s24 + $0x874] sm:$0x8] }
 0x136   : > { %v12418_v23 = vpop.f32.mrb[20].mxu0  ;;  %v4302_v62 = vsel %vm11401_vm7, %v4300_v16, %v4301_v11  ;;  %v4309_v54 = vsel %vm11401_vm7, %v4307_v56, %v4308_v26  ;;  %v4319_v11 = vrot.slane %v12435_v7, 6  ;;  %v5588_v39 = vsel %vm11595_vm10, %v9125_v19, %v5587_v2  ;;  %v9063_v2 = vld [vmem:[%s11054_s24 + $0x87c] sm:$0x7] }
 0x137   : > { %v12423_v37 = vpop.f32.mrb[21].mxu0  ;;  %v5591_v16 = vsel %vm11595_vm10, %v5589_v17, %v5590_v63  ;;  %v8935_v20 = vcombine.low %v4299_v10, %v4302_v62  ;;  %v8929_v7 = vrot.slane %v8866_v43, 10  ;;  %v9132_v17 = vcombine.low %v5581_v24, %v5584_v31  ;;  %v9066_v24 = vld [vmem:[%s11054_s24 + $0x8a4] sm:$0x7]  ;;  %v12502_v31 = vld [vmem:[%s11054_s24 + $0x518] sm:$0xf] }
 0x138   : > { %v12429_v22 = vpop.f32.mrb[22].mxu0  ;;  %v9133_v10 = vcombine.low %v5588_v39, %v5591_v16  ;;  %v4321_v43 = vrot.slane %v4319_v11, 4  ;;  %v5604_v15 = vrot.slane %v9063_v2, 7  ;;  %v5608_v39 = vrot.slane %v12491_v53, 7  ;;  %v12513_v16 = vld [vmem:[%s11054_s24 + $0x8c8] sm:$0xf] }
 0x139   : > { %v12431_v41 = vpop.f32.mrb[23].mxu0  ;;  %v5615_v2 = vrot.slane %v12513_v16, 7 }
 0x13a   : > { %10095 = vmatmul.mubr.msk.bf16.gmra.mrb[28].mxu1 %vm691_vm3, %v9113_v61  ;;  %v5597_v61 = vrot.slane %v9060_v60, 7  ;;  %v5601_v60 = vrot.slane %v12448_v58, 7  ;;  %v12488_v58 = vld [vmem:[%s11054_s24 + $0x89c] sm:$0x8] }
 0x13b   : > { %10011 = vmatmul.mubr.msk.bf16.vlgmr.msra.gmra.mrb[32].mxu0 %vm691_vm3, %v8933_v0  ;;  %v8868_v0 = vld [vmem:[%s11054_s24 + $0x404] sm:$0x3]  ;;  %10100 = vmatprep.mubr.msk.bf16.mxu1 %vm691_vm3, %v9131_v18  ;;  %v8869_v18 = vld [vmem:[%s11054_s24 + $0x424] sm:$0xc]  ;;  %v9128_v53 = vrot.slane %v12488_v58, 11  ;;  %v5617_v49 = vrot.slane %v5615_v2, 4 }
 0x13c   : > { %10014 = vmatprep.mubr.msk.bf16.mxu0 %vm691_vm3, %v8934_v48  ;;  %v4306_v48 = vsel %vm11401_vm7, %v8928_v34, %v4305_v5  ;;  %10027 = vmatpush3.bf16.msra.mxu0 %v4626_v59  ;;  %v8871_v5 = vld [vmem:[%s11054_s24 + $0x42c] sm:$0x3]  ;;  %v4314_v34 = vrot.slane %v4312_v33, 4  ;;  %v4315_v56 = vrot.slane %v8868_v0, 6  ;;  %v9127_v59 = vrot.slane %v9061_v28, 11 }
 0x13d   : > { %10746 = vmatprep.subr.msk.bf16.mxu0 %vm716_vm0, %v12453_v38  ;;  %v8936_v63 = vcombine.low %v4306_v48, %v4309_v54  ;;  %v8930_v62 = vrot.slane %v8869_v18, 10  ;;  %v4322_v4 = vrot.slane %v8871_v5, 6  ;;  %v12496_v0 = vld [vmem:[%s11054_s24 + $0x450] sm:$0xf]  ;;  %v5603_v51 = vrot.slane %v5601_v60, 4 }
 0x13e   : > { %v12482_v26 = vpop.f32.mrb[24].mxu0  ;;  %v13327_v48 = vrot.slane %v12412_v14, 7  ;;  %v5598_v28 = vsel %vm11595_vm10, %v5596_v21, %v5597_v61  ;;  %v12518_v18 = vld [vmem:[%s13297_s7 + $0x10] sm:$0xf]  ;;  %v4313_v14 = vsel %vm11401_vm7, %v8929_v7, %v4312_v33  ;;  %v4326_v21 = vrot.slane %v12496_v0, 6 }
 0x13f   : > { %v12485_v19 = vpop.f32.mrb[25].mxu0  ;;  %v5611_v61 = vrot.slane %v9066_v24, 7  ;;  %v4320_v5 = vsel %vm11401_vm7, %v8930_v62, %v4319_v11  ;;  %v4323_v33 = vsel %vm11401_vm7, %v4321_v43, %v4322_v4  ;;  %v8874_v7 = vld [vmem:[%s11054_s24 + $0x454] sm:$0x3]  ;;  %v9067_v62 = vld [vmem:[%s11054_s24 + $0x8c4] sm:$0x8] }
 0x140   : > { %v12493_v45 = vpop.f32.mrb[26].mxu0  ;;  %v5595_v54 = vsel %vm11595_vm10, %v9126_v35, %v13327_v48  ;;  %v4316_v35 = vsel %vm11401_vm7, %v4314_v34, %v4315_v56  ;;  %v4523_v34 = vrot.slane %v12502_v31, 6  ;;  %v5602_v56 = vsel %vm11595_vm10, %v9127_v59, %v5601_v60  ;;  %v9069_v43 = vld [vmem:[%s11054_s24 + $0x8cc] sm:$0x7]  ;;  %v9071_v24 = vld [vmem:[%s11054_s24 + $0x8f0] sm:$0xf] }
 0x141   : > { %v12498_v8 = vpop.f32.mrb[27].mxu0  ;;  %v9134_v4 = vcombine.low %v5595_v54, %v5598_v28  ;;  %v8937_v58 = vcombine.low %v4313_v14, %v4316_v35  ;;  %v4328_v59 = vrot.slane %v4326_v21, 4  ;;  %v4329_v0 = vrot.slane %v8874_v7, 6  ;;  %v8879_v28 = vld [vmem:[%s11054_s24 + $0x540] sm:$0xf] }
 0x142   : > { %10101 = vmatmul.mubr.msk.bf16.vlgmr.msra.gmra.mrb[16].mxu1 %vm691_vm3, %v9132_v17  ;;  %v8875_v17 = vld [vmem:[%s11054_s24 + $0x514] sm:$0xc]  ;;  %v4525_v3 = vrot.slane %v4523_v34, 4  ;;  %v9129_v35 = vrot.slane %v9067_v62, 11  ;;  %v5618_v13 = vrot.slane %v9069_v43, 7  ;;  %v5622_v7 = vrot.slane %v9071_v24, 7 }
 0x143   : > { %10015 = vmatmul.mubr.msk.bf16.gmra.mrb[36].mxu0 %vm691_vm3, %v8935_v20  ;;  %10117 = vmatpush3.bf16.msra.mxu1 %v5906_v47  ;;  %v8872_v20 = vld [vmem:[%s11054_s24 + $0x44c] sm:$0xc]  ;;  %v5605_v47 = vsel %vm11595_vm10, %v5603_v51, %v5604_v15  ;;  %v8938_v51 = vcombine.low %v4320_v5, %v4323_v33  ;;  %v8949_v16 = vrot.slane %v8875_v17, 10  ;;  %v8882_v5 = vld [vmem:[%s11054_s24 + $0x568] sm:$0xf]  ;;  %v5609_v33 = vsel %vm11595_vm10, %v9128_v53, %v5608_v39 }
 0x144   : > { %10018 = vmatprep.mubr.msk.bf16.mxu0 %vm691_vm3, %v8936_v63  ;;  %10104 = vmatprep.mubr.msk.bf16.mxu1 %vm691_vm3, %v9133_v10  ;;  %v8877_v63 = vld [vmem:[%s11054_s24 + $0x51c] sm:$0x3]  ;;  %v5610_v10 = vrot.slane %v5608_v39, 4  ;;  %v8931_v15 = vrot.slane %v8872_v20, 10  ;;  %v9135_v48 = vcombine.low %v5602_v56, %v5605_v47  ;;  %v4330_v47 = vsel %vm11401_vm7, %v4328_v59, %v4329_v0  ;;  %v9070_v17 = vld [vmem:[%s11054_s24 + $0x8ec] sm:$0x8] }
 0x145   : > { %10751 = vmatprep.subr.msk.bf16.mxu1 %vm716_vm0, %v12518_v18  ;;  %v4526_v54 = vrot.slane %v8877_v63, 6  ;;  %v9072_v63 = vld [vmem:[%s11054_s24 + $0x8f4] sm:$0x7]  ;;  %v4524_v39 = vsel %vm11401_vm7, %v8949_v16, %v4523_v34  ;;  %v5619_v43 = vsel %vm11595_vm10, %v5617_v49, %v5618_v13  ;;  %v9130_v0 = vrot.slane %v9070_v17, 11  ;;  %v8888_v13 = vld [vmem:[%s11054_s24 + $0x5b8] sm:$0xf] }
 0x146   : > { %v12545_v11 = vpop.f32.mrb[28].mxu0  ;;  %v5612_v20 = vsel %vm11595_vm10, %v5610_v10, %v5611_v61  ;;  %v4327_v56 = vsel %vm11401_vm7, %v8931_v15, %v4326_v21  ;;  %v8878_v61 = vld [vmem:[%s11054_s24 + $0x53c] sm:$0xc]  ;;  %v4537_v10 = vrot.slane %v8882_v5, 6  ;;  %v5616_v21 = vsel %vm11595_vm10, %v9129_v35, %v5615_v2  ;;  %v8883_v15 = vld [vmem:[%s11054_s24 + $0x56c] sm:$0x3] }
 0x147   : > { %v12549_v60 = vpop.f32.mrb[29].mxu0  ;;  %v4527_v53 = vsel %vm11401_vm7, %v4525_v3, %v4526_v54  ;;  %v9136_v62 = vcombine.low %v5609_v33, %v5612_v20  ;;  %v8939_v59 = vcombine.low %v4327_v56, %v4330_v47  ;;  %v5624_v34 = vrot.slane %v5622_v7, 4  ;;  %v8885_v35 = vld [vmem:[%s11054_s24 + $0x590] sm:$0xf] }
 0x148   : > { %v12552_v31 = vpop.f32.mrb[30].mxu0  ;;  %v5625_v24 = vrot.slane %v9072_v63, 7  ;;  %v8950_v3 = vrot.slane %v8878_v61, 10  ;;  %v4539_v33 = vrot.slane %v4537_v10, 4  ;;  %v4540_v2 = vrot.slane %v8883_v15, 6 }
 0x149   : > { %v12555_v14 = vpop.f32.mrb[31].mxu0  ;;  %v5623_v49 = vsel %vm11595_vm10, %v9130_v0, %v5622_v7  ;;  %v4544_v17 = vrot.slane %v8885_v35, 6  ;;  %v8887_v61 = vld [vmem:[%s11054_s24 + $0x5b4] sm:$0xc]  ;;  %v8892_v35 = vld [vmem:[%s11054_s24 + $0x5e4] sm:$0x3] }
 0x14a   : > { %10105 = vmatmul.mubr.msk.bf16.gmra.mrb[20].mxu1 %vm691_vm3, %v9134_v4  ;;  %v8880_v4 = vld [vmem:[%s11054_s24 + $0x544] sm:$0x3]  ;;  %v5626_v20 = vsel %vm11595_vm10, %v5624_v34, %v5625_v24  ;;  %v4541_v63 = vsel %vm11401_vm7, %v4539_v33, %v4540_v2  ;;  %v8953_v0 = vrot.slane %v8887_v61, 10  ;;  %v8891_v24 = vld [vmem:[%s11054_s24 + $0x5e0] sm:$0xf] }
 0x14b   : > { %10019 = vmatmul.mubr.msk.bf16.gmra.mrb[40].mxu0 %vm691_vm3, %v8937_v58  ;;  %v4530_v58 = vrot.slane %v8879_v28, 6  ;;  %10108 = vmatprep.mubr.msk.bf16.mxu1 %vm691_vm3, %v9135_v48  ;;  %v8957_v48 = vcombine.low %v4524_v39, %v4527_v53  ;;  %v4533_v54 = vrot.slane %v8880_v4, 6  ;;  %v9137_v28 = vcombine.low %v5616_v21, %v5619_v43  ;;  %v8886_v39 = vld [vmem:[%s11054_s24 + $0x594] sm:$0x3]  ;;  %v8890_v2 = vld [vmem:[%s11054_s24 + $0x5dc] sm:$0xc] }
 0x14c   : > { %10022 = vmatprep.mubr.msk.bf16.mxu0 %vm691_vm3, %v8938_v51  ;;  %v8881_v51 = vld [vmem:[%s11054_s24 + $0x564] sm:$0xc]  ;;  %v4551_v53 = vrot.slane %v8888_v13, 6  ;;  %v9138_v4 = vcombine.low %v5623_v49, %v5626_v20  ;;  %v8952_v43 = vrot.slane %v8884_v12, 10  ;;  %v4547_v15 = vrot.slane %v8886_v39, 6  ;;  %v10855_v39 = vld [vmem:[%s11054_s24 + $0x290] sm:$0xff]  }
 0x14d   : > { %v4532_v16 = vrot.slane %v4530_v58, 4  ;;  %v8951_v5 = vrot.slane %v8881_v51, 10  ;;  %v4531_v56 = vsel %vm11401_vm7, %v8950_v3, %v4530_v58  ;;  %v8889_v58 = vld [vmem:[%s11054_s24 + $0x5bc] sm:$0x3]  ;;  %v4546_v51 = vrot.slane %v4544_v17, 4 }
 0x14e   : > { %v4554_v34 = vrot.slane %v8889_v58, 6  ;;  %v4872_v3 = vsel %vm716_vm0, %v12453_v38, 0  ;;  %v4558_v38 = vrot.slane %v8891_v24, 6  ;;  %v8893_v49 = vld [vmem:[%s11054_s24 + $0x604] sm:$0xc]  ;;  %v4561_v12 = vrot.slane %v8892_v35, 6 }
 0x14f   : > { %v4534_v47 = vsel %vm11401_vm7, %v4532_v16, %v4533_v54  ;;  %v4538_v7 = vsel %vm11401_vm7, %v8951_v5, %v4537_v10  ;;  %v4553_v10 = vrot.slane %v4551_v53, 4  ;;  %v12615_v16 = vld [vmem:[%s13299_s9 + $0x2] sm:$0x3]  ;;  %v4545_v54 = vsel %vm11401_vm7, %v8952_v43, %v4544_v17  ;;  %v8895_v20 = vld [vmem:[%s11054_s24 + $0x60c] sm:$0x3] }
 0x150   : > { %v8959_v21 = vcombine.low %v4538_v7, %v4541_v63  ;;  %v4552_v5 = vsel %vm11401_vm7, %v8953_v0, %v4551_v53  ;;  %v8954_v7 = vrot.slane %v8890_v2, 10  ;;  %v4560_v63 = vrot.slane %v4558_v38, 4  ;;  %v12644_v43 = vld [vmem:[%s13297_s7 + $0x1c] sm:$0xf]  ;;  %v10857_v35 = vld [vmem:[%s11054_s24 + $0x2e0] sm:$0xff]  }
 0x151   : > { %v4555_v33 = vsel %vm11401_vm7, %v4553_v10, %v4554_v34  ;;  %v8955_v53 = vrot.slane %v8893_v49, 10  ;;  %v4568_v58 = vrot.slane %v8895_v20, 6  ;;  %v8896_v10 = vld [vmem:[%s11054_s24 + $0x62c] sm:$0xc]  ;;  %v8898_v34 = vld [vmem:[%s11054_s24 + $0x634] sm:$0x3] }
 0x152   : > { %10109 = vmatmul.mubr.msk.bf16.gmra.mrb[24].mxu1 %vm691_vm3, %v9136_v62  ;;  %v8958_v62 = vcombine.low %v4531_v56, %v4534_v47  ;;  %v10854_v47 = vld [vmem:[%s11054_s24 + $0x268] sm:$0xff]   ;;  %v8961_v17 = vcombine.low %v4552_v5, %v4555_v33  ;;  %v8956_v5 = vrot.slane %v8896_v10, 10  ;;  %v4575_v2 = vrot.slane %v8898_v34, 6  ;;  %v10859_v10 = vld [vmem:[%s11054_s24 + $0x330] sm:$0xff]  }
 0x153   : > { %10023 = vmatmul.mubr.msk.bf16.gmra.mrb[44].mxu0 %vm691_vm3, %v8939_v59  ;;  %10112 = vmatprep.mubr.msk.bf16.mxu1 %vm691_vm3, %v9137_v28  ;;  %v10853_v59 = vld [vmem:[%s11054_s24 + $0x240] sm:$0xff]   ;;  %v4548_v28 = vsel %vm11401_vm7, %v4546_v51, %v4547_v15  ;;  %v4559_v51 = vsel %vm11401_vm7, %v8954_v7, %v4558_v38 }
 0x154   : > { %10028 = vmatprep.mubr.msk.bf16.mxu0 %vm691_vm3, %v8957_v48  ;;  %v8894_v48 = vld [vmem:[%s11054_s24 + $0x608] sm:$0xf]  ;;  %v8960_v56 = vcombine.low %v4545_v54, %v4548_v28  ;;  %v10856_v28 = vld [vmem:[%s11054_s24 + $0x2b8] sm:$0xff]  }
 0x155   : > { %v4565_v13 = vrot.slane %v8894_v48, 6  ;;  %v8899_v48 = vld [vmem:[%s11054_s24 + $0x6f4] sm:$0xc] }
 0x157   : > { %v4567_v61 = vrot.slane %v4565_v13, 4 }
 0x159   : > { %v4569_v0 = vsel %vm11401_vm7, %v4567_v61, %v4568_v58  ;;  %v8904_v61 = vld [vmem:[%s11054_s24 + $0x724] sm:$0x3] }
 0x15a   : > { %10113 = vmatmul.mubr.msk.bf16.gmra.mrb[28].mxu1 %vm691_vm3, %v9138_v4  ;;  %v8897_v4 = vld [vmem:[%s11054_s24 + $0x630] sm:$0xf] }
 0x15b   : > { %10029 = vmatmul.mubr.msk.bf16.vlgmr.msra.gmra.mrb[32].mxu0 %vm691_vm3, %v8958_v62  ;;  %10118 = vmatprep.mubr.msk.bf16.mxu1 %vm691_vm3, %v10853_v59  ;;  %v6088_v62 = vsel %vm716_vm0, %v12518_v18, 0  ;;  %v4562_v18 = vsel %vm11401_vm7, %v4560_v63, %v4561_v12  ;;  %v4572_v15 = vrot.slane %v8897_v4, 6  ;;  %v4566_v59 = vsel %vm11401_vm7, %v8955_v53, %v4565_v13  ;;  %v8902_v53 = vld [vmem:[%s11054_s24 + $0x71c] sm:$0xc]  ;;  %v8905_v4 = vld [vmem:[%s11054_s24 + $0x744] sm:$0xc] }
 0x15c   : > { %10032 = vmatprep.mubr.msk.bf16.mxu0 %vm691_vm3, %v8959_v21  ;;  %10045 = vmatpush3.bf16.msra.mxu0 %v4872_v3  ;;  %v8900_v21 = vld [vmem:[%s11054_s24 + $0x6f8] sm:$0xf]  ;;  %v8901_v3 = vld [vmem:[%s11054_s24 + $0x6fc] sm:$0x3]  ;;  %v8962_v54 = vcombine.low %v4559_v51, %v4562_v18  ;;  %v8963_v38 = vcombine.low %v4566_v59, %v4569_v0  ;;  %v8974_v13 = vrot.slane %v8899_v48, 10  ;;  %v10858_v51 = vld [vmem:[%s11054_s24 + $0x308] sm:$0xff]  }
 0x15d   : > { %10756 = vmatprep.subr.msk.bf16.mxu0 %vm2900_vm5, %v12615_v16  ;;  %v4769_v24 = vrot.slane %v8900_v21, 6  ;;  %v4574_v33 = vrot.slane %v4572_v15, 4  ;;  %v4772_v20 = vrot.slane %v8901_v3, 6  ;;  %v4779_v0 = vrot.slane %v8904_v61, 6  ;;  %v8909_v3 = vld [vmem:[%s11054_s24 + $0x770] sm:$0xf] }
 0x15e   : > { %v8976_v34 = vrot.slane %v8905_v4, 10 }
 0x15f   : > { %v4771_v49 = vrot.slane %v4769_v24, 4  ;;  %v4576_v7 = vsel %vm11401_vm7, %v4574_v33, %v4575_v2  ;;  %v4770_v12 = vsel %vm11401_vm7, %v8974_v13, %v4769_v24  ;;  %v8910_v13 = vld [vmem:[%s11054_s24 + $0x774] sm:$0x3] }
 0x162   : > { %10119 = vmatmul.mubr.msk.bf16.vlgmr.msra.gmra.mrb[16].mxu1 %vm691_vm3, %v10854_v47  ;;  %v8906_v47 = vld [vmem:[%s11054_s24 + $0x748] sm:$0xf] }
 0x163   : > { %10033 = vmatmul.mubr.msk.bf16.gmra.mrb[36].mxu0 %vm691_vm3, %v8960_v56  ;;  %10135 = vmatpush3.bf16.msra.mxu1 %v6088_v62  ;;  %v8903_v56 = vld [vmem:[%s11054_s24 + $0x720] sm:$0xf]  ;;  %v4783_v58 = vrot.slane %v8906_v47, 6  ;;  %v8907_v62 = vld [vmem:[%s11054_s24 + $0x74c] sm:$0x3] }
 0x164   : > { %10036 = vmatprep.mubr.msk.bf16.mxu0 %vm691_vm3, %v8961_v17  ;;  %10122 = vmatprep.mubr.msk.bf16.mxu1 %vm691_vm3, %v10855_v39  ;;  %v4573_v17 = vsel %vm11401_vm7, %v8956_v5, %v4572_v15  ;;  %v4776_v63 = vrot.slane %v8903_v56, 6  ;;  %v4773_v39 = vsel %vm11401_vm7, %v4771_v49, %v4772_v20  ;;  %v8975_v15 = vrot.slane %v8902_v53, 10  ;;  %v8911_v20 = vld [vmem:[%s11054_s24 + $0x794] sm:$0xc]  ;;  %v8913_v56 = vld [vmem:[%s11054_s24 + $0x79c] sm:$0x3] }
 0x165   : > { %10752 = vmatprep.subr.msk.bf16.mxu1 %vm716_vm0, %v12644_v43  ;;  %v8964_v21 = vcombine.low %v4573_v17, %v4576_v7  ;;  %v8982_v18 = vcombine.low %v4770_v12, %v4773_v39  ;;  %v4785_v24 = vrot.slane %v4783_v58, 4  ;;  %v4786_v48 = vrot.slane %v8907_v62, 6  ;;  %v10860_v17 = vld [vmem:[%s11054_s24 + $0x358] sm:$0xff]   ;;  %v10861_v53 = vld [vmem:[%s11054_s24 + $0x510] sm:$0xff]   ;;  %v8915_v62 = vld [vmem:[%s11054_s24 + $0x7c0] sm:$0xf] }
 0x166   : > { %v4778_v59 = vrot.slane %v4776_v63, 4  ;;  %v4790_v5 = vrot.slane %v8909_v3, 6  ;;  %v4784_v33 = vsel %vm11401_vm7, %v8976_v34, %v4783_v58  ;;  %v4793_v39 = vrot.slane %v8910_v13, 6  ;;  %v8914_v34 = vld [vmem:[%s11054_s24 + $0x7bc] sm:$0xc]  ;;  %v10863_v13 = vld [vmem:[%s11054_s24 + $0x560] sm:$0xff]  }
 0x167   : > { %v4787_v2 = vsel %vm11401_vm7, %v4785_v24, %v4786_v48  ;;  %v8978_v61 = vrot.slane %v8911_v20, 10  ;;  %v4800_v4 = vrot.slane %v8913_v56, 6  ;;  %v8916_v24 = vld [vmem:[%s11054_s24 + $0x7c4] sm:$0x3]  ;;  %v8917_v3 = vld [vmem:[%s11054_s24 + $0x7e4] sm:$0xc] }
 0x168   : > { %v8984_v7 = vcombine.low %v4784_v33, %v4787_v2  ;;  %v4792_v12 = vrot.slane %v4790_v5, 4  ;;  %v8979_v33 = vrot.slane %v8914_v34, 10 }
 0x16a   : > { %10123 = vmatmul.mubr.msk.bf16.gmra.mrb[20].mxu1 %vm691_vm3, %v10856_v28  ;;  %v4777_v28 = vsel %vm11401_vm7, %v8975_v15, %v4776_v63 }
 0x16b   : > { %10037 = vmatmul.mubr.msk.bf16.gmra.mrb[40].mxu0 %vm691_vm3, %v8962_v54  ;;  %10126 = vmatprep.mubr.msk.bf16.mxu1 %vm691_vm3, %v10857_v35  ;;  %v8912_v54 = vld [vmem:[%s11054_s24 + $0x798] sm:$0xf]  ;;  %v8908_v35 = vld [vmem:[%s11054_s24 + $0x76c] sm:$0xc] }
 0x16c   : > { %10040 = vmatprep.mubr.msk.bf16.mxu0 %vm691_vm3, %v8963_v38  ;;  %v4780_v38 = vsel %vm11401_vm7, %v4778_v59, %v4779_v0  ;;  %v4797_v49 = vrot.slane %v8912_v54, 6  ;;  %v8977_v63 = vrot.slane %v8908_v35, 10  ;;  %v4794_v59 = vsel %vm11401_vm7, %v4792_v12, %v4793_v39  ;;  %v8919_v54 = vld [vmem:[%s11054_s24 + $0x7ec] sm:$0x3] }
 0x16d   : > { %v8983_v47 = vcombine.low %v4777_v28, %v4780_v38  ;;  %v10862_v38 = vld [vmem:[%s11054_s24 + $0x538] sm:$0xff]   ;;  %v4807_v35 = vrot.slane %v8916_v24, 6  ;;  %v4814_v56 = vrot.slane %v8919_v54, 6  ;;  %v10869_v54 = vld [vmem:[%s11054_s24 + $0x7e0] sm:$0xff]  }
 0x16e   : > { %v4799_v58 = vrot.slane %v4797_v49, 4  ;;  %v4791_v15 = vsel %vm11401_vm7, %v8977_v63, %v4790_v5  ;;  %v4798_v0 = vsel %vm11401_vm7, %v8978_v61, %v4797_v49  ;;  %v8980_v49 = vrot.slane %v8917_v3, 10  ;;  %v8920_v61 = vld [vmem:[%s11054_s24 + $0x80c] sm:$0xc]  ;;  %v10866_v24 = vld [vmem:[%s11054_s24 + $0x5d8] sm:$0xff]  }
 0x16f   : > { %v8985_v28 = vcombine.low %v4791_v15, %v4794_v59  ;;  %v10868_v3 = vld [vmem:[%s11054_s24 + $0x628] sm:$0xff]  }
 0x172   : > { %10127 = vmatmul.mubr.msk.bf16.gmra.mrb[24].mxu1 %vm691_vm3, %v10858_v51  ;;  %v7264_v51 = vsel %vm2900_vm5, %v12615_v16, 0  ;;  %v4804_v16 = vrot.slane %v8915_v62, 6  ;;  %v10864_v62 = vld [vmem:[%s11054_s24 + $0x588] sm:$0xff]  }
 0x173   : > { %10041 = vmatmul.mubr.msk.bf16.gmra.mrb[44].mxu0 %vm691_vm3, %v8964_v21  ;;  %10130 = vmatprep.mubr.msk.bf16.mxu1 %vm691_vm3, %v10859_v10  ;;  %v8918_v21 = vld [vmem:[%s11054_s24 + $0x7e8] sm:$0xf]  ;;  %v4801_v10 = vsel %vm11401_vm7, %v4799_v58, %v4800_v4  ;;  %v8922_v58 = vld [vmem:[%s11054_s24 + $0x814] sm:$0x3] }
 0x174   : > { %10046 = vmatprep.mubr.msk.bf16.mxu0 %vm691_vm3, %v8982_v18  ;;  %v12713_v18 = vld [vmem:[%s13299_s9] sm:$0x3]  ;;  %v4811_v48 = vrot.slane %v8918_v21, 6  ;;  %v8986_v5 = vcombine.low %v4798_v0, %v4801_v10  ;;  %v4806_v2 = vrot.slane %v4804_v16, 4  ;;  %v4805_v63 = vsel %vm11401_vm7, %v8979_v33, %v4804_v16  ;;  %v10865_v16 = vld [vmem:[%s11054_s24 + $0x5b0] sm:$0xff]   ;;  %v10872_v33 = vld [vmem:[%s11054_s24 + $0x858] sm:$0xff]  }
 0x175   : > { %v4821_v59 = vrot.slane %v8922_v58, 6 }
 0x176   : > { %v4813_v20 = vrot.slane %v4811_v48, 4  ;;  %v4808_v12 = vsel %vm11401_vm7, %v4806_v2, %v4807_v35  ;;  %v10873_v2 = vld [vmem:[%s11054_s24 + $0x880] sm:$0xff]   ;;  %v9247_v35 = vld [vmem:[%s11054_s24 + $0x24c] sm:$0xf] }
 0x177   : > { %v8987_v4 = vcombine.low %v4805_v63, %v4808_v12 }
 0x17a   : > { %10131 = vmatmul.mubr.msk.bf16.gmra.mrb[28].mxu1 %vm691_vm3, %v10860_v17  ;;  %v6270_v17 = vsel %vm716_vm0, %v12644_v43, 0  ;;  %v4812_v43 = vsel %vm11401_vm7, %v8980_v49, %v4811_v48  ;;  %v10867_v48 = vld [vmem:[%s11054_s24 + $0x600] sm:$0xff]   ;;  %v9246_v49 = vld [vmem:[%s11054_s24 + $0x248] sm:$0xe] }
 0x17b   : > { %10047 = vmatmul.mubr.msk.bf16.vlgmr.msra.gmra.mrb[32].mxu0 %vm691_vm3, %v8983_v47  ;;  %10136 = vmatprep.mubr.msk.bf16.mxu1 %vm691_vm3, %v10861_v53  ;;  %v8921_v47 = vld [vmem:[%s11054_s24 + $0x810] sm:$0xf]  ;;  %v4815_v53 = vsel %vm11401_vm7, %v4813_v20, %v4814_v56  ;;  %v10874_v56 = vld [vmem:[%s11054_s24 + $0x8a8] sm:$0xff]  }
 0x17c   : > { %10050 = vmatprep.mubr.msk.bf16.mxu0 %vm691_vm3, %v8984_v7  ;;  %10225 = vmatpush3.bf16.msra.mxu0 %v7264_v51  ;;  %v9318_v7 = vld [vmem:[%s13297_s7 + $0x8] sm:$0xf]  ;;  %v4818_v39 = vrot.slane %v8921_v47, 6  ;;  %v8988_v21 = vcombine.low %v4812_v43, %v4815_v53  ;;  %v8981_v51 = vrot.slane %v8920_v61, 10  ;;  %v9248_v20 = vld [vmem:[%s11054_s24 + $0x250] sm:$0x1] }
 0x17d   : > { %10757 = vmatprep.subr.msk.bf16.mxu0 %vm2900_vm5, %v12713_v18  ;;  %v10875_v47 = vld [vmem:[%s11054_s24 + $0x8d0] sm:$0xff]   ;;  %v6488_v12 = vrot.slane %v9248_v20, 5  ;;  %v9251_v61 = vld [vmem:[%s11054_s24 + $0x278] sm:$0x1] }
 0x17e   : > { %v4820_v15 = vrot.slane %v4818_v39, 4  ;;  %v4819_v0 = vsel %vm11401_vm7, %v8981_v51, %v4818_v39  ;;  %v9253_v39 = vld [vmem:[%s11054_s24 + $0x29c] sm:$0xf]  ;;  %v9249_v53 = vld [vmem:[%s11054_s24 + $0x270] sm:$0xe] }
 0x180   : > { %v4822_v10 = vsel %vm11401_vm7, %v4820_v15, %v4821_v59  ;;  %v12809_v15 = vld [vmem:[%s13294_s4] ss:$0 sm:$0xff] }
 0x181   : > { %v8989_v34 = vcombine.low %v4819_v0, %v4822_v10  ;;  %v9254_v59 = vld [vmem:[%s11054_s24 + $0x2a0] sm:$0x1]  ;;  %v10876_v10 = vld [vmem:[%s11054_s24 + $0x8f8] sm:$0xff]  }
 0x182   : > { %10137 = vmatmul.mubr.msk.bf16.vlgmr.msra.gmra.mrb[16].mxu1 %vm691_vm3, %v10862_v38  ;;  %v6588_v38 = vsel %vm716_vm0, %v9318_v7, 0 }
 0x183   : > { %10051 = vmatmul.mubr.msk.bf16.gmra.mrb[36].mxu0 %vm691_vm3, %v8985_v28  ;;  %10153 = vmatpush3.bf16.msra.mxu1 %v6270_v17  ;;  %v10871_v28 = vld [vmem:[%s11054_s24 + $0x830] sm:$0xff]  }
 0x184   : > { %10054 = vmatprep.mubr.msk.bf16.mxu0 %vm691_vm3, %v8986_v5  ;;  %10140 = vmatprep.mubr.msk.bf16.mxu1 %vm691_vm3, %v10863_v13  ;;  %v12780_v5 = vld [vmem:[%s13297_s7 + $0x14] sm:$0xf]  ;;  %v6485_v13 = vrot.slane %v9247_v35, 5 }
 0x185   : > { %10753 = vmatprep.subr.msk.bf16.mxu1 %vm716_vm0, %v9318_v7  ;;  %v9250_v17 = vld [vmem:[%s11054_s24 + $0x274] sm:$0xf]  ;;  %v9319_v7 = vrot.slane %v9246_v49, 9 }
 0x186   : > { %v6487_v63 = vrot.slane %v6485_v13, 4  ;;  %v6492_v43 = vrot.slane %v9250_v17, 5  ;;  %v9255_v17 = vld [vmem:[%s11054_s24 + $0x2c0] sm:$0xe] }
 0x187   : > { %v6486_v58 = vsel %vm11056_vm4, %v9319_v7, %v6485_v13  ;;  %v6502_v13 = vrot.slane %v9254_v59, 5  ;;  %v9260_v59 = vld [vmem:[%s11054_s24 + $0x2f0] sm:$0x1] }
 0x18a   : > { %10141 = vmatmul.mubr.msk.bf16.gmra.mrb[20].mxu1 %vm691_vm3, %v10864_v62  ;;  %v9252_v62 = vld [vmem:[%s11054_s24 + $0x298] sm:$0xe] }
 0x18b   : > { %10055 = vmatmul.mubr.msk.bf16.gmra.mrb[40].mxu0 %vm691_vm3, %v8987_v4  ;;  %10144 = vmatprep.mubr.msk.bf16.mxu1 %vm691_vm3, %v10865_v16  ;;  %v6489_v4 = vsel %vm11056_vm4, %v6487_v63, %v6488_v12 }
 0x18c   : > { %10058 = vmatprep.mubr.msk.bf16.mxu0 %vm691_vm3, %v8988_v21  ;;  %v6499_v21 = vrot.slane %v9253_v39, 5 }
 0x18e   : > { %v6501_v35 = vrot.slane %v6499_v21, 4 }
 0x190   : > { %v6503_v39 = vsel %vm11056_vm4, %v6501_v35, %v6502_v13  ;;  %v12873_v35 = vld [vmem:[%s13297_s7 + $0x20] sm:$0xf] }
 0x192   : > { %10145 = vmatmul.mubr.msk.bf16.gmra.mrb[24].mxu1 %vm691_vm3, %v10866_v24  ;;  %v6494_v24 = vrot.slane %v6492_v43, 4 }
 0x193   : > { %10059 = vmatmul.mubr.msk.bf16.gmra.mrb[44].mxu0 %vm691_vm3, %v8989_v34  ;;  %10148 = vmatprep.mubr.msk.bf16.mxu1 %vm691_vm3, %v10867_v48  ;;  %v9320_v34 = vrot.slane %v9249_v53, 9  ;;  %v6495_v48 = vrot.slane %v9251_v61, 5  ;;  %v9258_v53 = vld [vmem:[%s11054_s24 + $0x2e8] sm:$0xe] }
 0x19a   : > { %10149 = vmatmul.mubr.msk.bf16.gmra.mrb[28].mxu1 %vm691_vm3, %v10868_v3 }
 0x19b   : > { %10154 = vmatprep.mubr.msk.bf16.mxu1 %vm691_vm3, %v10869_v54 }
 0x1a2   : > { %10155 = vmatmul.mubr.msk.bf16.vlgmr.msra.gmra.mrb[16].mxu1 %vm691_vm3, %v10870_v27  ;;  %v9327_v27 = vcombine.low %v6486_v58, %v6489_v4 }
 0x1a3   : > { %10171 = vmatpush3.bf16.msra.mxu1 %v6588_v38  ;;  %10158 = vmatprep.mubr.msk.bf16.mxu1 %vm691_vm3, %v10871_v28  ;;  %v9321_v28 = vrot.slane %v9252_v62, 9  ;;  %v12822_v38 = vld [vmem:[%s11054_s24 + $0x2c4] sm:$0xf] }
 0x1a4   : > { %10754 = vmatprep.subr.msk.bf16.mxu1 %vm716_vm0, %v12780_v5  ;;  %v6506_v7 = vrot.slane %v12822_v38, 5 }
 0x1a5   : > { %v6500_v12 = vsel %vm11056_vm4, %v9321_v28, %v6499_v21  ;;  %v6834_v21 = vsel %vm716_vm0, %v12780_v5, 0  ;;  %v12862_v28 = vld [vmem:[%s11054_s24 + $0x314] sm:$0xf] }
 0x1a6   : > { %v6520_v13 = vrot.slane %v12862_v28, 5 }
 0x1aa   : > { %10159 = vmatmul.mubr.msk.bf16.gmra.mrb[20].mxu1 %vm691_vm3, %v10872_v33 }
 0x1ab   : > { %10162 = vmatprep.mubr.msk.bf16.mxu1 %vm691_vm3, %v10873_v2 }
 0x1b2   : > { %10163 = vmatmul.mubr.msk.bf16.gmra.mrb[24].mxu1 %vm691_vm3, %v10874_v56 }
 0x1b3   : > { %10166 = vmatprep.mubr.msk.bf16.mxu1 %vm691_vm3, %v10875_v47  ;;  %v6496_v47 = vsel %vm11056_vm4, %v6494_v24, %v6495_v48 }
 0x1b5   : > { %v9886_v51 = vpop.f32.mrb[0].mxu1 }
 0x1b6   : > { %v10296_v16 = vadd.f32 %v9886_v51, %v12359_v57  ;;  %v2697_v0 = vpop.f32.mrb[1].mxu1  ;;  %v9322_v51 = vrot.slane %v9255_v17, 9  ;;  %v9263_v17 = vld [vmem:[%s11054_s24 + $0x318] sm:$0x1] }
 0x1b7   : > { %v10297_v3 = vadd.f32 %v2697_v0, %v12362_v29  ;;  %v9887_v54 = vpop.f32.mrb[2].mxu1  ;;  %v9259_v29 = vld [vmem:[%s11054_s24 + $0x2ec] sm:$0xf] }
 0x1b8   : > { %v2785_v57 = vadd.f32 %v10296_v16, %v12809_v15  ;;  %v10298_v33 = vadd.f32 %v9887_v54, %v12370_v9  ;;  %v2700_v2 = vpop.f32.mrb[3].mxu1  ;;  %v6493_v9 = vsel %vm11056_vm4, %v9320_v34, %v6492_v43  ;;  %v9257_v43 = vld [vmem:[%s11054_s24 + $0x2c8] sm:$0x1]  ;;  %v6513_v61 = vrot.slane %v9259_v29, 5  ;;  %v9261_v29 = vld [vmem:[%s11054_s24 + $0x310] sm:$0xe] }
 0x1b9   : > { %v2783_v49 = vadd.f32 %v10297_v3, %v12809_v15  ;;  %v10299_v20 = vadd.f32 %v2700_v2, %v12375_v30  ;;  %v9328_v62 = vcombine.low %v6493_v9, %v6496_v47  ;;  %v7388_v34 = vsel %vm2900_vm5, %v12713_v18, 0  ;;  %v9265_v2 = vld [vmem:[%s11054_s24 + $0x33c] sm:$0xf] }
 0x1ba   : > { %7844 = vst.msk [vmem:[%s12818_s26 + $0x10] sm:$0xff] %vm7237_vm11, %v2785_v57  ;;  %v2786_v56 = vadd.f32 %v10298_v33, %v12809_v15  ;;  %10167 = vmatmul.mubr.msk.bf16.gmra.mrb[28].mxu1 %vm691_vm3, %v10876_v10  ;;  %v6508_v10 = vrot.slane %v6506_v7, 4  ;;  %v9329_v3 = vcombine.low %v6500_v12, %v6503_v39  ;;  %v6509_v54 = vrot.slane %v9257_v43, 5  ;;  %v9266_v39 = vld [vmem:[%s11054_s24 + $0x340] sm:$0x1] }
 0x1bb   : > { %7842 = vst.msk [vmem:[%s12818_s26] sm:$0xff] %vm7237_vm11, %v2783_v49  ;;  %v2784_v30 = vadd.f32 %v10299_v20, %v12809_v15  ;;  %10172 = vmatprep.mubr.msk.bf16.mxu1 %vm691_vm3, %v9327_v27  ;;  %v9323_v27 = vrot.slane %v9258_v53, 9  ;;  %v6515_v18 = vrot.slane %v6513_v61, 4 }
 0x1bc   : > { %v7228_v63 = vpack.c.bf16 %v2786_v56, %v2785_v57  ;;  %7845 = vst.msk [vmem:[%s12818_s26 + $0x18] sm:$0xff] %vm7237_vm11, %v2786_v56  ;;  %v6516_v57 = vrot.slane %v9260_v59, 5  ;;  %v6510_v20 = vsel %vm11056_vm4, %v6508_v10, %v6509_v54  ;;  %v9271_v54 = vld [vmem:[%s11054_s24 + $0x51c] sm:$0xf] }
 0x1bd   : > { %v7227_v58 = vpack.c.bf16 %v2784_v30, %v2783_v49  ;;  %7843 = vst.msk [vmem:[%s12818_s26 + $0x8] sm:$0xff] %vm7237_vm11, %v2784_v30  ;;  %v9890_v4 = vpop.f32.mrb[4].mxu1  ;;  %v6507_v49 = vsel %vm11056_vm4, %v9322_v51, %v6506_v7  ;;  %v6514_v9 = vsel %vm11056_vm4, %v9323_v27, %v6513_v61  ;;  %v9264_v30 = vld [vmem:[%s11054_s24 + $0x338] sm:$0xe]  ;;  %v9324_v61 = vrot.slane %v9261_v29, 9 }
 0x1be   : > { %v10300_v16 = vadd.f32 %v9890_v4, %v12418_v23  ;;  %v2713_v0 = vpop.f32.mrb[5].mxu1  ;;  %v6517_v47 = vsel %vm11056_vm4, %v6515_v18, %v6516_v57  ;;  %v6522_v4 = vrot.slane %v6520_v13, 4 }
 0x1bf   : > { %v10301_v24 = vadd.f32 %v2713_v0, %v12423_v37  ;;  %v9891_v48 = vpop.f32.mrb[6].mxu1  ;;  %10226 = vmatprep.mubr.msk.bf16.mxu0 %vm7237_vm11, %v7227_v58  ;;  %v9330_v58 = vcombine.low %v6507_v49, %v6510_v20  ;;  %v9331_v59 = vcombine.low %v6514_v9, %v6517_v47  ;;  %v9325_v0 = vrot.slane %v9264_v30, 9 }
 0x1c0   : > { %v2789_v23 = vadd.f32 %v10300_v16, %v12809_v15  ;;  %v10302_v5 = vadd.f32 %v9891_v48, %v12429_v22  ;;  %v2716_v38 = vpop.f32.mrb[7].mxu1  ;;  %10227 = vmatmul.mubr.msk.bf16.vlgmr.msra.gmra.mrb[48].mxu0 %vm7237_vm11, %v7228_v63  ;;  %v6527_v63 = vrot.slane %v9265_v2, 5  ;;  %v6523_v16 = vrot.slane %v9263_v17, 5 }
 0x1c1   : > { %v2787_v37 = vadd.f32 %v10301_v24, %v12809_v15  ;;  %v10303_v33 = vadd.f32 %v2716_v38, %v12431_v41  ;;  %10243 = vmatpush3.bf16.msra.mxu0 %v7388_v34  ;;  %v6731_v2 = vrot.slane %v9271_v54, 5 }
 0x1c2   : > { %7848 = vst.msk [vmem:[%s12818_s26 + $0x30] sm:$0xff] %vm7237_vm11, %v2789_v23  ;;  %v2790_v22 = vadd.f32 %v10302_v5, %v12809_v15  ;;  %10173 = vmatmul.mubr.msk.bf16.vlgmr.msra.gmra.mrb[16].mxu1 %vm691_vm3, %v9328_v62  ;;  %v6529_v24 = vrot.slane %v6527_v63, 4  ;;  %v9267_v5 = vld [vmem:[%s11054_s24 + $0x360] sm:$0xe]  ;;  %v6528_v18 = vsel %vm11056_vm4, %v9325_v0, %v6527_v63 }
 0x1c3   : > { %7846 = vst.msk [vmem:[%s12818_s26 + $0x20] sm:$0xff] %vm7237_vm11, %v2787_v37  ;;  %v2788_v41 = vadd.f32 %v10303_v33, %v12809_v15  ;;  %10189 = vmatpush3.bf16.msra.mxu1 %v6834_v21  ;;  %10176 = vmatprep.mubr.msk.bf16.mxu1 %vm691_vm3, %v9329_v3  ;;  %v9268_v21 = vld [vmem:[%s11054_s24 + $0x364] sm:$0xf]  ;;  %v9270_v33 = vld [vmem:[%s11054_s24 + $0x518] sm:$0xe] }
 0x1c4   : > { %v7230_v56 = vpack.c.bf16 %v2790_v22, %v2789_v23  ;;  %7849 = vst.msk [vmem:[%s12818_s26 + $0x38] sm:$0xff] %vm7237_vm11, %v2790_v22  ;;  %10755 = vmatprep.subr.msk.bf16.mxu1 %vm716_vm0, %v12873_v35  ;;  %v6524_v23 = vsel %vm11056_vm4, %v6522_v4, %v6523_v16  ;;  %v9277_v4 = vld [vmem:[%s11054_s24 + $0x56c] sm:$0xf] }
 0x1c5   : > { %v7229_v7 = vpack.c.bf16 %v2788_v41, %v2787_v37  ;;  %7847 = vst.msk [vmem:[%s12818_s26 + $0x28] sm:$0xff] %vm7237_vm11, %v2788_v41  ;;  %v9894_v12 = vpop.f32.mrb[8].mxu1  ;;  %v9269_v37 = vld [vmem:[%s11054_s24 + $0x368] sm:$0x1]  ;;  %v9272_v41 = vld [vmem:[%s11054_s24 + $0x520] sm:$0x1] }
 0x1c6   : > { %v10304_v43 = vadd.f32 %v9894_v12, %v12482_v26  ;;  %v2729_v53 = vpop.f32.mrb[9].mxu1  ;;  %v6537_v63 = vrot.slane %v9269_v37, 5 }
 0x1c7   : > { %v10305_v62 = vadd.f32 %v2729_v53, %v12485_v19  ;;  %v9895_v51 = vpop.f32.mrb[10].mxu1  ;;  %10230 = vmatprep.mubr.msk.bf16.mxu0 %vm7237_vm11, %v7229_v7  ;;  %v6530_v19 = vrot.slane %v9266_v39, 5  ;;  %v9344_v7 = vrot.slane %v9270_v33, 9  ;;  %v6734_v53 = vrot.slane %v9272_v41, 5 }
 0x1c8   : > { %v2793_v10 = vadd.f32 %v10304_v43, %v12809_v15  ;;  %v10306_v26 = vadd.f32 %v9895_v51, %v12493_v45  ;;  %v2732_v34 = vpop.f32.mrb[11].mxu1  ;;  %10231 = vmatmul.mubr.msk.bf16.gmra.mrb[52].mxu0 %vm7237_vm11, %v7230_v56  ;;  %v6534_v45 = vrot.slane %v9268_v21, 5  ;;  %v9326_v56 = vrot.slane %v9267_v5, 9 }
 0x1c9   : > { %v2791_v48 = vadd.f32 %v10305_v62, %v12809_v15  ;;  %v10307_v3 = vadd.f32 %v2732_v34, %v12498_v8  ;;  %v6521_v8 = vsel %vm11056_vm4, %v9324_v61, %v6520_v13  ;;  %v6531_v57 = vsel %vm11056_vm4, %v6529_v24, %v6530_v19  ;;  %v9276_v19 = vld [vmem:[%s11054_s24 + $0x568] sm:$0xe] }
 0x1ca   : > { %7852 = vst.msk [vmem:[%s12818_s26 + $0x50] sm:$0xff] %vm7237_vm11, %v2793_v10  ;;  %v2794_v27 = vadd.f32 %v10306_v26, %v12809_v15  ;;  %10177 = vmatmul.mubr.msk.bf16.gmra.mrb[20].mxu1 %vm691_vm3, %v9330_v58  ;;  %v9332_v29 = vcombine.low %v6521_v8, %v6524_v23  ;;  %v6536_v9 = vrot.slane %v6534_v45, 4  ;;  %v9333_v30 = vcombine.low %v6528_v18, %v6531_v57  ;;  %v9274_v58 = vld [vmem:[%s11054_s24 + $0x544] sm:$0xf]  ;;  %v9275_v26 = vld [vmem:[%s11054_s24 + $0x548] sm:$0x1] }
 0x1cb   : > { %7850 = vst.msk [vmem:[%s12818_s26 + $0x40] sm:$0xff] %vm7237_vm11, %v2791_v48  ;;  %v2792_v28 = vadd.f32 %v10307_v3, %v12809_v15  ;;  %10180 = vmatprep.mubr.msk.bf16.mxu1 %vm691_vm3, %v9331_v59  ;;  %v6733_v43 = vrot.slane %v6731_v2, 4  ;;  %v6738_v16 = vrot.slane %v9274_v58, 5  ;;  %v6732_v21 = vsel %vm11056_vm4, %v9344_v7, %v6731_v2  ;;  %v9283_v57 = vld [vmem:[%s11054_s24 + $0x5bc] sm:$0xf] }
 0x1cc   : > { %v7232_v38 = vpack.c.bf16 %v2794_v27, %v2793_v10  ;;  %7853 = vst.msk [vmem:[%s12818_s26 + $0x58] sm:$0xff] %vm7237_vm11, %v2794_v27  ;;  %v6538_v59 = vsel %vm11056_vm4, %v6536_v9, %v6537_v63  ;;  %v9273_v10 = vld [vmem:[%s11054_s24 + $0x540] sm:$0xe]  ;;  %v6745_v34 = vrot.slane %v9277_v4, 5  ;;  %v9346_v8 = vrot.slane %v9276_v19, 9 }
 0x1cd   : > { %v7231_v22 = vpack.c.bf16 %v2792_v28, %v2791_v48  ;;  %7851 = vst.msk [vmem:[%s12818_s26 + $0x48] sm:$0xff] %vm7237_vm11, %v2792_v28  ;;  %v9898_v13 = vpop.f32.mrb[12].mxu1  ;;  %v9278_v48 = vld [vmem:[%s11054_s24 + $0x570] sm:$0x1]  ;;  %v9345_v27 = vrot.slane %v9273_v10, 9  ;;  %v6741_v28 = vrot.slane %v9275_v26, 5  ;;  %v13328_v18 = vpack.c.bf16 %v12041_v36, %v12026_v44 }
 0x1ce   : > { %v10308_v49 = vadd.f32 %v9898_v13, %v12545_v11  ;;  %v2745_v20 = vpop.f32.mrb[13].mxu1  ;;  %v6747_v23 = vrot.slane %v6745_v34, 4  ;;  %v6748_v5 = vrot.slane %v9278_v48, 5  ;;  %v9279_v36 = vld [vmem:[%s11054_s24 + $0x590] sm:$0xe]  ;;  %v6759_v41 = vrot.slane %v9283_v57, 5 }
 0x1cf   : > { %v10309_v47 = vadd.f32 %v2745_v20, %v12549_v60  ;;  %v9899_v17 = vpop.f32.mrb[14].mxu1  ;;  %10234 = vmatprep.mubr.msk.bf16.mxu0 %vm7237_vm11, %v7231_v22  ;;  %v6739_v37 = vsel %vm11056_vm4, %v9345_v27, %v6738_v16  ;;  %v6746_v22 = vsel %vm11056_vm4, %v9346_v8, %v6745_v34  ;;  %v9281_v13 = vld [vmem:[%s11054_s24 + $0x598] sm:$0x1]  ;;  %v9284_v20 = vld [vmem:[%s11054_s24 + $0x5c0] sm:$0x1]  ;;  %v13329_v63 = vpack.c.bf16 %v12035_v32, %v12022_v1 }
 0x1d0   : > { %v2797_v12 = vadd.f32 %v10308_v49, %v12809_v15  ;;  %v10310_v11 = vadd.f32 %v9899_v17, %v12552_v31  ;;  %v2748_v39 = vpop.f32.mrb[15].mxu1  ;;  %10235 = vmatmul.mubr.msk.bf16.gmra.mrb[56].mxu0 %vm7237_vm11, %v7232_v38  ;;  %v9411_v31 = vld [vmem:[%s13299_s9 + $0x4] sm:$0x3]  ;;  %v9280_v38 = vld [vmem:[%s11054_s24 + $0x594] sm:$0xf]  ;;  %v6749_v44 = vsel %vm11056_vm4, %v6747_v23, %v6748_v5  ;;  %v7080_v7 = vsel %vm716_vm0, %v12873_v35, 0 }
 0x1d1   : > { %v2795_v60 = vadd.f32 %v10309_v47, %v12809_v15  ;;  %v10311_v61 = vadd.f32 %v2748_v39, %v12555_v14  ;;  %v6535_v14 = vsel %vm11056_vm4, %v9326_v56, %v6534_v45  ;;  %10758 = vmatprep.subr.msk.bf16.mxu0 %vm2900_vm5, %v9411_v31  ;;  %v6740_v45 = vrot.slane %v6738_v16, 4  ;;  %v9282_v49 = vld [vmem:[%s11054_s24 + $0x5b8] sm:$0xe]  ;;  %v9289_v58 = vld [vmem:[%s11054_s24 + $0x60c] sm:$0xf] }
 0x1d2   : > { %7856 = vst.msk [vmem:[%s12818_s26 + $0x70] sm:$0xff] %vm7237_vm11, %v2797_v12  ;;  %v2798_v62 = vadd.f32 %v10310_v11, %v12809_v15  ;;  %10181 = vmatmul.mubr.msk.bf16.gmra.mrb[24].mxu1 %vm691_vm3, %v9332_v29  ;;  %v9334_v3 = vcombine.low %v6535_v14, %v6538_v59  ;;  %v6752_v2 = vrot.slane %v9280_v38, 5  ;;  %v7522_v56 = vsel %vm2900_vm5, %v9411_v31, 0  ;;  %v9290_v31 = vld [vmem:[%s11054_s24 + $0x610] sm:$0x1] }
 0x1d3   : > { %7854 = vst.msk [vmem:[%s12818_s26 + $0x60] sm:$0xff] %vm7237_vm11, %v2795_v60  ;;  %v2796_v51 = vadd.f32 %v10311_v61, %v12809_v15  ;;  %10184 = vmatprep.mubr.msk.bf16.mxu1 %vm691_vm3, %v9333_v30  ;;  %v6735_v15 = vsel %vm11056_vm4, %v6733_v43, %v6734_v53  ;;  %v6742_v33 = vsel %vm11056_vm4, %v6740_v45, %v6741_v28  ;;  %v9347_v47 = vrot.slane %v9279_v36, 9  ;;  %v9286_v43 = vld [vmem:[%s11054_s24 + $0x5e4] sm:$0xf]  ;;  %v9287_v61 = vld [vmem:[%s11054_s24 + $0x5e8] sm:$0x1] }
 0x1d4   : > { %v7234_v0 = vpack.c.bf16 %v2798_v62, %v2797_v12  ;;  %7857 = vst.msk [vmem:[%s12818_s26 + $0x78] sm:$0xff] %vm7237_vm11, %v2798_v62  ;;  %v9352_v54 = vcombine.low %v6732_v21, %v6735_v15  ;;  %v9353_v29 = vcombine.low %v6739_v37, %v6742_v33  ;;  %v9354_v9 = vcombine.low %v6746_v22, %v6749_v44  ;;  %v9288_v62 = vld [vmem:[%s11054_s24 + $0x608] sm:$0xe]  ;;  %v9292_v34 = vld [vmem:[%s11054_s24 + $0x634] sm:$0xf]  ;;  %v13333_v37 = vld [vmem:[#allocation3_spill] sm:$0xff] }
 0x1d5   : > { %v7233_v24 = vpack.c.bf16 %v2796_v51, %v2795_v60  ;;  %7855 = vst.msk [vmem:[%s12818_s26 + $0x68] sm:$0xff] %vm7237_vm11, %v2796_v51  ;;  %v6754_v17 = vrot.slane %v6752_v2, 4  ;;  %v6755_v30 = vrot.slane %v9281_v13, 5  ;;  %v9348_v12 = vrot.slane %v9282_v49, 9  ;;  %v9285_v60 = vld [vmem:[%s11054_s24 + $0x5e0] sm:$0xe]  ;;  %s13141_s26 = scalar_lea.vmem %s13304_s14, %s11993_s17 }
 0x1d6   : > { %v6761_v11 = vrot.slane %v6759_v41, 4  ;;  %v6762_v39 = vrot.slane %v9284_v20, 5  ;;  %v13330_v53 = vpack.c.bf16 %v12094_v46, %v12080_v50  ;;  %v6753_v1 = vsel %vm11056_vm4, %v9347_v47, %v6752_v2  ;;  %v9295_v19 = vld [vmem:[%s11054_s24 + $0x7ec] sm:$0xf]  ;;  %v9294_v45 = vld [vmem:[%s11054_s24 + $0x7e8] sm:$0xe] }
 0x1d7   : > { %10238 = vmatprep.mubr.msk.bf16.mxu0 %vm7237_vm11, %v7233_v24  ;;  %v6756_v32 = vsel %vm11056_vm4, %v6754_v17, %v6755_v30  ;;  %v6766_v35 = vrot.slane %v9286_v43, 5  ;;  %v6760_v50 = vsel %vm11056_vm4, %v9348_v12, %v6759_v41  ;;  %v6773_v4 = vrot.slane %v9289_v58, 5  ;;  %v9296_v28 = vld [vmem:[%s11054_s24 + $0x7f0] sm:$0x1]  ;;  %v13050_v8 = vld [vmem:[%s13299_s9 + $0x6] sm:$0x3] }
 0x1d8   : > { %10239 = vmatmul.mubr.msk.bf16.gmra.mrb[60].mxu0 %vm7237_vm11, %v7234_v0  ;;  %v6763_v46 = vsel %vm11056_vm4, %v6761_v11, %v6762_v39  ;;  %v9355_v51 = vcombine.low %v6753_v1, %v6756_v32  ;;  %v9349_v59 = vrot.slane %v9285_v60, 9  ;;  %v6769_v0 = vrot.slane %v9287_v61, 5  ;;  %v9298_v36 = vld [vmem:[%s11054_s24 + $0x814] sm:$0xf]  ;;  %v13335_v13 = vld [vmem:[#allocation7_spill] sm:$0xff]  ;;  %v13338_v1 = vld [vmem:[#allocation6_spill] sm:$0xff] }
 0x1d9   : > { %10244 = vmatprep.mubr.msk.bf16.mxu0 %vm7237_vm11, %v13328_v18  ;;  %v9356_v14 = vcombine.low %v6760_v50, %v6763_v46  ;;  %v6768_v16 = vrot.slane %v6766_v35, 4  ;;  %v13331_v21 = vpack.c.bf16 %v12086_v55, %v12074_v40  ;;  %v9350_v15 = vrot.slane %v9288_v62, 9  ;;  %v13336_v41 = vld [vmem:[#allocation5_spill] sm:$0xff]  ;;  %v9301_v20 = vld [vmem:[%s11054_s24 + $0x83c] sm:$0xf]  ;;  %v13339_v32 = vld [vmem:[#allocation4_spill] sm:$0xff] }
 0x1da   : > { %10185 = vmatmul.mubr.msk.bf16.gmra.mrb[28].mxu1 %vm691_vm3, %v9334_v3  ;;  %v6775_v10 = vrot.slane %v6773_v4, 4  ;;  %v6776_v26 = vrot.slane %v9290_v31, 5  ;;  %v13332_v24 = vpack.c.bf16 %v12157_v25, %v12140_v52  ;;  %v6767_v40 = vsel %vm11056_vm4, %v9349_v59, %v6766_v35  ;;  %v9291_v25 = vld [vmem:[%s11054_s24 + $0x630] sm:$0xe]  ;;  %v9299_v30 = vld [vmem:[%s11054_s24 + $0x818] sm:$0x1] }
 0x1db   : > { %10190 = vmatprep.mubr.msk.bf16.mxu1 %vm691_vm3, %v9352_v54  ;;  %v6770_v55 = vsel %vm11056_vm4, %v6768_v16, %v6769_v0  ;;  %v6780_v48 = vrot.slane %v9292_v34, 5  ;;  %v6774_v3 = vsel %vm11056_vm4, %v9350_v15, %v6773_v4  ;;  %v9293_v54 = vld [vmem:[%s11054_s24 + $0x638] sm:$0x1]  ;;  %v6977_v27 = vrot.slane %v9295_v19, 5  ;;  %v9297_v17 = vld [vmem:[%s11054_s24 + $0x810] sm:$0xe] }
 0x1dc   : > { %v6777_v52 = vsel %vm11056_vm4, %v6775_v10, %v6776_v26  ;;  %v9357_v23 = vcombine.low %v6767_v40, %v6770_v55  ;;  %v9351_v38 = vrot.slane %v9291_v25, 9  ;;  %v6783_v57 = vrot.slane %v9293_v54, 5  ;;  %v9302_v12 = vld [vmem:[%s11054_s24 + $0x840] sm:$0x1]  ;;  %v9304_v61 = vld [vmem:[%s11054_s24 + $0x864] sm:$0xf] }
 0x1dd   : > { %v9358_v5 = vcombine.low %v6774_v3, %v6777_v52  ;;  %v6782_v18 = vrot.slane %v6780_v48, 4  ;;  %v13334_v33 = vpack.c.bf16 %v12151_v42, %v13333_v37  ;;  %v9369_v2 = vrot.slane %v9294_v45, 9  ;;  %v9307_v4 = vld [vmem:[%s11054_s24 + $0x88c] sm:$0xf]  ;;  %v9303_v16 = vld [vmem:[%s11054_s24 + $0x860] sm:$0xe] }
 0x1de   : > { %v6979_v22 = vrot.slane %v6977_v27, 4  ;;  %v6980_v44 = vrot.slane %v9296_v28, 5  ;;  %v13337_v49 = vpack.c.bf16 %v13335_v13, %v13336_v41  ;;  %v6781_v42 = vsel %vm11056_vm4, %v9351_v38, %v6780_v48  ;;  %v9305_v0 = vld [vmem:[%s11054_s24 + $0x868] sm:$0x1]  ;;  %v9306_v15 = vld [vmem:[%s11054_s24 + $0x888] sm:$0xe] }
 0x1df   : > { %v9370_v43 = vrot.slane %v9297_v17, 9  ;;  %v6987_v58 = vrot.slane %v9299_v30, 5  ;;  %v13340_v35 = vpack.c.bf16 %v13338_v1, %v13339_v32  ;;  %v6994_v60 = vrot.slane %v9302_v12, 5  ;;  %v9308_v10 = vld [vmem:[%s11054_s24 + $0x890] sm:$0x1] }
 0x1e0   : > { %10245 = vmatmul.mubr.msk.bf16.vlgmr.msra.gmra.mrb[48].mxu0 %vm7237_vm11, %v13329_v63  ;;  %v6981_v47 = vsel %vm11056_vm4, %v6979_v22, %v6980_v44  ;;  %v6991_v63 = vrot.slane %v9301_v20, 5  ;;  %v7001_v40 = vrot.slane %v9305_v0, 5  ;;  %v9373_v55 = vrot.slane %v9306_v15, 9  ;;  %v9310_v52 = vld [vmem:[%s11054_s24 + $0x8b4] sm:$0xf] }
 0x1e1   : > { %10248 = vmatprep.mubr.msk.bf16.mxu0 %vm7237_vm11, %v13330_v53  ;;  %10261 = vmatpush3.bf16.msra.mxu0 %v7522_v56  ;;  %v6984_v56 = vrot.slane %v9298_v36, 5  ;;  %v7008_v3 = vrot.slane %v9308_v10, 5  ;;  %v9313_v25 = vld [vmem:[%s11054_s24 + $0x8dc] sm:$0xf]  ;;  %v7012_v45 = vrot.slane %v9310_v52, 5 }
 0x1e2   : > { %10191 = vmatmul.mubr.msk.bf16.vlgmr.msra.gmra.mrb[16].mxu1 %vm691_vm3, %v9353_v29  ;;  %10759 = vmatprep.subr.msk.bf16.mxu0 %vm2900_vm5, %v13050_v8  ;;  %v6784_v29 = vsel %vm11056_vm4, %v6782_v18, %v6783_v57  ;;  %v6993_v46 = vrot.slane %v6991_v63, 4  ;;  %v9311_v38 = vld [vmem:[%s11054_s24 + $0x8b8] sm:$0x1]  ;;  %v7019_v18 = vrot.slane %v9313_v25, 5  ;;  %v9312_v57 = vld [vmem:[%s11054_s24 + $0x8d8] sm:$0xe] }
 0x1e3   : > { %10207 = vmatpush3.bf16.msra.mxu1 %v7080_v7  ;;  %10194 = vmatprep.mubr.msk.bf16.mxu1 %vm691_vm3, %v9354_v9  ;;  %v6978_v9 = vsel %vm11056_vm4, %v9369_v2, %v6977_v27  ;;  %v9300_v7 = vld [vmem:[%s11054_s24 + $0x838] sm:$0xe]  ;;  %v9359_v11 = vcombine.low %v6781_v42, %v6784_v29  ;;  %v6986_v53 = vrot.slane %v6984_v56, 4  ;;  %v6985_v62 = vsel %vm11056_vm4, %v9370_v43, %v6984_v56  ;;  %v9314_v37 = vld [vmem:[%s11054_s24 + $0x8e0] sm:$0x1] }
 0x1e4   : > { %v9377_v39 = vcombine.low %v6978_v9, %v6981_v47  ;;  %v9371_v50 = vrot.slane %v9300_v7, 9  ;;  %v6995_v59 = vsel %vm11056_vm4, %v6993_v46, %v6994_v60  ;;  %v7014_v44 = vrot.slane %v7012_v45, 4  ;;  %v9316_v20 = vld [vmem:[%s11054_s24 + $0x904] sm:$0xf]  ;;  %v9315_v17 = vld [vmem:[%s11054_s24 + $0x900] sm:$0xe] }
 0x1e5   : > { %v6988_v31 = vsel %vm11056_vm4, %v6986_v53, %v6987_v58  ;;  %v7015_v36 = vrot.slane %v9311_v38, 5  ;;  %v9375_v13 = vrot.slane %v9312_v57, 9  ;;  %v7021_v41 = vrot.slane %v7019_v18, 4  ;;  %v9317_v30 = vld [vmem:[%s11054_s24 + $0x908] sm:$0x1] }
 0x1e6   : > { %v9378_v26 = vcombine.low %v6985_v62, %v6988_v31  ;;  %v7026_v56 = vrot.slane %v9316_v20, 5  ;;  %v9376_v12 = vrot.slane %v9315_v17, 9  ;;  %v8998_v1 = vld [vmem:[%s13296_s6] ss:$0 sm:$0xff] }
 0x1e7   : > { %v7016_v29 = vsel %vm11056_vm4, %v7014_v44, %v7015_v36  ;;  %v7020_v9 = vsel %vm11056_vm4, %v9375_v13, %v7019_v18 }
 0x1e8   : > { %10249 = vmatmul.mubr.msk.bf16.gmra.mrb[52].mxu0 %vm7237_vm11, %v13331_v21  ;;  %v7005_v21 = vrot.slane %v9307_v4, 5  ;;  %v7027_v43 = vsel %vm11056_vm4, %v9376_v12, %v7026_v56 }
 0x1e9   : > { %10252 = vmatprep.mubr.msk.bf16.mxu0 %vm7237_vm11, %v13332_v24  ;;  %v9372_v24 = vrot.slane %v9303_v16, 9 }
 0x1ea   : > { %10195 = vmatmul.mubr.msk.bf16.gmra.mrb[20].mxu1 %vm691_vm3, %v9355_v51  ;;  %v6998_v51 = vrot.slane %v9304_v61, 5  ;;  %v7007_v48 = vrot.slane %v7005_v21, 4  ;;  %v7006_v28 = vsel %vm11056_vm4, %v9373_v55, %v7005_v21 }
 0x1eb   : > { %10198 = vmatprep.mubr.msk.bf16.mxu1 %vm691_vm3, %v9356_v14  ;;  %v6992_v14 = vsel %vm11056_vm4, %v9371_v50, %v6991_v63 }
 0x1ec   : > { %v9379_v34 = vcombine.low %v6992_v14, %v6995_v59  ;;  %v7000_v19 = vrot.slane %v6998_v51, 4  ;;  %v6999_v54 = vsel %vm11056_vm4, %v9372_v24, %v6998_v51  ;;  %v7672_v51 = vsel %vm2900_vm5, %v13050_v8, 0 }
 0x1ee   : > { %v7002_v27 = vsel %vm11056_vm4, %v7000_v19, %v7001_v40 }
 0x1f0   : > { %10253 = vmatmul.mubr.msk.bf16.gmra.mrb[56].mxu0 %vm7237_vm11, %v13334_v33  ;;  %v9380_v33 = vcombine.low %v6999_v54, %v7002_v27 }
 0x1f1   : > { %10256 = vmatprep.mubr.msk.bf16.mxu0 %vm7237_vm11, %v13337_v49  ;;  %v7022_v49 = vrot.slane %v9314_v37, 5 }
 0x1f2   : > { %10199 = vmatmul.mubr.msk.bf16.gmra.mrb[24].mxu1 %vm691_vm3, %v9357_v23  ;;  %v7009_v23 = vsel %vm11056_vm4, %v7007_v48, %v7008_v3 }
 0x1f3   : > { %10202 = vmatprep.mubr.msk.bf16.mxu1 %vm691_vm3, %v9358_v5  ;;  %v9309_v5 = vld [vmem:[%s11054_s24 + $0x8b0] sm:$0xe]  ;;  %v9381_v2 = vcombine.low %v7006_v28, %v7009_v23  ;;  %v7023_v47 = vsel %vm11056_vm4, %v7021_v41, %v7022_v49 }
 0x1f4   : > { %v9374_v22 = vrot.slane %v9309_v5, 9  ;;  %v9383_v7 = vcombine.low %v7020_v9, %v7023_v47 }
 0x1f6   : > { %v7013_v42 = vsel %vm11056_vm4, %v9374_v22, %v7012_v45  ;;  %v9393_v22 = vld [vmem:[%s13298_s8] ss:$0 sm:$0xff] }
 0x1f7   : > { %v9382_v63 = vcombine.low %v7013_v42, %v7016_v29 }
 0x1f8   : > { %10257 = vmatmul.mubr.msk.bf16.gmra.mrb[60].mxu0 %vm7237_vm11, %v13340_v35 }
 0x1fa   : > { %10203 = vmatmul.mubr.msk.bf16.gmra.mrb[28].mxu1 %vm691_vm3, %v9359_v11  ;;  %v7028_v11 = vrot.slane %v7026_v56, 4 }
 0x1fb   : > { %10208 = vmatprep.mubr.msk.bf16.mxu1 %vm691_vm3, %v9377_v39  ;;  %v7029_v39 = vrot.slane %v9317_v30, 5 }
 0x1fd   : > { %v7030_v53 = vsel %vm11056_vm4, %v7028_v11, %v7029_v39 }
 0x1fe   : > { %v9384_v58 = vcombine.low %v7027_v43, %v7030_v53 }
 0x202   : > { %10209 = vmatmul.mubr.msk.bf16.vlgmr.msra.gmra.mrb[16].mxu1 %vm691_vm3, %v9378_v26 }
 0x203   : > { %10212 = vmatprep.mubr.msk.bf16.mxu1 %vm691_vm3, %v9379_v34 }
 0x20a   : > { %10213 = vmatmul.mubr.msk.bf16.gmra.mrb[20].mxu1 %vm691_vm3, %v9380_v33 }
 0x20b   : > { %10216 = vmatprep.mubr.msk.bf16.mxu1 %vm691_vm3, %v9381_v2 }
 0x212   : > { %10217 = vmatmul.mubr.msk.bf16.gmra.mrb[24].mxu1 %vm691_vm3, %v9382_v63 }
 0x213   : > { %10220 = vmatprep.mubr.msk.bf16.mxu1 %vm691_vm3, %v9383_v7 }
 0x21a   : > { %10221 = vmatmul.mubr.msk.bf16.gmra.mrb[28].mxu1 %vm691_vm3, %v9384_v58 }
 0x24e   : > { %v10048_v32 = vpop.f32.mrb[32].mxu0 }
 0x24f   : > { %v4996_v35 = vadd.f32 %v10048_v32, %v8998_v1  ;;  %v4908_v6 = vpop.f32.mrb[33].mxu0 }
 0x250   : > { %v4994_v50 = vadd.f32 %v8998_v1, %v4908_v6  ;;  %v10049_v46 = vpop.f32.mrb[34].mxu0 }
 0x251   : > { %7860 = vst.msk [vmem:[%s13141_s26 + $0x10] sm:$0xff] %vm7237_vm11, %v4996_v35  ;;  %v4997_v60 = vadd.f32 %v10049_v46, %v8998_v1  ;;  %v4911_v61 = vpop.f32.mrb[35].mxu0 }
 0x252   : > { %7858 = vst.msk [vmem:[%s13141_s26] sm:$0xff] %vm7237_vm11, %v4994_v50  ;;  %v4995_v4 = vadd.f32 %v8998_v1, %v4911_v61 }
 0x253   : > { %v7488_v62 = vpack.c.bf16 %v4997_v60, %v4996_v35  ;;  %7861 = vst.msk [vmem:[%s13141_s26 + $0x18] sm:$0xff] %vm7237_vm11, %v4997_v60 }
 0x254   : > { %v7487_v31 = vpack.c.bf16 %v4995_v4, %v4994_v50  ;;  %7859 = vst.msk [vmem:[%s13141_s26 + $0x8] sm:$0xff] %vm7237_vm11, %v4995_v4 }
 0x256   : > { %v10052_v14 = vpop.f32.mrb[36].mxu0  ;;  %10262 = vmatprep.mubr.msk.bf16.mxu0 %vm7237_vm11, %v7487_v31 }
 0x257   : > { %v5000_v59 = vadd.f32 %v10052_v14, %v8998_v1  ;;  %v4924_v16 = vpop.f32.mrb[37].mxu0  ;;  %10263 = vmatmul.mubr.msk.bf16.vlgmr.msra.gmra.mrb[48].mxu0 %vm7237_vm11, %v7488_v62 }
 0x258   : > { %v4998_v0 = vadd.f32 %v8998_v1, %v4924_v16  ;;  %v10053_v21 = vpop.f32.mrb[38].mxu0  ;;  %10279 = vmatpush3.bf16.msra.mxu0 %v7672_v51 }
 0x259   : > { %7864 = vst.msk [vmem:[%s13141_s26 + $0x30] sm:$0xff] %vm7237_vm11, %v5000_v59  ;;  %v5001_v15 = vadd.f32 %v10053_v21, %v8998_v1  ;;  %v4927_v10 = vpop.f32.mrb[39].mxu0 }
 0x25a   : > { %7862 = vst.msk [vmem:[%s13141_s26 + $0x20] sm:$0xff] %vm7237_vm11, %v4998_v0  ;;  %v4999_v8 = vadd.f32 %v8998_v1, %v4927_v10 }
 0x25b   : > { %v7490_v26 = vpack.c.bf16 %v5001_v15, %v5000_v59  ;;  %7865 = vst.msk [vmem:[%s13141_s26 + $0x38] sm:$0xff] %vm7237_vm11, %v5001_v15 }
 0x25c   : > { %v7489_v34 = vpack.c.bf16 %v4999_v8, %v4998_v0  ;;  %7863 = vst.msk [vmem:[%s13141_s26 + $0x28] sm:$0xff] %vm7237_vm11, %v4999_v8  ;;  %v9429_v8 = vld [vmem:[%s13300_s10] ss:$0 sm:$0xff] }
 0x25e   : > { %v10056_v24 = vpop.f32.mrb[40].mxu0  ;;  %10266 = vmatprep.mubr.msk.bf16.mxu0 %vm7237_vm11, %v7489_v34 }
 0x25f   : > { %v5004_v19 = vadd.f32 %v10056_v24, %v8998_v1  ;;  %v4940_v40 = vpop.f32.mrb[41].mxu0  ;;  %10267 = vmatmul.mubr.msk.bf16.gmra.mrb[52].mxu0 %vm7237_vm11, %v7490_v26 }
 0x260   : > { %v5002_v55 = vadd.f32 %v8998_v1, %v4940_v40  ;;  %v10057_v48 = vpop.f32.mrb[42].mxu0 }
 0x261   : > { %7868 = vst.msk [vmem:[%s13141_s26 + $0x50] sm:$0xff] %vm7237_vm11, %v5004_v19  ;;  %v5005_v3 = vadd.f32 %v10057_v48, %v8998_v1  ;;  %v4943_v52 = vpop.f32.mrb[43].mxu0 }
 0x262   : > { %7866 = vst.msk [vmem:[%s13141_s26 + $0x40] sm:$0xff] %vm7237_vm11, %v5002_v55  ;;  %v5003_v25 = vadd.f32 %v8998_v1, %v4943_v52 }
 0x263   : > { %v7492_v54 = vpack.c.bf16 %v5005_v3, %v5004_v19  ;;  %7869 = vst.msk [vmem:[%s13141_s26 + $0x58] sm:$0xff] %vm7237_vm11, %v5005_v3 }
 0x264   : > { %v7491_v27 = vpack.c.bf16 %v5003_v25, %v5002_v55  ;;  %7867 = vst.msk [vmem:[%s13141_s26 + $0x48] sm:$0xff] %vm7237_vm11, %v5003_v25 }
 0x266   : > { %v10060_v45 = vpop.f32.mrb[44].mxu0  ;;  %10270 = vmatprep.mubr.msk.bf16.mxu0 %vm7237_vm11, %v7491_v27 }
 0x267   : > { %v5008_v28 = vadd.f32 %v10060_v45, %v8998_v1  ;;  %v4956_v23 = vpop.f32.mrb[45].mxu0  ;;  %10271 = vmatmul.mubr.msk.bf16.gmra.mrb[56].mxu0 %vm7237_vm11, %v7492_v54 }
 0x268   : > { %v5006_v5 = vadd.f32 %v8998_v1, %v4956_v23  ;;  %v10061_v38 = vpop.f32.mrb[46].mxu0 }
 0x269   : > { %7872 = vst.msk [vmem:[%s13141_s26 + $0x70] sm:$0xff] %vm7237_vm11, %v5008_v28  ;;  %v5009_v18 = vadd.f32 %v10061_v38, %v8998_v1  ;;  %v4959_v57 = vpop.f32.mrb[47].mxu0 }
 0x26a   : > { %7870 = vst.msk [vmem:[%s13141_s26 + $0x60] sm:$0xff] %vm7237_vm11, %v5006_v5  ;;  %v5007_v37 = vadd.f32 %v8998_v1, %v4959_v57 }
 0x26b   : > { %v7494_v33 = vpack.c.bf16 %v5009_v18, %v5008_v28  ;;  %7873 = vst.msk [vmem:[%s13141_s26 + $0x78] sm:$0xff] %vm7237_vm11, %v5009_v18 }
 0x26c   : > { %v7493_v2 = vpack.c.bf16 %v5007_v37, %v5006_v5  ;;  %7871 = vst.msk [vmem:[%s13141_s26 + $0x68] sm:$0xff] %vm7237_vm11, %v5007_v37 }
 0x26e   : > { %10274 = vmatprep.mubr.msk.bf16.mxu0 %vm7237_vm11, %v7493_v2 }
 0x26f   : > { %10275 = vmatmul.mubr.msk.bf16.gmra.mrb[60].mxu0 %vm7237_vm11, %v7494_v33 }
 0x2d5   : > { %v10210_v44 = vpop.f32.mrb[16].mxu1 }
 0x2d6   : > { %v7204_v36 = vadd.f32 %v10210_v44, %v9393_v22  ;;  %v7116_v13 = vpop.f32.mrb[17].mxu1 }
 0x2d7   : > { %v7202_v41 = vadd.f32 %v9393_v22, %v7116_v13  ;;  %v10211_v49 = vpop.f32.mrb[18].mxu1 }
 0x2d8   : > { %7876 = vst.msk [vmem:[%s13192_s30 + $0x10] sm:$0xff] %vm7237_vm11, %v7204_v36  ;;  %v7205_v20 = vadd.f32 %v10211_v49, %v9393_v22  ;;  %v7119_v42 = vpop.f32.mrb[19].mxu1 }
 0x2d9   : > { %7874 = vst.msk [vmem:[%s13192_s30] sm:$0xff] %vm7237_vm11, %v7202_v41  ;;  %v7203_v29 = vadd.f32 %v9393_v22, %v7119_v42 }
 0x2da   : > { %v7638_v56 = vpack.c.bf16 %v7205_v20, %v7204_v36  ;;  %7877 = vst.msk [vmem:[%s13192_s30 + $0x18] sm:$0xff] %vm7237_vm11, %v7205_v20 }
 0x2db   : > { %v7637_v9 = vpack.c.bf16 %v7203_v29, %v7202_v41  ;;  %7875 = vst.msk [vmem:[%s13192_s30 + $0x8] sm:$0xff] %vm7237_vm11, %v7203_v29 }
 0x2dd   : > { %v10214_v47 = vpop.f32.mrb[20].mxu1  ;;  %10280 = vmatprep.mubr.msk.bf16.mxu0 %vm7237_vm11, %v7637_v9 }
 0x2de   : > { %v7208_v17 = vadd.f32 %v10214_v47, %v9393_v22  ;;  %v7132_v30 = vpop.f32.mrb[21].mxu1  ;;  %10281 = vmatmul.mubr.msk.bf16.vlgmr.msra.gmra.mrb[48].mxu0 %vm7237_vm11, %v7638_v56 }
 0x2df   : > { %v7206_v63 = vadd.f32 %v9393_v22, %v7132_v30  ;;  %v10215_v7 = vpop.f32.mrb[22].mxu1 }
 0x2e0   : > { %7880 = vst.msk [vmem:[%s13192_s30 + $0x30] sm:$0xff] %vm7237_vm11, %v7208_v17  ;;  %v7209_v12 = vadd.f32 %v10215_v7, %v9393_v22  ;;  %v7135_v11 = vpop.f32.mrb[23].mxu1 }
 0x2e1   : > { %7878 = vst.msk [vmem:[%s13192_s30 + $0x20] sm:$0xff] %vm7237_vm11, %v7206_v63  ;;  %v7207_v39 = vadd.f32 %v9393_v22, %v7135_v11 }
 0x2e2   : > { %v7640_v43 = vpack.c.bf16 %v7209_v12, %v7208_v17  ;;  %7881 = vst.msk [vmem:[%s13192_s30 + $0x38] sm:$0xff] %vm7237_vm11, %v7209_v12 }
 0x2e3   : > { %v7639_v53 = vpack.c.bf16 %v7207_v39, %v7206_v63  ;;  %7879 = vst.msk [vmem:[%s13192_s30 + $0x28] sm:$0xff] %vm7237_vm11, %v7207_v39 }
 0x2e5   : > { %v10218_v58 = vpop.f32.mrb[24].mxu1  ;;  %10284 = vmatprep.mubr.msk.bf16.mxu0 %vm7237_vm11, %v7639_v53 }
 0x2e6   : > { %v7212_v1 = vadd.f32 %v10218_v58, %v9393_v22  ;;  %v7148_v32 = vpop.f32.mrb[25].mxu1  ;;  %10285 = vmatmul.mubr.msk.bf16.gmra.mrb[52].mxu0 %vm7237_vm11, %v7640_v43 }
 0x2e7   : > { %v7210_v35 = vadd.f32 %v9393_v22, %v7148_v32  ;;  %v10219_v6 = vpop.f32.mrb[26].mxu1 }
 0x2e8   : > { %7884 = vst.msk [vmem:[%s13192_s30 + $0x50] sm:$0xff] %vm7237_vm11, %v7212_v1  ;;  %v7213_v50 = vadd.f32 %v10219_v6, %v9393_v22  ;;  %v7151_v46 = vpop.f32.mrb[27].mxu1 }
 0x2e9   : > { %7882 = vst.msk [vmem:[%s13192_s30 + $0x40] sm:$0xff] %vm7237_vm11, %v7210_v35  ;;  %v7211_v60 = vadd.f32 %v9393_v22, %v7151_v46 }
 0x2ea   : > { %v7642_v61 = vpack.c.bf16 %v7213_v50, %v7212_v1  ;;  %7885 = vst.msk [vmem:[%s13192_s30 + $0x58] sm:$0xff] %vm7237_vm11, %v7213_v50 }
 0x2eb   : > { %v7641_v4 = vpack.c.bf16 %v7211_v60, %v7210_v35  ;;  %7883 = vst.msk [vmem:[%s13192_s30 + $0x48] sm:$0xff] %vm7237_vm11, %v7211_v60 }
 0x2ed   : > { %v10222_v62 = vpop.f32.mrb[28].mxu1  ;;  %10288 = vmatprep.mubr.msk.bf16.mxu0 %vm7237_vm11, %v7641_v4 }
 0x2ee   : > { %v7216_v31 = vadd.f32 %v10222_v62, %v9393_v22  ;;  %v7164_v51 = vpop.f32.mrb[29].mxu1  ;;  %10289 = vmatmul.mubr.msk.bf16.gmra.mrb[56].mxu0 %vm7237_vm11, %v7642_v61 }
 0x2ef   : > { %v7214_v14 = vadd.f32 %v9393_v22, %v7164_v51  ;;  %v10223_v59 = vpop.f32.mrb[30].mxu1 }
 0x2f0   : > { %7888 = vst.msk [vmem:[%s13192_s30 + $0x70] sm:$0xff] %vm7237_vm11, %v7216_v31  ;;  %v7217_v16 = vadd.f32 %v10223_v59, %v9393_v22  ;;  %v7167_v0 = vpop.f32.mrb[31].mxu1 }
 0x2f1   : > { %7886 = vst.msk [vmem:[%s13192_s30 + $0x60] sm:$0xff] %vm7237_vm11, %v7214_v14  ;;  %v7215_v21 = vadd.f32 %v9393_v22, %v7167_v0 }
 0x2f2   : > { %v7644_v15 = vpack.c.bf16 %v7217_v16, %v7216_v31  ;;  %7889 = vst.msk [vmem:[%s13192_s30 + $0x78] sm:$0xff] %vm7237_vm11, %v7217_v16 }
 0x2f3   : > { %v7643_v10 = vpack.c.bf16 %v7215_v21, %v7214_v14  ;;  %7887 = vst.msk [vmem:[%s13192_s30 + $0x68] sm:$0xff] %vm7237_vm11, %v7215_v21 }
 0x2f5   : > { %10292 = vmatprep.mubr.msk.bf16.mxu0 %vm7237_vm11, %v7643_v10 }
 0x2f6   : > { %10293 = vmatmul.mubr.msk.bf16.gmra.mrb[60].mxu0 %vm7237_vm11, %v7644_v15 }
 0x3b1   : > { %v10282_v26 = vpop.f32.mrb[48].mxu0 }
 0x3b2   : > { %v7796_v34 = vadd.f32 %v10282_v26, %v9429_v8  ;;  %v7708_v24 = vpop.f32.mrb[49].mxu0 }
 0x3b3   : > { %v7794_v19 = vadd.f32 %v9429_v8, %v7708_v24  ;;  %v10283_v40 = vpop.f32.mrb[50].mxu0 }
 0x3b4   : > { %7812 = vst.msk [vmem:[%s13241_s25 + $0x10] sm:$0xff] %vm7237_vm11, %v7796_v34  ;;  %v7797_v55 = vadd.f32 %v10283_v40, %v9429_v8  ;;  %v7711_v48 = vpop.f32.mrb[51].mxu0 }
 0x3b5   : > { %7810 = vst.msk [vmem:[%s13241_s25] sm:$0xff] %vm7237_vm11, %v7794_v19  ;;  %v7795_v3 = vadd.f32 %v9429_v8, %v7711_v48 }
 0x3b6   : > { %7813 = vst.msk [vmem:[%s13241_s25 + $0x18] sm:$0xff] %vm7237_vm11, %v7797_v55 }
 0x3b7   : > { %7811 = vst.msk [vmem:[%s13241_s25 + $0x8] sm:$0xff] %vm7237_vm11, %v7795_v3 }
 0x3b9   : > { %v10286_v52 = vpop.f32.mrb[52].mxu0 }
 0x3ba   : > { %v7800_v25 = vadd.f32 %v10286_v52, %v9429_v8  ;;  %v7724_v54 = vpop.f32.mrb[53].mxu0 }
 0x3bb   : > { %v7798_v27 = vadd.f32 %v9429_v8, %v7724_v54  ;;  %v10287_v45 = vpop.f32.mrb[54].mxu0 }
 0x3bc   : > { %7816 = vst.msk [vmem:[%s13241_s25 + $0x30] sm:$0xff] %vm7237_vm11, %v7800_v25  ;;  %v7801_v28 = vadd.f32 %v10287_v45, %v9429_v8  ;;  %v7727_v23 = vpop.f32.mrb[55].mxu0 }
 0x3bd   : > { %7814 = vst.msk [vmem:[%s13241_s25 + $0x20] sm:$0xff] %vm7237_vm11, %v7798_v27  ;;  %v7799_v5 = vadd.f32 %v9429_v8, %v7727_v23 }
 0x3be   : > { %7817 = vst.msk [vmem:[%s13241_s25 + $0x38] sm:$0xff] %vm7237_vm11, %v7801_v28 }
 0x3bf   : > { %7815 = vst.msk [vmem:[%s13241_s25 + $0x28] sm:$0xff] %vm7237_vm11, %v7799_v5 }
 0x3c1   : > { %v10290_v38 = vpop.f32.mrb[56].mxu0 }
 0x3c2   : > { %v7804_v18 = vadd.f32 %v10290_v38, %v9429_v8  ;;  %v7740_v57 = vpop.f32.mrb[57].mxu0 }
 0x3c3   : > { %v7802_v37 = vadd.f32 %v9429_v8, %v7740_v57  ;;  %v10291_v33 = vpop.f32.mrb[58].mxu0 }
 0x3c4   : > { %7820 = vst.msk [vmem:[%s13241_s25 + $0x50] sm:$0xff] %vm7237_vm11, %v7804_v18  ;;  %v7805_v2 = vadd.f32 %v10291_v33, %v9429_v8  ;;  %v7743_v22 = vpop.f32.mrb[59].mxu0 }
 0x3c5   : > { %7818 = vst.msk [vmem:[%s13241_s25 + $0x40] sm:$0xff] %vm7237_vm11, %v7802_v37  ;;  %v7803_v44 = vadd.f32 %v9429_v8, %v7743_v22 }
 0x3c6   : > { %7821 = vst.msk [vmem:[%s13241_s25 + $0x58] sm:$0xff] %vm7237_vm11, %v7805_v2 }
 0x3c7   : > { %7819 = vst.msk [vmem:[%s13241_s25 + $0x48] sm:$0xff] %vm7237_vm11, %v7803_v44 }
 0x3c9   : > { %v10294_v36 = vpop.f32.mrb[60].mxu0 }
 0x3ca   : > { %v7808_v13 = vadd.f32 %v10294_v36, %v9429_v8  ;;  %v7756_v41 = vpop.f32.mrb[61].mxu0 }
 0x3cb   : > { %v7806_v49 = vadd.f32 %v9429_v8, %v7756_v41  ;;  %v10295_v20 = vpop.f32.mrb[62].mxu0 }
 0x3cc   : > { %7824 = vst.msk [vmem:[%s13241_s25 + $0x70] sm:$0xff] %vm7237_vm11, %v7808_v13  ;;  %v7809_v42 = vadd.f32 %v10295_v20, %v9429_v8  ;;  %v7759_v29 = vpop.f32.mrb[63].mxu0 }
 0x3cd   : > { %7822 = vst.msk [vmem:[%s13241_s25 + $0x60] sm:$0xff] %vm7237_vm11, %v7806_v49  ;;  %v7807_v56 = vadd.f32 %v9429_v8, %v7759_v29 }
 0x3ce   : > { %7825 = vst.msk [vmem:[%s13241_s25 + $0x78] sm:$0xff] %vm7237_vm11, %v7809_v42 }
 0x3cf   : > { %7823 = vst.msk [vmem:[%s13241_s25 + $0x68] sm:$0xff] %vm7237_vm11, %v7807_v56 }
 0x3d0 PF: > { %s26_s22 = sadd.s32 1, %s10915_s22   ;;  %s13341_s17 = sld [smem:[#allocation2_spill]] }
 0x3d1   : > { %p23_p7 = scmp.ge.s32.totalorder %s26_s22, 6   ;;  %s13342_s18 = smov %s10907_s20 }
 0x3d2   : > { %s13343_s19 = smov %s10911_s21  ;;  %s13344_s20 = smov %s13347_s23 }
 0x3d3   :  { %25 = sbr.rel (!%p23_p7) target bundleno = 3 (0x3), region = 173 }
 0x3d6   : > { %s13345_s21 = smov %s13341_s17 }

</bundles_post_ra>
